<compile_context>
chip_gen: v7x
topology: tpu7x:2x2x1
jax: 0.10.0
libtpu: 0.0.40
codegen_flags: <defaults>
</compile_context>

<pallas_src>
import jax
import jax.numpy as jnp
from jax.experimental import pallas as pl
from jax.experimental.pallas import tpu as pltpu

NCP = 128   # lane-padded classifier width (sliced back to num_classes)
C1P = 8     # per-tap input-channel pad for conv1 (real c_in = 4)


# ----------------------------------------------------------------------------
# Fused kernel: conv1+ReLU -> conv2+ReLU -> GAP -> FC for one image per grid step.
#   x_ref   : [1, H, W, C1P]          bf16  (channels zero-padded to C1P)
#   w1_ref  : [9*C1P, C1]             bf16  packed im2col slab, (kh, kw, cin) rows
#   b1_ref  : [1, C1]                 f32
#   w2_ref  : [9*C1,  C2]             bf16
#   b2_ref  : [1, C2]                 f32
#   fcw_ref : [C2, NCP]               bf16  (pre-scaled by 1/(H*W))
#   fcb_ref : [1, NCP]                f32
#   o_ref   : [1, 1, NCP]             f32
#   pad1_s  : VMEM [H+2, W+2, C1P]    f32   halo scratch, layer 1
#   pad2_s  : VMEM [H+2, W+2, C1]     f32   halo scratch, layer 2
# ----------------------------------------------------------------------------
def fused_backbone_kernel(x_ref, w1_ref, b1_ref, w2_ref, b2_ref,
                          fcw_ref, fcb_ref, o_ref, pad1_s, pad2_s):
    _, H, W, _ = x_ref.shape
    HW = H * W

    def zero_halo_ring(pad_ref):
        # Interior is fully overwritten right after, so only the 1-wide halo
        # ring needs zeroing.  Done every grid step (megacore-safe).
        C = pad_ref.shape[-1]
        zrow = jnp.zeros((1, W + 2, C), jnp.float32)
        zcol = jnp.zeros((H, 1, C), jnp.float32)
        pad_ref[0:1, :, :] = zrow                 # top halo row (incl. corners)
        pad_ref[H + 1:H + 2, :, :] = zrow         # bottom halo row
        pad_ref[1:H + 1, 0:1, :] = zcol           # left halo column
        pad_ref[1:H + 1, W + 1:W + 2, :] = zcol   # right halo column

    def conv3x3(pad_ref, w_ref, b_ref):
        # 3x3 "same" conv as ONE packed im2col matmul: build the (H*W, 9*C)
        # patch (kh-major, kw, then channel on the lane axis) and issue a
        # single MXU dot with f32 accumulation.  No VMEM accumulator RMW.
        C = pad_ref.shape[-1]
        padded = pad_ref[...]                                   # (H+2, W+2, C)
        taps = [padded[kh:kh + H, kw:kw + W, :]                 # (H, W, C)
                for kh in range(3) for kw in range(3)]
        patch = jnp.concatenate(taps, axis=-1)                  # (H, W, 9*C)
        patch = patch.reshape(HW, 9 * C).astype(jnp.bfloat16)
        acc = jnp.dot(patch, w_ref[...],
                      preferred_element_type=jnp.float32)       # (HW, Cout)
        return jnp.maximum(acc + b_ref[...], 0.0)               # f32

    # ---- layer 1 -----------------------------------------------------------
    zero_halo_ring(pad1_s)
    pad1_s[1:H + 1, 1:W + 1, :] = x_ref[0].astype(jnp.float32)
    h1 = conv3x3(pad1_s, w1_ref, b1_ref)                        # (HW, C1)

    # ---- layer 2 -----------------------------------------------------------
    zero_halo_ring(pad2_s)
    pad2_s[1:H + 1, 1:W + 1, :] = h1.reshape(H, W, h1.shape[-1])
    h2 = conv3x3(pad2_s, w2_ref, b2_ref)                        # (HW, C2)

    # ---- GAP + FC epilogue (1/(H*W) already folded into fc_w) --------------
    pooled = jnp.sum(h2, axis=0, keepdims=True)                 # (1, C2) f32
    logits = jnp.dot(pooled.astype(jnp.bfloat16), fcw_ref[...],
                     preferred_element_type=jnp.float32) + fcb_ref[...]
    o_ref[...] = logits.reshape(o_ref.shape).astype(o_ref.dtype)


# ----------------------------------------------------------------------------
# Parameter construction (deterministic, in-script) in the *logical* sizes,
# plus a one-time prep step that packs conv weights into (9*C_in_pad, C_out)
# im2col slabs (bf16), pads the classifier to 128 lanes and folds the GAP
# normalization into fc_w.
# TODO(synk): arbitrary timm architectures / checkpoint loading have no clean
# Pallas equivalent; a representative conv backbone is instantiated instead.
# ----------------------------------------------------------------------------
def init_params(key, c_in=4, c1=32, c2=64, num_classes=10):
    k1, k2, k3 = jax.random.split(key, 3)
    return {
        "conv1_w": jax.random.normal(k1, (3, 3, c_in, c1), jnp.float32)
        * (1.0 / jnp.sqrt(9.0 * c_in)),
        "conv1_b": jnp.zeros((1, c1), jnp.float32),
        "conv2_w": jax.random.normal(k2, (3, 3, c1, c2), jnp.float32)
        * (1.0 / jnp.sqrt(9.0 * c1)),
        "conv2_b": jnp.zeros((1, c2), jnp.float32),
        "fc_w": jax.random.normal(k3, (c2, num_classes), jnp.float32)
        * (1.0 / jnp.sqrt(float(c2))),
        "fc_b": jnp.zeros((1, num_classes), jnp.float32),
    }


def _pad_axis(a, axis, size):
    pads = [(0, 0)] * a.ndim
    pads[axis] = (0, size - a.shape[axis])
    return jnp.pad(a, pads)


def prepare_kernel_params(params, image_hw):
    h, w = image_hw

    def conv_slab(wt, cin_pad):
        # HWIO (3,3,cin,cout) -> (9*cin_pad, cout) bf16, rows in (kh,kw,cin) order
        wt = _pad_axis(wt, 2, cin_pad)                       # (3,3,cin_pad,cout)
        return wt.reshape(9 * cin_pad, wt.shape[-1]).astype(jnp.bfloat16)

    c1 = params["conv1_b"].shape[-1]
    fc_w = params["fc_w"] * (1.0 / float(h * w))             # fold GAP scale
    return {
        "w1": conv_slab(params["conv1_w"], C1P),             # (72, 32)
        "b1": params["conv1_b"].reshape(1, -1).astype(jnp.float32),
        "w2": conv_slab(params["conv2_w"], c1),              # (288, 64)
        "b2": params["conv2_b"].reshape(1, -1).astype(jnp.float32),
        "fc_w": _pad_axis(fc_w, 1, NCP).astype(jnp.bfloat16),            # (64,128)
        "fc_b": _pad_axis(params["fc_b"].reshape(1, -1), 1, NCP)
        .astype(jnp.float32),
    }


# ----------------------------------------------------------------------------
# Forward pass: GenericBackbone.forward(x) equivalent.
#   x : [N, C, H, W]  (PyTorch NCHW convention) -> logits [N, num_classes]
# ----------------------------------------------------------------------------
def generic_backbone_forward(x_nchw, kparams, num_classes=10):
    # glue: NCHW -> NHWC, tiny channel pad to C1P lanes, bf16 for cheap DMA
    x = jnp.transpose(x_nchw, (0, 2, 3, 1))
    n, h, w, _ = x.shape
    x = _pad_axis(x, 3, C1P).astype(jnp.bfloat16)            # [N, H, W, C1P]

    k1_rows, c1 = kparams["w1"].shape
    c1p = k1_rows // 9                                       # conv1 tap width (8)
    k2_rows, c2 = kparams["w2"].shape
    c2p = k2_rows // 9                                       # conv2 tap width (==c1)

    out = pl.pallas_call(
        fused_backbone_kernel,
        out_shape=jax.ShapeDtypeStruct((n, 1, NCP), jnp.float32),
        grid_spec=pltpu.PrefetchScalarGridSpec(
            num_scalar_prefetch=0,
            grid=(n,),                                        # one image / step
            in_specs=[
                pl.BlockSpec((1, h, w, c1p), lambda b: (b, 0, 0, 0)),
                pl.BlockSpec((k1_rows, c1), lambda b: (0, 0)),
                pl.BlockSpec((1, c1), lambda b: (0, 0)),
                pl.BlockSpec((k2_rows, c2), lambda b: (0, 0)),
                pl.BlockSpec((1, c2), lambda b: (0, 0)),
                pl.BlockSpec((c2, NCP), lambda b: (0, 0)),
                pl.BlockSpec((1, NCP), lambda b: (0, 0)),
            ],
            out_specs=pl.BlockSpec((1, 1, NCP), lambda b: (b, 0, 0)),
            scratch_shapes=[
                pltpu.VMEM((h + 2, w + 2, c1p), jnp.float32),  # halo, layer 1
                pltpu.VMEM((h + 2, w + 2, c2p), jnp.float32),  # halo, layer 2
            ],
        ),
        compiler_params=pltpu.CompilerParams(
            dimension_semantics=("parallel",),                 # both TCs on v7x
        ),
    )(x, kparams["w1"], kparams["b1"], kparams["w2"], kparams["b2"],
      kparams["fc_w"], kparams["fc_b"])

    return out.reshape(n, NCP)[:, :num_classes]


if __name__ == "__main__":
    key = jax.random.PRNGKey(0)
    k_x, k_p = jax.random.split(key)

    # small NCHW input, consistent with an image-backbone forward
    x = jax.random.normal(k_x, (2, 4, 16, 16), jnp.float32)
    params = init_params(k_p, c_in=4, c1=32, c2=64, num_classes=10)
    kparams = prepare_kernel_params(params, image_hw=(16, 16))

    fwd = jax.jit(generic_backbone_forward)
    out = fwd(x, kparams)
    jax.block_until_ready(out)

    assert out.shape == (2, 10) and out.dtype == jnp.float32
    print("KERNEL_OK")
</pallas_src>

<mosaic_0001>
module attributes {stable_mosaic.version = 11 : i64} {
  func.func @fused_backbone_kernel(%arg0: i32, %arg1: memref<1x16x16x8xbf16, #tpu.memory_space<vmem>>, %arg2: memref<72x32xbf16, #tpu.memory_space<vmem>>, %arg3: memref<1x32xf32, #tpu.memory_space<vmem>>, %arg4: memref<288x64xbf16, #tpu.memory_space<vmem>>, %arg5: memref<1x64xf32, #tpu.memory_space<vmem>>, %arg6: memref<64x128xbf16, #tpu.memory_space<vmem>>, %arg7: memref<1x128xf32, #tpu.memory_space<vmem>>, %arg8: memref<1x1x128xf32, #tpu.memory_space<vmem>>, %arg9: memref<18x18x8xf32, #tpu.memory_space<vmem>>, %arg10: memref<18x18x32xf32, #tpu.memory_space<vmem>>) attributes {dimension_semantics = [#tpu.dimension_semantics<parallel>], iteration_bounds = array<i64: 2>, scalar_prefetch = 0 : i64, scratch_operands = 2 : i64, tpu.core_type = #tpu.core_type<tc>, window_params = [{transform_indices = @transform_0, window_bounds = array<i64: 1, 16, 16, 8>}, {pipeline_mode = #tpu.pipeline_mode<synchronous>, transform_indices = @transform_1, window_bounds = array<i64: 72, 32>}, {pipeline_mode = #tpu.pipeline_mode<synchronous>, transform_indices = @transform_2, window_bounds = array<i64: 1, 32>}, {pipeline_mode = #tpu.pipeline_mode<synchronous>, transform_indices = @transform_3, window_bounds = array<i64: 288, 64>}, {pipeline_mode = #tpu.pipeline_mode<synchronous>, transform_indices = @transform_4, window_bounds = array<i64: 1, 64>}, {pipeline_mode = #tpu.pipeline_mode<synchronous>, transform_indices = @transform_5, window_bounds = array<i64: 64, 128>}, {pipeline_mode = #tpu.pipeline_mode<synchronous>, transform_indices = @transform_6, window_bounds = array<i64: 1, 128>}, {transform_indices = @transform_7, window_bounds = array<i64: 1, 1, 128>}]} {
    %cst = arith.constant 0.000000e+00 : f32
    %0 = vector.broadcast %cst : f32 to vector<1x18x8xf32>
    %cst_0 = arith.constant 0.000000e+00 : f32
    %1 = vector.broadcast %cst_0 : f32 to vector<16x1x8xf32>
    %c0 = arith.constant 0 : index
    %c0_1 = arith.constant 0 : index
    %c0_2 = arith.constant 0 : index
    %2 = vector.load %arg9[%c0, %c0_1, %c0_2] : memref<18x18x8xf32, #tpu.memory_space<vmem>>, vector<1x18x8xf32>
    tpu.vector_store %arg9[%c0, %c0_1, %c0_2], %0 {strides = array<i32>} : memref<18x18x8xf32, #tpu.memory_space<vmem>>, vector<1x18x8xf32>,
    %c17 = arith.constant 17 : index
    %c0_3 = arith.constant 0 : index
    %c0_4 = arith.constant 0 : index
    %3 = vector.load %arg9[%c17, %c0_3, %c0_4] : memref<18x18x8xf32, #tpu.memory_space<vmem>>, vector<1x18x8xf32>
    tpu.vector_store %arg9[%c17, %c0_3, %c0_4], %0 {strides = array<i32>} : memref<18x18x8xf32, #tpu.memory_space<vmem>>, vector<1x18x8xf32>,
    %c1 = arith.constant 1 : index
    %c0_5 = arith.constant 0 : index
    %c0_6 = arith.constant 0 : index
    %4 = vector.load %arg9[%c1, %c0_5, %c0_6] : memref<18x18x8xf32, #tpu.memory_space<vmem>>, vector<16x1x8xf32>
    tpu.vector_store %arg9[%c1, %c0_5, %c0_6], %1 {strides = array<i32>} : memref<18x18x8xf32, #tpu.memory_space<vmem>>, vector<16x1x8xf32>,
    %c1_7 = arith.constant 1 : index
    %c17_8 = arith.constant 17 : index
    %c0_9 = arith.constant 0 : index
    %5 = vector.load %arg9[%c1_7, %c17_8, %c0_9] : memref<18x18x8xf32, #tpu.memory_space<vmem>>, vector<16x1x8xf32>
    tpu.vector_store %arg9[%c1_7, %c17_8, %c0_9], %1 {strides = array<i32>} : memref<18x18x8xf32, #tpu.memory_space<vmem>>, vector<16x1x8xf32>,
    %c0_10 = arith.constant 0 : index
    %c0_11 = arith.constant 0 : index
    %c0_12 = arith.constant 0 : index
    %c0_13 = arith.constant 0 : index
    %6 = vector.load %arg1[%c0_10, %c0_11, %c0_12, %c0_13] : memref<1x16x16x8xbf16, #tpu.memory_space<vmem>>, vector<1x16x16x8xbf16>
    %7 = vector.shape_cast %6 : vector<1x16x16x8xbf16> to vector<16x16x8xbf16>
    %8 = arith.extf %7 : vector<16x16x8xbf16> to vector<16x16x8xf32>
    %c1_14 = arith.constant 1 : index
    %c1_15 = arith.constant 1 : index
    %c0_16 = arith.constant 0 : index
    %9 = vector.load %arg9[%c1_14, %c1_15, %c0_16] : memref<18x18x8xf32, #tpu.memory_space<vmem>>, vector<16x16x8xf32>
    tpu.vector_store %arg9[%c1_14, %c1_15, %c0_16], %8 {strides = array<i32>} : memref<18x18x8xf32, #tpu.memory_space<vmem>>, vector<16x16x8xf32>,
    %c0_17 = arith.constant 0 : index
    %c0_18 = arith.constant 0 : index
    %c0_19 = arith.constant 0 : index
    %10 = vector.load %arg9[%c0_17, %c0_18, %c0_19] : memref<18x18x8xf32, #tpu.memory_space<vmem>>, vector<18x18x8xf32>
    %11 = vector.extract_strided_slice %10 {offsets = [0, 0, 0], sizes = [16, 16, 8], strides = [1, 1, 1]} : vector<18x18x8xf32> to vector<16x16x8xf32>
    %12 = vector.extract_strided_slice %10 {offsets = [0, 1, 0], sizes = [16, 16, 8], strides = [1, 1, 1]} : vector<18x18x8xf32> to vector<16x16x8xf32>
    %13 = vector.extract_strided_slice %10 {offsets = [0, 2, 0], sizes = [16, 16, 8], strides = [1, 1, 1]} : vector<18x18x8xf32> to vector<16x16x8xf32>
    %14 = vector.extract_strided_slice %10 {offsets = [1, 0, 0], sizes = [16, 16, 8], strides = [1, 1, 1]} : vector<18x18x8xf32> to vector<16x16x8xf32>
    %15 = vector.extract_strided_slice %10 {offsets = [1, 1, 0], sizes = [16, 16, 8], strides = [1, 1, 1]} : vector<18x18x8xf32> to vector<16x16x8xf32>
    %16 = vector.extract_strided_slice %10 {offsets = [1, 2, 0], sizes = [16, 16, 8], strides = [1, 1, 1]} : vector<18x18x8xf32> to vector<16x16x8xf32>
    %17 = vector.extract_strided_slice %10 {offsets = [2, 0, 0], sizes = [16, 16, 8], strides = [1, 1, 1]} : vector<18x18x8xf32> to vector<16x16x8xf32>
    %18 = vector.extract_strided_slice %10 {offsets = [2, 1, 0], sizes = [16, 16, 8], strides = [1, 1, 1]} : vector<18x18x8xf32> to vector<16x16x8xf32>
    %19 = vector.extract_strided_slice %10 {offsets = [2, 2, 0], sizes = [16, 16, 8], strides = [1, 1, 1]} : vector<18x18x8xf32> to vector<16x16x8xf32>
    %20 = tpu.concatenate %11, %12, %13, %14, %15, %16, %17, %18, %19 in 2 : vector<16x16x8xf32>, vector<16x16x8xf32>, vector<16x16x8xf32>, vector<16x16x8xf32>, vector<16x16x8xf32>, vector<16x16x8xf32>, vector<16x16x8xf32>, vector<16x16x8xf32>, vector<16x16x8xf32> -> vector<16x16x72xf32>
    %21 = vector.shape_cast %20 : vector<16x16x72xf32> to vector<256x72xf32>
    %22 = arith.truncf %21 : vector<256x72xf32> to vector<256x72xbf16>
    %c0_20 = arith.constant 0 : index
    %c0_21 = arith.constant 0 : index
    %23 = vector.load %arg2[%c0_20, %c0_21] : memref<72x32xbf16, #tpu.memory_space<vmem>>, vector<72x32xbf16>
    %cst_22 = arith.constant dense<0.000000e+00> : vector<256x32xf32>
    %24 = tpu.matmul %22, %23, %cst_22 {dimension_numbers = #tpu.dot_dimension_numbers<[1], [0], [0], [1], [0, 0, 1, 1], [], []>} : vector<256x72xbf16>, vector<72x32xbf16>, vector<256x32xf32> -> vector<256x32xf32>
    %c0_23 = arith.constant 0 : index
    %c0_24 = arith.constant 0 : index
    %25 = vector.load %arg3[%c0_23, %c0_24] : memref<1x32xf32, #tpu.memory_space<vmem>>, vector<1x32xf32>
    %26 = vector.broadcast %25 : vector<1x32xf32> to vector<256x32xf32>
    %27 = arith.addf %24, %26 : vector<256x32xf32>
    %cst_25 = arith.constant 0.000000e+00 : f32
    %28 = vector.broadcast %cst_25 : f32 to vector<256x32xf32>
    %29 = arith.maximumf %27, %28 : vector<256x32xf32>
    %cst_26 = arith.constant 0.000000e+00 : f32
    %30 = vector.broadcast %cst_26 : f32 to vector<1x18x32xf32>
    %cst_27 = arith.constant 0.000000e+00 : f32
    %31 = vector.broadcast %cst_27 : f32 to vector<16x1x32xf32>
    %c0_28 = arith.constant 0 : index
    %c0_29 = arith.constant 0 : index
    %c0_30 = arith.constant 0 : index
    %32 = vector.load %arg10[%c0_28, %c0_29, %c0_30] : memref<18x18x32xf32, #tpu.memory_space<vmem>>, vector<1x18x32xf32>
    tpu.vector_store %arg10[%c0_28, %c0_29, %c0_30], %30 {strides = array<i32>} : memref<18x18x32xf32, #tpu.memory_space<vmem>>, vector<1x18x32xf32>,
    %c17_31 = arith.constant 17 : index
    %c0_32 = arith.constant 0 : index
    %c0_33 = arith.constant 0 : index
    %33 = vector.load %arg10[%c17_31, %c0_32, %c0_33] : memref<18x18x32xf32, #tpu.memory_space<vmem>>, vector<1x18x32xf32>
    tpu.vector_store %arg10[%c17_31, %c0_32, %c0_33], %30 {strides = array<i32>} : memref<18x18x32xf32, #tpu.memory_space<vmem>>, vector<1x18x32xf32>,
    %c1_34 = arith.constant 1 : index
    %c0_35 = arith.constant 0 : index
    %c0_36 = arith.constant 0 : index
    %34 = vector.load %arg10[%c1_34, %c0_35, %c0_36] : memref<18x18x32xf32, #tpu.memory_space<vmem>>, vector<16x1x32xf32>
    tpu.vector_store %arg10[%c1_34, %c0_35, %c0_36], %31 {strides = array<i32>} : memref<18x18x32xf32, #tpu.memory_space<vmem>>, vector<16x1x32xf32>,
    %c1_37 = arith.constant 1 : index
    %c17_38 = arith.constant 17 : index
    %c0_39 = arith.constant 0 : index
    %35 = vector.load %arg10[%c1_37, %c17_38, %c0_39] : memref<18x18x32xf32, #tpu.memory_space<vmem>>, vector<16x1x32xf32>
    tpu.vector_store %arg10[%c1_37, %c17_38, %c0_39], %31 {strides = array<i32>} : memref<18x18x32xf32, #tpu.memory_space<vmem>>, vector<16x1x32xf32>,
    %36 = vector.shape_cast %29 : vector<256x32xf32> to vector<16x16x32xf32>
    %c1_40 = arith.constant 1 : index
    %c1_41 = arith.constant 1 : index
    %c0_42 = arith.constant 0 : index
    %37 = vector.load %arg10[%c1_40, %c1_41, %c0_42] : memref<18x18x32xf32, #tpu.memory_space<vmem>>, vector<16x16x32xf32>
    tpu.vector_store %arg10[%c1_40, %c1_41, %c0_42], %36 {strides = array<i32>} : memref<18x18x32xf32, #tpu.memory_space<vmem>>, vector<16x16x32xf32>,
    %c0_43 = arith.constant 0 : index
    %c0_44 = arith.constant 0 : index
    %c0_45 = arith.constant 0 : index
    %38 = vector.load %arg10[%c0_43, %c0_44, %c0_45] : memref<18x18x32xf32, #tpu.memory_space<vmem>>, vector<18x18x32xf32>
    %39 = vector.extract_strided_slice %38 {offsets = [0, 0, 0], sizes = [16, 16, 32], strides = [1, 1, 1]} : vector<18x18x32xf32> to vector<16x16x32xf32>
    %40 = vector.extract_strided_slice %38 {offsets = [0, 1, 0], sizes = [16, 16, 32], strides = [1, 1, 1]} : vector<18x18x32xf32> to vector<16x16x32xf32>
    %41 = vector.extract_strided_slice %38 {offsets = [0, 2, 0], sizes = [16, 16, 32], strides = [1, 1, 1]} : vector<18x18x32xf32> to vector<16x16x32xf32>
    %42 = vector.extract_strided_slice %38 {offsets = [1, 0, 0], sizes = [16, 16, 32], strides = [1, 1, 1]} : vector<18x18x32xf32> to vector<16x16x32xf32>
    %43 = vector.extract_strided_slice %38 {offsets = [1, 1, 0], sizes = [16, 16, 32], strides = [1, 1, 1]} : vector<18x18x32xf32> to vector<16x16x32xf32>
    %44 = vector.extract_strided_slice %38 {offsets = [1, 2, 0], sizes = [16, 16, 32], strides = [1, 1, 1]} : vector<18x18x32xf32> to vector<16x16x32xf32>
    %45 = vector.extract_strided_slice %38 {offsets = [2, 0, 0], sizes = [16, 16, 32], strides = [1, 1, 1]} : vector<18x18x32xf32> to vector<16x16x32xf32>
    %46 = vector.extract_strided_slice %38 {offsets = [2, 1, 0], sizes = [16, 16, 32], strides = [1, 1, 1]} : vector<18x18x32xf32> to vector<16x16x32xf32>
    %47 = vector.extract_strided_slice %38 {offsets = [2, 2, 0], sizes = [16, 16, 32], strides = [1, 1, 1]} : vector<18x18x32xf32> to vector<16x16x32xf32>
    %48 = tpu.concatenate %39, %40, %41, %42, %43, %44, %45, %46, %47 in 2 : vector<16x16x32xf32>, vector<16x16x32xf32>, vector<16x16x32xf32>, vector<16x16x32xf32>, vector<16x16x32xf32>, vector<16x16x32xf32>, vector<16x16x32xf32>, vector<16x16x32xf32>, vector<16x16x32xf32> -> vector<16x16x288xf32>
    %49 = vector.shape_cast %48 : vector<16x16x288xf32> to vector<256x288xf32>
    %50 = arith.truncf %49 : vector<256x288xf32> to vector<256x288xbf16>
    %c0_46 = arith.constant 0 : index
    %c0_47 = arith.constant 0 : index
    %51 = vector.load %arg4[%c0_46, %c0_47] : memref<288x64xbf16, #tpu.memory_space<vmem>>, vector<288x64xbf16>
    %cst_48 = arith.constant dense<0.000000e+00> : vector<256x64xf32>
    %52 = tpu.matmul %50, %51, %cst_48 {dimension_numbers = #tpu.dot_dimension_numbers<[1], [0], [0], [1], [0, 0, 1, 1], [], []>} : vector<256x288xbf16>, vector<288x64xbf16>, vector<256x64xf32> -> vector<256x64xf32>
    %c0_49 = arith.constant 0 : index
    %c0_50 = arith.constant 0 : index
    %53 = vector.load %arg5[%c0_49, %c0_50] : memref<1x64xf32, #tpu.memory_space<vmem>>, vector<1x64xf32>
    %54 = vector.broadcast %53 : vector<1x64xf32> to vector<256x64xf32>
    %55 = arith.addf %52, %54 : vector<256x64xf32>
    %cst_51 = arith.constant 0.000000e+00 : f32
    %56 = vector.broadcast %cst_51 : f32 to vector<256x64xf32>
    %57 = arith.maximumf %55, %56 : vector<256x64xf32>
    %cst_52 = arith.constant dense<0.000000e+00> : vector<64xf32>
    %58 = vector.multi_reduction <add>, %57, %cst_52 [0] : vector<256x64xf32> to vector<64xf32>
    %59 = vector.shape_cast %58 : vector<64xf32> to vector<1x64xf32>
    %60 = arith.truncf %59 : vector<1x64xf32> to vector<1x64xbf16>
    %c0_53 = arith.constant 0 : index
    %c0_54 = arith.constant 0 : index
    %61 = vector.load %arg6[%c0_53, %c0_54] : memref<64x128xbf16, #tpu.memory_space<vmem>>, vector<64x128xbf16>
    %cst_55 = arith.constant dense<0.000000e+00> : vector<1x128xf32>
    %62 = tpu.matmul %60, %61, %cst_55 {dimension_numbers = #tpu.dot_dimension_numbers<[1], [0], [0], [1], [0, 0, 1, 1], [], []>} : vector<1x64xbf16>, vector<64x128xbf16>, vector<1x128xf32> -> vector<1x128xf32>
    %c0_56 = arith.constant 0 : index
    %c0_57 = arith.constant 0 : index
    %63 = vector.load %arg7[%c0_56, %c0_57] : memref<1x128xf32, #tpu.memory_space<vmem>>, vector<1x128xf32>
    %64 = arith.addf %62, %63 : vector<1x128xf32>
    %65 = vector.shape_cast %64 : vector<1x128xf32> to vector<1x1x128xf32>
    %c0_58 = arith.constant 0 : index
    %c0_59 = arith.constant 0 : index
    %c0_60 = arith.constant 0 : index
    %66 = vector.load %arg8[%c0_58, %c0_59, %c0_60] : memref<1x1x128xf32, #tpu.memory_space<vmem>>, vector<1x1x128xf32>
    tpu.vector_store %arg8[%c0_58, %c0_59, %c0_60], %65 {strides = array<i32>} : memref<1x1x128xf32, #tpu.memory_space<vmem>>, vector<1x1x128xf32>,
    return
  }
  func.func @transform_0(%arg0: i32) -> (i32, i32, i32, i32) {
    %c0_i32 = arith.constant 0 : i32
    %c0_i32_0 = arith.constant 0 : i32
    %c0_i32_1 = arith.constant 0 : i32
    %c0_i32_2 = arith.constant 0 : i32
    return %arg0, %c0_i32, %c0_i32_0, %c0_i32_1 : i32, i32, i32, i32
  }
  func.func @transform_1(%arg0: i32) -> (i32, i32) {
    %c0_i32 = arith.constant 0 : i32
    %c0_i32_0 = arith.constant 0 : i32
    %c0_i32_1 = arith.constant 0 : i32
    return %c0_i32, %c0_i32_0 : i32, i32
  }
  func.func @transform_2(%arg0: i32) -> (i32, i32) {
    %c0_i32 = arith.constant 0 : i32
    %c0_i32_0 = arith.constant 0 : i32
    %c0_i32_1 = arith.constant 0 : i32
    return %c0_i32, %c0_i32_0 : i32, i32
  }
  func.func @transform_3(%arg0: i32) -> (i32, i32) {
    %c0_i32 = arith.constant 0 : i32
    %c0_i32_0 = arith.constant 0 : i32
    %c0_i32_1 = arith.constant 0 : i32
    return %c0_i32, %c0_i32_0 : i32, i32
  }
  func.func @transform_4(%arg0: i32) -> (i32, i32) {
    %c0_i32 = arith.constant 0 : i32
    %c0_i32_0 = arith.constant 0 : i32
    %c0_i32_1 = arith.constant 0 : i32
    return %c0_i32, %c0_i32_0 : i32, i32
  }
  func.func @transform_5(%arg0: i32) -> (i32, i32) {
    %c0_i32 = arith.constant 0 : i32
    %c0_i32_0 = arith.constant 0 : i32
    %c0_i32_1 = arith.constant 0 : i32
    return %c0_i32, %c0_i32_0 : i32, i32
  }
  func.func @transform_6(%arg0: i32) -> (i32, i32) {
    %c0_i32 = arith.constant 0 : i32
    %c0_i32_0 = arith.constant 0 : i32
    %c0_i32_1 = arith.constant 0 : i32
    return %c0_i32, %c0_i32_0 : i32, i32
  }
  func.func @transform_7(%arg0: i32) -> (i32, i32, i32) {
    %c0_i32 = arith.constant 0 : i32
    %c0_i32_0 = arith.constant 0 : i32
    %c0_i32_1 = arith.constant 0 : i32
    return %arg0, %c0_i32, %c0_i32_0 : i32, i32, i32
  }
}

</mosaic_0001>

<bundles_post_ra>
// kernel: generic_backbone_forward.1
= control target key start
LH: loop header
LB: loop body
LE: loop exit
PB: predicated region body
PF: predicated region fallthrough
CT: control target
= control target key end

     0   :  { %12 = vsyncpa [#allocation5], 0  ;;  %s8157_s0 = inlined_call_operand.vmem [shape: bf16[2,16,16,8], index: 0, kind: input, shape index: {}]   ;;  %s8158_s1 = inlined_call_operand.vmem [shape: bf16[72,32], index: 1, kind: input, shape index: {}]   ;;  %s8159_s2 = inlined_call_operand.vmem [shape: f32[1,32], index: 2, kind: input, shape index: {}]   ;;  %s8160_s3 = inlined_call_operand.vmem [shape: bf16[288,64], index: 3, kind: input, shape index: {}]   ;;  %s8161_s4 = inlined_call_operand.vmem [shape: f32[1,64], index: 4, kind: input, shape index: {}]   ;;  %s8162_s5 = inlined_call_operand.vmem [shape: bf16[64,128], index: 5, kind: input, shape index: {}]   ;;  %s8163_s6 = inlined_call_operand.vmem [shape: f32[1,128], index: 6, kind: input, shape index: {}]   ;;  %s8164_s7 = inlined_call_operand.hbm [shape: f32[2,1,128], index: 7, kind: output, shape index: {}]  }
   0x1   :  { %14 = vsyncpa [#allocation5 + $0x1], 0  ;;  %s5815_s24 = smov 0   ;;  %s5817_s25 = smov 0  }
   0x2   :  { %s5819_s26 = smov 0   ;;  %s5821_s27 = smov 0  }
   0x3 LB: > { %s5836_s28 = sadd.s32 4294967295, %s5761_s27   ;;  %s4053_s29 = sadd.s32 4294967294, %s5761_s27   ;;  %s5761_s27 = sphi %s5821_s27, %s8177_s27   ;;  %s5757_s26 = sphi %s5819_s26, %s8176_s26   ;;  %s5753_s25 = sphi %s5817_s25, %s8175_s25   ;;  %s5749_s24 = sphi %s5815_s24, %s8174_s24  }
   0x4   : > { %s5840_s30 = sadd.s32 1, %s5761_s27   ;;  %s179_s8 = sadd.s32 1, %s5757_s26 }
   0x5   : > { %s176_s9 = ssub.s32 %s5761_s27, %s5840_s30  ;;  %p189_p0 = scmp.ne.s32.totalorder %s5757_s26, %s5753_s25 }
   0x6   : > { %p177_p1 = scmp.eq.s32.totalorder %s176_s9, 0  ;;  %p190_p2 = scmp.eq.s32.totalorder %s5836_s28, 1 }
   0x7   : > { %p195_p3 = scmp.ne.s32.totalorder %s5753_s25, %s5749_s24  ;;  %p196_p4 = scmp.eq.s32.totalorder %s4053_s29, 1 }
   0x8   : > { %s5851_s10 = scalar_select %p177_p1, %s5757_s26, %s179_s8  }
   0x9   : > { %p5853_p5 = por %p190_p2, %p189_p0  ;;  %p5857_p6 = por %p196_p4, %p195_p3 }
   0xa   : > { %p4056_p7 = scmp.ge.s32.totalorder %s5761_s27, 1  ;;  %p240_p8 = scmp.lt.s32.totalorder %s5761_s27, 3 }
   0xc   : > { %p241_p9 = pnand %p4056_p7, %p240_p8 }
   0xd   : > { %vm277_vm0 = vcmask (!%p241_p9), 64512   ;;  %vm280_vm1 = vcmask (!%p241_p9), 58368   ;;  %v8165_v0 = vmov (!%p241_p9), 0.0   ;;  %p271_p10 = scmp.lt.s32.totalorder (!%p241_p9), %s5836_s28, 1  ;;  %vm287_vm2 = vcmask (!%p241_p9), 57344   ;;  %s5764_s18 = smov (!%p241_p9), 16  }
   0xe   : > { %244 = sbr.rel (%p241_p9) target bundleno = 1258 (0x4ea), region = 48  ;;  %278 = vst.msk [vmem:[#allocation2] sm:$0xff] (!%p241_p9), %vm277_vm0, %v8165_v0  ;;  %279 = vst.msk [vmem:[#allocation2 + $0x8] sm:$0xff] (!%p241_p9), %vm277_vm0, %v8165_v0  ;;  %vm695_vm3 = vcmask (!%p241_p9), 1045504   ;;  %vm518_vm4 = vcmask (!%p241_p9), 1046528   ;;  %s5765_s19 = smov (!%p241_p9), 8  }
   0xf   : > { %281 = vst.msk [vmem:[#allocation2 + $0x10] sm:$0x3] (!%p241_p9), %vm280_vm1, %v8165_v0  ;;  %285 = vst.msk [vmem:[#allocation2 + $0x1a8] sm:$0x3] (!%p241_p9), %vm280_vm1, %v8165_v0  ;;  %v5621_v46 = vld [vmem:[%s8158_s1] sm:$0xff] (!%p241_p9)   ;;  %s5766_s22 = smov (!%p241_p9), 24  }
  0x10   : > { %283 = vst.msk [vmem:[#allocation2 + $0x198] sm:$0xff] (!%p241_p9), %vm277_vm0, %v8165_v0  ;;  %284 = vst.msk [vmem:[#allocation2 + $0x1a0] sm:$0xff] (!%p241_p9), %vm277_vm0, %v8165_v0  ;;  %4360 = vmatprep.subr.bf16.mxu0 (!%p241_p9), %v5621_v46  ;;  %s5767_s23 = smov (!%p241_p9), 48   ;;  %s5769_s20 = smov (!%p241_p9), 40   ;;  %vm1572_vm5 = vcmask (!%p241_p9), 261120   ;;  %vm1845_vm6 = vcmask (!%p241_p9), 1043456  }
  0x11   : > { %289 = vst.msk [vmem:[#allocation2 + $0x30] sm:$0x1] (!%p241_p9), %vm287_vm2, %v8165_v0  ;;  %288 = vst.msk [vmem:[#allocation2 + $0x18] sm:$0x1] (!%p241_p9), %vm287_vm2, %v8165_v0  ;;  %4361 = vmatpush3.bf16.msra.mxu0 (!%p241_p9), %v5621_v46  ;;  %s5770_s21 = smov (!%p241_p9), 56   ;;  %s5771_s29 = smov (!%p241_p9), 64  }
  0x12   : > { %290 = vst.msk [vmem:[#allocation2 + $0x48] sm:$0x1] (!%p241_p9), %vm287_vm2, %v8165_v0  ;;  %291 = vst.msk [vmem:[#allocation2 + $0x60] sm:$0x1] (!%p241_p9), %vm287_vm2, %v8165_v0  ;;  %vm1506_vm7 = vcmask (!%p241_p9), 130048   ;;  %vm1539_vm8 = vcmask (!%p241_p9), 195584  }
  0x13   : > { %292 = vst.msk [vmem:[#allocation2 + $0x78] sm:$0x1] (!%p241_p9), %vm287_vm2, %v8165_v0  ;;  %293 = vst.msk [vmem:[#allocation2 + $0x90] sm:$0x1] (!%p241_p9), %vm287_vm2, %v8165_v0  ;;  %vm1605_vm9 = vcmask (!%p241_p9), 326656   ;;  %vm1638_vm10 = vcmask (!%p241_p9), 392192  }
  0x14   : > { %294 = vst.msk [vmem:[#allocation2 + $0xa8] sm:$0x1] (!%p241_p9), %vm287_vm2, %v8165_v0  ;;  %295 = vst.msk [vmem:[#allocation2 + $0xc0] sm:$0x1] (!%p241_p9), %vm287_vm2, %v8165_v0  ;;  %vm1671_vm11 = vcmask (!%p241_p9), 457728   ;;  %vm1704_vm12 = vcmask (!%p241_p9), 523264  }
  0x15   : > { %296 = vst.msk [vmem:[#allocation2 + $0xd8] sm:$0x1] %vm287_vm2, %v8165_v0  ;;  %297 = vst.msk [vmem:[#allocation2 + $0xf0] sm:$0x1] %vm287_vm2, %v8165_v0  ;;  %s272_s13 = scalar_select %p271_p10, %s5836_s28, 1  ;;  %v5949_v4 = vld [vmem:[#allocation2] sm:$0xff] }
  0x16   : > { %298 = vst.msk [vmem:[#allocation2 + $0x108] sm:$0x1] %vm287_vm2, %v8165_v0  ;;  %299 = vst.msk [vmem:[#allocation2 + $0x120] sm:$0x1] %vm287_vm2, %v8165_v0  ;;  %v5951_v5 = vld [vmem:[#allocation2 + $0x8] sm:$0xff]  ;;  %v696_v11 = vrot.slane %v5949_v4, 2 }
  0x17   : > { %300 = vst.msk [vmem:[#allocation2 + $0x138] sm:$0x1] %vm287_vm2, %v8165_v0  ;;  %301 = vst.msk [vmem:[#allocation2 + $0x150] sm:$0x1] %vm287_vm2, %v8165_v0  ;;  %s4124_s14 = sshll.u32 %s272_s13, 7  ;;  %v697_v12 = vrot.slane %v5951_v5, 2 }
  0x18   : > { %302 = vst.msk [vmem:[#allocation2 + $0x168] sm:$0x1] %vm287_vm2, %v8165_v0  ;;  %303 = vst.msk [vmem:[#allocation2 + $0x180] sm:$0x1] %vm287_vm2, %v8165_v0  ;;  %s5944_s17 = scalar_lea.vmem %s8157_s0, %s4124_s14  ;;  %v418_v6 = vld [vmem:[#allocation2 + $0x10] sm:$0x3] }
  0x19   : > { %304 = vst.msk [vmem:[#allocation2 + $0x29] sm:$0x1] %vm287_vm2, %v8165_v0  ;;  %305 = vst.msk [vmem:[#allocation2 + $0x41] sm:$0x1] %vm287_vm2, %v8165_v0  ;;  %v4189_v1 = vld [vmem:[%s5944_s17 + $0x8] sm:$0xff]   ;;  %v4126_v2 = vld [vmem:[%s5944_s17] sm:$0xff]   ;;  %v698_v24 = vsel %vm695_vm3, %v696_v11, %v697_v12 }
  0x1a   : > { %306 = vst.msk [vmem:[#allocation2 + $0x59] sm:$0x1] %vm287_vm2, %v8165_v0  ;;  %307 = vst.msk [vmem:[#allocation2 + $0x71] sm:$0x1] %vm287_vm2, %v8165_v0  ;;  %v4190_v3 = vld [vmem:[%s5944_s17 + $0x10] sm:$0xff]   ;;  %v4131_v7 = vunpack.c.l.bf16 %v4189_v1  ;;  %v4132_v8 = vunpack.c.h.bf16 %v4189_v1  ;;  %v4127_v9 = vunpack.c.l.bf16 %v4126_v2  ;;  %v4128_v10 = vunpack.c.h.bf16 %v4126_v2  ;;  %v4191_v15 = vld [vmem:[%s5944_s17 + $0x18] sm:$0xff]  }
  0x1b   : > { %308 = vst.msk [vmem:[#allocation2 + $0x89] sm:$0x1] %vm287_vm2, %v8165_v0  ;;  %309 = vst.msk [vmem:[#allocation2 + $0xa1] sm:$0x1] %vm287_vm2, %v8165_v0  ;;  %v699_v13 = vrot.slane %v418_v6, 2  ;;  %v519_v14 = vrot.slane %v5949_v4, 1  ;;  %v4135_v19 = vunpack.c.l.bf16 %v4190_v3  ;;  %v4136_v20 = vunpack.c.h.bf16 %v4190_v3 }
  0x1c   : > { %310 = vst.msk [vmem:[#allocation2 + $0xb9] sm:$0x1] %vm287_vm2, %v8165_v0  ;;  %311 = vst.msk [vmem:[#allocation2 + $0xd1] sm:$0x1] %vm287_vm2, %v8165_v0  ;;  %v4192_v16 = vld [vmem:[%s5944_s17 + $0x20] sm:$0xff]   ;;  %v520_v17 = vrot.slane %v5951_v5, 1  ;;  %v4139_v26 = vunpack.c.l.bf16 %v4191_v15  ;;  %v4140_v27 = vunpack.c.h.bf16 %v4191_v15 }
  0x1d   : > { %312 = vst.msk [vmem:[#allocation2 + $0xe9] sm:$0x1] %vm287_vm2, %v8165_v0  ;;  %313 = vst.msk [vmem:[#allocation2 + $0x101] sm:$0x1] %vm287_vm2, %v8165_v0  ;;  %v522_v18 = vrot.slane %v418_v6, 1  ;;  %v4193_v21 = vld [vmem:[%s5944_s17 + $0x28] sm:$0xff]   ;;  %v700_v25 = vsel %vm695_vm3, %v697_v12, %v699_v13  ;;  %v4143_v32 = vunpack.c.l.bf16 %v4192_v16  ;;  %v4144_v35 = vunpack.c.h.bf16 %v4192_v16 }
  0x1e   : > { %314 = vst.msk [vmem:[#allocation2 + $0x119] sm:$0x1] %vm287_vm2, %v8165_v0  ;;  %315 = vst.msk [vmem:[#allocation2 + $0x131] sm:$0x1] %vm287_vm2, %v8165_v0  ;;  %v4194_v22 = vld [vmem:[%s5944_s17 + $0x30] sm:$0xff]   ;;  %v4195_v23 = vld [vmem:[%s5944_s17 + $0x38] sm:$0xff]   ;;  %v4506_v29 = vpack.i.bf16 %v700_v25, %v698_v24  ;;  %v521_v30 = vsel %vm518_vm4, %v519_v14, %v520_v17  ;;  %v4147_v36 = vunpack.c.l.bf16 %v4193_v21  ;;  %v4148_v37 = vunpack.c.h.bf16 %v4193_v21 }
  0x1f   : > { %316 = vst.msk [vmem:[#allocation2 + $0x149] sm:$0x1] %vm287_vm2, %v8165_v0  ;;  %317 = vst.msk [vmem:[#allocation2 + $0x161] sm:$0x1] %vm287_vm2, %v8165_v0  ;;  %v4196_v28 = vld [vmem:[%s5944_s17 + $0x40] sm:$0xff]   ;;  %v523_v31 = vsel %vm518_vm4, %v520_v17, %v522_v18  ;;  %v4197_v33 = vld [vmem:[%s5944_s17 + $0x48] sm:$0xff]   ;;  %v4151_v38 = vunpack.c.l.bf16 %v4194_v22  ;;  %v4152_v39 = vunpack.c.h.bf16 %v4194_v22  ;;  %v4155_v40 = vunpack.c.l.bf16 %v4195_v23 }
  0x20   : > { %318 = vst.msk [vmem:[#allocation2 + $0x179] sm:$0x1] %vm287_vm2, %v8165_v0  ;;  %319 = vst.msk [vmem:[#allocation2 + $0x191] sm:$0x1] %vm287_vm2, %v8165_v0  ;;  %v4501_v34 = vpack.i.bf16 %v523_v31, %v521_v30  ;;  %4507 = vrot.lane.b32.xlu1 %v4506_v29, %s5764_s18  ;;  %v4156_v41 = vunpack.c.h.bf16 %v4195_v23  ;;  %v4159_v42 = vunpack.c.l.bf16 %v4196_v28  ;;  %v4160_v43 = vunpack.c.h.bf16 %v4196_v28  ;;  %v5622_v18 = vld [vmem:[%s8158_s1 + $0x8] sm:$0xff]   ;;  %v5623_v21 = vld [vmem:[%s8158_s1 + $0x10] sm:$0xff]  }
  0x21   : > { %386 = vst.msk [vmem:[#allocation2 + $0x31] sm:$0xff] %vm277_vm0, %v4131_v7  ;;  %387 = vst.msk [vmem:[#allocation2 + $0x39] sm:$0xff] %vm277_vm0, %v4132_v8  ;;  %v4163_v44 = vunpack.c.l.bf16 %v4197_v33  ;;  %v4164_v45 = vunpack.c.h.bf16 %v4197_v33  ;;  %4362 = vmatprep.subr.bf16.mxu0 %v5622_v18  ;;  %s5768_s14 = smov 32   ;;  %v5624_v28 = vld [vmem:[%s8158_s1 + $0x18] sm:$0xff]   ;;  %vm1796_vm13 = vcmask 588800   ;;  %vm2044_vm14 = vcmask 254976  }
  0x22   : > { %384 = vst.msk [vmem:[#allocation2 + $0x19] sm:$0xff] %vm277_vm0, %v4127_v9  ;;  %385 = vst.msk [vmem:[#allocation2 + $0x21] sm:$0xff] %vm277_vm0, %v4128_v10  ;;  %4502 = vrot.lane.b32.xlu0 %v4501_v34, %s5765_s19  ;;  %4363 = vmatpush3.bf16.msra.mxu0 %v5622_v18  ;;  %vm2051_vm15 = vcmask 253952   ;;  %s5772_s15 = smov 96   ;;  %vm5773_vm1 = vmmov 0  }
  0x23   : > { %388 = vst.msk [vmem:[#allocation2 + $0x49] sm:$0xff] %vm277_vm0, %v4135_v19  ;;  %389 = vst.msk [vmem:[#allocation2 + $0x51] sm:$0xff] %vm277_vm0, %v4136_v20  ;;  %4364 = vmatprep.subr.bf16.mxu0 %v5623_v21 }
  0x24   : > { %390 = vst.msk [vmem:[#allocation2 + $0x61] sm:$0xff] %vm277_vm0, %v4139_v26  ;;  %391 = vst.msk [vmem:[#allocation2 + $0x69] sm:$0xff] %vm277_vm0, %v4140_v27 }
  0x25   : > { %392 = vst.msk [vmem:[#allocation2 + $0x79] sm:$0xff] %vm277_vm0, %v4143_v32  ;;  %393 = vst.msk [vmem:[#allocation2 + $0x81] sm:$0xff] %vm277_vm0, %v4144_v35 }
  0x26   : > { %394 = vst.msk [vmem:[#allocation2 + $0x91] sm:$0xff] %vm277_vm0, %v4147_v36  ;;  %395 = vst.msk [vmem:[#allocation2 + $0x99] sm:$0xff] %vm277_vm0, %v4148_v37  ;;  %4365 = vmatpush3.bf16.msra.mxu0 %v5623_v21 }
  0x27   : > { %396 = vst.msk [vmem:[#allocation2 + $0xa9] sm:$0xff] %vm277_vm0, %v4151_v38  ;;  %397 = vst.msk [vmem:[#allocation2 + $0xb1] sm:$0xff] %vm277_vm0, %v4152_v39  ;;  %4366 = vmatprep.subr.bf16.mxu0 %v5624_v28 }
  0x28   : > { %398 = vst.msk [vmem:[#allocation2 + $0xc1] sm:$0xff] %vm277_vm0, %v4155_v40  ;;  %399 = vst.msk [vmem:[#allocation2 + $0xc9] sm:$0xff] %vm277_vm0, %v4156_v41  ;;  %v422_v47 = vld [vmem:[#allocation2 + $0x30] sm:$0xff]  ;;  %v423_v48 = vld [vmem:[#allocation2 + $0x38] sm:$0xff] }
  0x29   : > { %v5989_v49 = vld [vmem:[#allocation2 + $0x18] sm:$0xff]  ;;  %400 = vst.msk [vmem:[#allocation2 + $0xd9] sm:$0xff] %vm277_vm0, %v4159_v42  ;;  %401 = vst.msk [vmem:[#allocation2 + $0xe1] sm:$0xff] %vm277_vm0, %v4160_v43  ;;  %v4516_v50 = vpack.i.bf16 %v423_v48, %v422_v47  ;;  %v5995_v51 = vld [vmem:[#allocation2 + $0x20] sm:$0xff]  ;;  %v529_v1 = vrot.slane %v422_v47, 1  ;;  %v530_v2 = vrot.slane %v423_v48, 1 }
  0x2a   : > { %402 = vst.msk [vmem:[#allocation2 + $0xf1] sm:$0xff] %vm277_vm0, %v4163_v44  ;;  %403 = vst.msk [vmem:[#allocation2 + $0xf9] sm:$0xff] %vm277_vm0, %v4164_v45  ;;  %v421_v52 = vld [vmem:[#allocation2 + $0x28] sm:$0x3]  ;;  %v701_v53 = vrot.slane %v5989_v49, 2  ;;  %v524_v54 = vrot.slane %v5989_v49, 1  ;;  %v4511_v55 = vpack.i.bf16 %v5995_v51, %v5989_v49  ;;  %4367 = vmatpush3.bf16.msra.mxu0 %v5624_v28 }
  0x2b   : > { %v425_v56 = vld [vmem:[#allocation2 + $0x48] sm:$0xff]  ;;  %v426_v57 = vld [vmem:[#allocation2 + $0x50] sm:$0xff]  ;;  %v702_v58 = vrot.slane %v5995_v51, 2  ;;  %v704_v59 = vrot.slane %v421_v52, 2  ;;  %v525_v60 = vrot.slane %v5995_v51, 1  ;;  %4517 = vrot.lane.b32.xlu1 %v4516_v50, %s5766_s22  ;;  %v527_v62 = vrot.slane %v421_v52, 1 }
  0x2c   : > { %v6004_v61 = vpack.i.bf16 %v426_v57, %v425_v56  ;;  %v424_v63 = vld [vmem:[#allocation2 + $0x40] sm:$0x3]  ;;  %4512 = vrot.lane.b32.xlu0 %v4511_v55, %s5766_s22  ;;  %v531_v11 = vsel %vm518_vm4, %v529_v1, %v530_v2  ;;  %v706_v12 = vrot.slane %v422_v47, 2  ;;  %v707_v15 = vrot.slane %v423_v48, 2  ;;  %v427_v17 = vld [vmem:[#allocation2 + $0x58] sm:$0x3] }
  0x2d   : > { %v703_v3 = vsel %vm695_vm3, %v701_v53, %v702_v58  ;;  %v705_v6 = vsel %vm695_vm3, %v702_v58, %v704_v59  ;;  %v532_v7 = vrot.slane %v424_v63, 1  ;;  %v526_v8 = vsel %vm518_vm4, %v524_v54, %v525_v60  ;;  %v428_v37 = vld [vmem:[#allocation2 + $0x60] sm:$0xff]  ;;  %v429_v38 = vld [vmem:[#allocation2 + $0x68] sm:$0xff]  ;;  %v430_v39 = vld [vmem:[#allocation2 + $0x70] sm:$0x3]  ;;  %2042 = vst.msk [vmem:[#allocation3] sm:$0xff] %vm1572_vm5, %v8165_v0 }
  0x2e   : > { %v528_v9 = vsel %vm518_vm4, %v525_v60, %v527_v62  ;;  %v4536_v10 = vpack.i.bf16 %v705_v6, %v703_v3  ;;  %v709_v16 = vrot.slane %v424_v63, 2  ;;  %v534_v20 = vrot.slane %v425_v56, 1  ;;  %v431_v54 = vld [vmem:[#allocation2 + $0x78] sm:$0xff]  ;;  %v432_v55 = vld [vmem:[#allocation2 + $0x80] sm:$0xff]  ;;  %2043 = vst.msk [vmem:[#allocation3 + $0x8] sm:$0xff] %vm1572_vm5, %v8165_v0  ;;  %2047 = vst.msk [vmem:[#allocation3 + $0x198] sm:$0xff] %vm1572_vm5, %v8165_v0 }
  0x2f   : > { %4527 = vrot.lane.b32.xlu1 %v6004_v61, %s5767_s23  ;;  %v4531_v13 = vpack.i.bf16 %v528_v9, %v526_v8  ;;  %v533_v14 = vsel %vm518_vm4, %v530_v2, %v532_v7  ;;  %v708_v22 = vsel %vm695_vm3, %v706_v12, %v707_v15  ;;  %v535_v24 = vrot.slane %v426_v57, 1  ;;  %2048 = vst.msk [vmem:[#allocation3 + $0x1a0] sm:$0xff] %vm1572_vm5, %v8165_v0  ;;  %v4198_v58 = vld [vmem:[%s5944_s17 + $0x50] sm:$0xff]   ;;  %v4199_v2 = vld [vmem:[%s5944_s17 + $0x58] sm:$0xff]   ;;  %v4200_v6 = vld [vmem:[%s5944_s17 + $0x60] sm:$0xff]  }
  0x30   : > { %4522 = vrot.lane.b32.xlu0 %v4516_v50, %s5767_s23  ;;  %v4546_v19 = vpack.i.bf16 %v533_v14, %v531_v11  ;;  %v710_v23 = vsel %vm695_vm3, %v707_v15, %v709_v16  ;;  %v537_v25 = vrot.slane %v427_v17, 1  ;;  %v711_v27 = vrot.slane %v425_v56, 2  ;;  %v433_v56 = vld [vmem:[#allocation2 + $0x88] sm:$0x3]  ;;  %v434_v21 = vld [vmem:[#allocation2 + $0x90] sm:$0xff] }
  0x31   : > { %v4556_v26 = vpack.i.bf16 %v710_v23, %v708_v22  ;;  %v536_v29 = vsel %vm518_vm4, %v534_v20, %v535_v24  ;;  %v712_v31 = vrot.slane %v426_v57, 2  ;;  %v714_v32 = vrot.slane %v427_v17, 2  ;;  %v5625_v57 = vld [vmem:[%s8158_s1 + $0x20] ss:$0 sps:$4 sm:$0xff]   ;;  %v435_v22 = vld [vmem:[#allocation2 + $0x98] sm:$0xff] }
  0x32   : > { %v538_v30 = vsel %vm518_vm4, %v535_v24, %v537_v25  ;;  %v539_v40 = vrot.slane %v428_v37, 1  ;;  %v540_v41 = vrot.slane %v429_v38, 1  ;;  %v542_v42 = vrot.slane %v430_v39, 1  ;;  %4450 = vmatprep.subr.msk.bf16.mxu0 %vm1845_vm6, %v5625_v57  ;;  %v436_v23 = vld [vmem:[#allocation2 + $0xa0] sm:$0x3]  ;;  %v4201_v24 = vld [vmem:[%s5944_s17 + $0x68] sm:$0xff]  }
  0x33   : > { %4537 = vrot.lane.b32.xlu1 %v4536_v10, %s5764_s18  ;;  %v4566_v33 = vpack.i.bf16 %v538_v30, %v536_v29  ;;  %v713_v34 = vsel %vm695_vm3, %v711_v27, %v712_v31  ;;  %v715_v35 = vsel %vm695_vm3, %v712_v31, %v714_v32  ;;  %v4606_v43 = vpack.i.bf16 %v429_v38, %v428_v37 }
  0x34   : > { %4532 = vrot.lane.b32.xlu0 %v4531_v13, %s5765_s19  ;;  %v4576_v36 = vpack.i.bf16 %v715_v35, %v713_v34  ;;  %v716_v44 = vrot.slane %v428_v37, 2  ;;  %v541_v45 = vsel %vm518_vm4, %v539_v40, %v540_v41  ;;  %v543_v46 = vsel %vm518_vm4, %v540_v41, %v542_v42  ;;  %v4202_v37 = vld [vmem:[%s5944_s17 + $0x70] sm:$0xff]   ;;  %v437_v42 = vld [vmem:[#allocation2 + $0xa8] sm:$0xff]  ;;  %2045 = vst.msk [vmem:[#allocation3 + $0x10] sm:$0x3] %vm2044_vm14, %v8165_v0 }
  0x35   : > { %v717_v47 = vrot.slane %v429_v38, 2  ;;  %v719_v48 = vrot.slane %v430_v39, 2  ;;  %v4616_v50 = vpack.i.bf16 %v543_v46, %v541_v45  ;;  %v544_v60 = vrot.slane %v431_v54, 1  ;;  %2049 = vst.msk [vmem:[#allocation3 + $0x1a8] sm:$0x3] %vm2044_vm14, %v8165_v0 }
  0x36   : > { %v547_v62 = vrot.slane %v433_v56, 1  ;;  %v4167_v63 = vunpack.c.l.bf16 %v4198_v58  ;;  %v4168_v1 = vunpack.c.h.bf16 %v4198_v58  ;;  %v1847_v3 = vsel %vm1845_vm6, %v5625_v57, 0  ;;  %2053 = vst.msk [vmem:[#allocation3 + $0x30] sm:$0x1] %vm2051_vm15, %v8165_v0  ;;  %2052 = vst.msk [vmem:[#allocation3 + $0x18] sm:$0x1] %vm2051_vm15, %v8165_v0 }
  0x37   : > { %4547 = vrot.lane.b32.xlu1 %v4546_v19, %s5768_s14  ;;  %v718_v52 = vsel %vm695_vm3, %v716_v44, %v717_v47  ;;  %v720_v53 = vsel %vm695_vm3, %v717_v47, %v719_v48  ;;  %v4636_v7 = vpack.i.bf16 %v432_v55, %v431_v54  ;;  %v721_v8 = vrot.slane %v431_v54, 2  ;;  %4369 = vmatpush3.bf16.msra.mxu0 %v1847_v3  ;;  %v439_v44 = vld [vmem:[#allocation2 + $0xb8] sm:$0x3]  ;;  %v442_v3 = vld [vmem:[#allocation2 + $0xd0] sm:$0x3] }
  0x38   : > { %4542 = vrot.lane.b32.xlu0 %v4531_v13, %s5768_s14  ;;  %v4626_v59 = vpack.i.bf16 %v720_v53, %v718_v52  ;;  %404 = vst.msk [vmem:[#allocation2 + $0x109] sm:$0xff] %vm277_vm0, %v4167_v63  ;;  %405 = vst.msk [vmem:[#allocation2 + $0x111] sm:$0xff] %vm277_vm0, %v4168_v1  ;;  %v722_v11 = vrot.slane %v432_v55, 2  ;;  %v4171_v12 = vunpack.c.l.bf16 %v4199_v2  ;;  %v724_v13 = vrot.slane %v433_v56, 2  ;;  %v440_v1 = vld [vmem:[#allocation2 + $0xc0] sm:$0xff] }
  0x39   : > { %v4172_v14 = vunpack.c.h.bf16 %v4199_v2  ;;  %v4175_v15 = vunpack.c.l.bf16 %v4200_v6  ;;  %v4176_v16 = vunpack.c.h.bf16 %v4200_v6  ;;  %v549_v25 = vrot.slane %v434_v21, 1  ;;  %v441_v2 = vld [vmem:[#allocation2 + $0xc8] sm:$0xff]  ;;  %2054 = vst.msk [vmem:[#allocation3 + $0x48] sm:$0x1] %vm2051_vm15, %v8165_v0  ;;  %2055 = vst.msk [vmem:[#allocation3 + $0x60] sm:$0x1] %vm2051_vm15, %v8165_v0 }
  0x3a   : > { %406 = vst.msk [vmem:[#allocation2 + $0x121] sm:$0xff] %vm277_vm0, %v4171_v12  ;;  %v723_v18 = vsel %vm695_vm3, %v721_v8, %v722_v11  ;;  %v552_v27 = vrot.slane %v436_v23, 1  ;;  %v4179_v28 = vunpack.c.l.bf16 %v4201_v24  ;;  %v4180_v29 = vunpack.c.h.bf16 %v4201_v24 }
  0x3b   : > { %4557 = vrot.lane.b32.xlu1 %v4556_v26, %s5769_s20  ;;  %407 = vst.msk [vmem:[#allocation2 + $0x129] sm:$0xff] %vm277_vm0, %v4172_v14  ;;  %408 = vst.msk [vmem:[#allocation2 + $0x139] sm:$0xff] %vm277_vm0, %v4175_v15  ;;  %v4686_v30 = vpack.i.bf16 %v435_v22, %v434_v21  ;;  %v726_v31 = vrot.slane %v434_v21, 2  ;;  %v727_v34 = vrot.slane %v435_v22, 2  ;;  %v729_v35 = vrot.slane %v436_v23, 2 }
  0x3c   : > { %4552 = vrot.lane.b32.xlu0 %v4536_v10, %s5769_s20  ;;  %409 = vst.msk [vmem:[#allocation2 + $0x141] sm:$0xff] %vm277_vm0, %v4176_v16  ;;  %410 = vst.msk [vmem:[#allocation2 + $0x151] sm:$0xff] %vm277_vm0, %v4179_v28  ;;  %v4183_v40 = vunpack.c.l.bf16 %v4202_v37  ;;  %v4184_v41 = vunpack.c.h.bf16 %v4202_v37  ;;  %v554_v46 = vrot.slane %v437_v42, 1  ;;  %v557_v48 = vrot.slane %v439_v44, 1  ;;  %v447_v37 = vld [vmem:[#allocation2 + $0xf8] sm:$0xff] }
  0x3d   : > { %411 = vst.msk [vmem:[#allocation2 + $0x159] sm:$0xff] %vm277_vm0, %v4180_v29  ;;  %v728_v38 = vsel %vm695_vm3, %v726_v31, %v727_v34  ;;  %v730_v39 = vsel %vm695_vm3, %v727_v34, %v729_v35  ;;  %v731_v52 = vrot.slane %v437_v42, 2  ;;  %v734_v56 = vrot.slane %v439_v44, 2 }
  0x3e   : > { %412 = vst.msk [vmem:[#allocation2 + $0x169] sm:$0xff] %vm277_vm0, %v4183_v40  ;;  %413 = vst.msk [vmem:[#allocation2 + $0x171] sm:$0xff] %vm277_vm0, %v4184_v41  ;;  %v4706_v45 = vpack.i.bf16 %v730_v39, %v728_v38  ;;  %v559_v6 = vrot.slane %v440_v1, 1  ;;  %v562_v8 = vrot.slane %v442_v3, 1  ;;  %v739_v14 = vrot.slane %v442_v3, 2 }
  0x3f   : > { %4567 = vrot.lane.b32.xlu1 %v4566_v33, %s5770_s21  ;;  %v448_v39 = vld [vmem:[#allocation2 + $0x100] sm:$0x3]  ;;  %2056 = vst.msk [vmem:[#allocation3 + $0x78] sm:$0x1] %vm2051_vm15, %v8165_v0  ;;  %2057 = vst.msk [vmem:[#allocation3 + $0x90] sm:$0x1] %vm2051_vm15, %v8165_v0 }
  0x40   : > { %4562 = vrot.lane.b32.xlu0 %v4546_v19, %s5770_s21  ;;  %v572_v44 = vrot.slane %v448_v39, 1  ;;  %2058 = vst.msk [vmem:[#allocation3 + $0xa8] sm:$0x1] %vm2051_vm15, %v8165_v0  ;;  %2059 = vst.msk [vmem:[#allocation3 + $0xc0] sm:$0x1] %vm2051_vm15, %v8165_v0 }
  0x41   : > { %2060 = vst.msk [vmem:[#allocation3 + $0xd8] sm:$0x1] %vm2051_vm15, %v8165_v0  ;;  %2061 = vst.msk [vmem:[#allocation3 + $0xf0] sm:$0x1] %vm2051_vm15, %v8165_v0 }
  0x42   : > { %2062 = vst.msk [vmem:[#allocation3 + $0x108] sm:$0x1] %vm2051_vm15, %v8165_v0  ;;  %2063 = vst.msk [vmem:[#allocation3 + $0x120] sm:$0x1] %vm2051_vm15, %v8165_v0 }
  0x43   : > { %4577 = vrot.lane.b32.xlu1 %v4576_v36, %s5771_s29  ;;  %2064 = vst.msk [vmem:[#allocation3 + $0x138] sm:$0x1] %vm2051_vm15, %v8165_v0  ;;  %2065 = vst.msk [vmem:[#allocation3 + $0x150] sm:$0x1] %vm2051_vm15, %v8165_v0 }
  0x44   : > { %4572 = vrot.lane.b32.xlu0 %v4556_v26, %s5771_s29  ;;  %2066 = vst.msk [vmem:[#allocation3 + $0x168] sm:$0x1] %vm2051_vm15, %v8165_v0  ;;  %2067 = vst.msk [vmem:[#allocation3 + $0x180] sm:$0x1] %vm2051_vm15, %v8165_v0 }
  0x45   : > { %2068 = vst.msk [vmem:[#allocation3 + $0x29] sm:$0x1] %vm2051_vm15, %v8165_v0  ;;  %2069 = vst.msk [vmem:[#allocation3 + $0x41] sm:$0x1] %vm2051_vm15, %v8165_v0 }
  0x46   : > { %2070 = vst.msk [vmem:[#allocation3 + $0x59] sm:$0x1] %vm2051_vm15, %v8165_v0  ;;  %2071 = vst.msk [vmem:[#allocation3 + $0x71] sm:$0x1] %vm2051_vm15, %v8165_v0 }
  0x47   : > { %4587 = vrot.lane.b32.xlu1 %v4566_v33, %s5765_s19  ;;  %2072 = vst.msk [vmem:[#allocation3 + $0x89] sm:$0x1] %vm2051_vm15, %v8165_v0  ;;  %2073 = vst.msk [vmem:[#allocation3 + $0xa1] sm:$0x1] %vm2051_vm15, %v8165_v0 }
  0x48   : > { %4582 = vrot.lane.b32.xlu0 %v4546_v19, %s5765_s19  ;;  %v725_v19 = vsel %vm695_vm3, %v722_v11, %v724_v13  ;;  %v737_v13 = vrot.slane %v441_v2, 2  ;;  %2074 = vst.msk [vmem:[#allocation3 + $0xb9] sm:$0x1] %vm2051_vm15, %v8165_v0  ;;  %2075 = vst.msk [vmem:[#allocation3 + $0xd1] sm:$0x1] %vm2051_vm15, %v8165_v0 }
  0x49   : > { %v4656_v20 = vpack.i.bf16 %v725_v19, %v723_v18  ;;  %v443_v18 = vld [vmem:[#allocation2 + $0xd8] sm:$0xff]  ;;  %v444_v19 = vld [vmem:[#allocation2 + $0xe0] sm:$0xff]  ;;  %2076 = vst.msk [vmem:[#allocation3 + $0xe9] sm:$0x1] %vm2051_vm15, %v8165_v0  ;;  %2077 = vst.msk [vmem:[#allocation3 + $0x101] sm:$0x1] %vm2051_vm15, %v8165_v0 }
  0x4a   : > { %v565_v23 = vrot.slane %v444_v19, 1  ;;  %v742_v31 = vrot.slane %v444_v19, 2  ;;  %2078 = vst.msk [vmem:[#allocation3 + $0x119] sm:$0x1] %vm2051_vm15, %v8165_v0  ;;  %2079 = vst.msk [vmem:[#allocation3 + $0x131] sm:$0x1] %vm2051_vm15, %v8165_v0 }
  0x4b   : > { %4597 = vrot.lane.b32.xlu1 %v4576_v36, %s5764_s18  ;;  %2080 = vst.msk [vmem:[#allocation3 + $0x149] sm:$0x1] %vm2051_vm15, %v8165_v0  ;;  %2081 = vst.msk [vmem:[#allocation3 + $0x161] sm:$0x1] %vm2051_vm15, %v8165_v0 }
  0x4c   : > { %4592 = vrot.lane.b32.xlu0 %v4556_v26, %s5764_s18  ;;  %v550_v26 = vrot.slane %v435_v22, 1  ;;  %v564_v22 = vrot.slane %v443_v18, 1  ;;  %2082 = vst.msk [vmem:[#allocation3 + $0x179] sm:$0x1] %vm2051_vm15, %v8165_v0  ;;  %2083 = vst.msk [vmem:[#allocation3 + $0x191] sm:$0x1] %vm2051_vm15, %v8165_v0 }
  0x4e   : > { %v551_v32 = vsel %vm518_vm4, %v549_v25, %v550_v26  ;;  %v566_v29 = vsel %vm518_vm4, %v564_v22, %v565_v23 }
  0x4f   : > { %4607 = vrot.lane.b32.xlu1 %v4606_v43, %s5766_s22 }
  0x50   : > { %4602 = vrot.lane.b32.xlu0 %v6004_v61, %s5766_s22  ;;  %v545_v61 = vrot.slane %v432_v55, 1 }
  0x52   : > { %v546_v9 = vsel %vm518_vm4, %v544_v60, %v545_v61  ;;  %v548_v10 = vsel %vm518_vm4, %v545_v61, %v547_v62  ;;  %v4203_v61 = vld [vmem:[%s5944_s17 + $0x78] sm:$0xff]  }
  0x53   : > { %4617 = vrot.lane.b32.xlu1 %v4616_v50, %s5768_s14  ;;  %v4646_v17 = vpack.i.bf16 %v548_v10, %v546_v9  ;;  %v4187_v62 = vunpack.c.l.bf16 %v4203_v61  ;;  %v4188_v63 = vunpack.c.h.bf16 %v4203_v61  ;;  %v4766_v9 = vpack.i.bf16 %v441_v2, %v440_v1 }
  0x54   : > { %4612 = vrot.lane.b32.xlu0 %v4566_v33, %s5768_s14  ;;  %v553_v33 = vsel %vm518_vm4, %v550_v26, %v552_v27  ;;  %v736_v10 = vrot.slane %v440_v1, 2  ;;  %v6140_v26 = vpack.i.bf16 %v444_v19, %v443_v18  ;;  %v741_v27 = vrot.slane %v443_v18, 2 }
  0x55   : > { %414 = vst.msk [vmem:[#allocation2 + $0x181] sm:$0xff] %vm277_vm0, %v4187_v62  ;;  %415 = vst.msk [vmem:[#allocation2 + $0x189] sm:$0xff] %vm277_vm0, %v4188_v63 }
  0x56   : > { %v738_v16 = vsel %vm695_vm3, %v736_v10, %v737_v13  ;;  %v743_v34 = vsel %vm695_vm3, %v741_v27, %v742_v31 }
  0x57   : > { %4627 = vrot.lane.b32.xlu1 %v4626_v59, %s5769_s20 }
  0x58   : > { %4622 = vrot.lane.b32.xlu0 %v4576_v36, %s5769_s20  ;;  %v4696_v36 = vpack.i.bf16 %v553_v33, %v551_v32 }
  0x5b   : > { %4637 = vrot.lane.b32.xlu1 %v4636_v7, %s5767_s23 }
  0x5c   : > { %4632 = vrot.lane.b32.xlu0 %v4606_v43, %s5767_s23  ;;  %v438_v43 = vld [vmem:[#allocation2 + $0xb0] sm:$0xff] }
  0x5d   : > { %v555_v47 = vrot.slane %v438_v43, 1  ;;  %v732_v55 = vrot.slane %v438_v43, 2 }
  0x5f   : > { %4647 = vrot.lane.b32.xlu1 %v4646_v17, %s5770_s21  ;;  %v556_v53 = vsel %vm518_vm4, %v554_v46, %v555_v47  ;;  %v558_v54 = vsel %vm518_vm4, %v555_v47, %v557_v48  ;;  %v733_v58 = vsel %vm695_vm3, %v731_v52, %v732_v55  ;;  %v747_v46 = vrot.slane %v447_v37, 2 }
  0x60   : > { %4642 = vrot.lane.b32.xlu0 %v4616_v50, %s5770_s21  ;;  %v4726_v57 = vpack.i.bf16 %v558_v54, %v556_v53  ;;  %v749_v47 = vrot.slane %v448_v39, 2 }
  0x63   : > { %4657 = vrot.lane.b32.xlu1 %v4656_v20, %s5771_s29 }
  0x64   : > { %4652 = vrot.lane.b32.xlu0 %v4626_v59, %s5771_s29 }
  0x67   : > { %4667 = vrot.lane.b32.xlu1 %v4646_v17, %s5765_s19 }
  0x68   : > { %4662 = vrot.lane.b32.xlu0 %v4616_v50, %s5765_s19  ;;  %v4716_v50 = vpack.i.bf16 %v438_v43, %v437_v42  ;;  %v570_v43 = vrot.slane %v447_v37, 1 }
  0x6a   : > { %v573_v53 = vsel %vm518_vm4, %v570_v43, %v572_v44 }
  0x6b   : > { %4677 = vrot.lane.b32.xlu1 %v4656_v20, %s5764_s18 }
  0x6c   : > { %4672 = vrot.lane.b32.xlu0 %v4626_v59, %s5764_s18  ;;  %v735_v59 = vsel %vm695_vm3, %v732_v55, %v734_v56  ;;  %v750_v55 = vsel %vm695_vm3, %v747_v46, %v749_v47 }
  0x6d   : > { %v4736_v60 = vpack.i.bf16 %v735_v59, %v733_v58  ;;  %v6178_v58 = vld [vmem:[#allocation2 + $0x108] sm:$0xff]  ;;  %v6180_v59 = vld [vmem:[#allocation2 + $0x110] sm:$0xff] }
  0x6e   : > { %v751_v19 = vrot.slane %v6178_v58, 2 }
  0x6f   : > { %4687 = vrot.lane.b32.xlu1 %v4686_v30, %s5766_s22 }
  0x70   : > { %4682 = vrot.lane.b32.xlu0 %v4636_v7, %s5766_s22  ;;  %v560_v7 = vrot.slane %v441_v2, 1 }
  0x72   : > { %v561_v11 = vsel %vm518_vm4, %v559_v6, %v560_v7  ;;  %v563_v12 = vsel %vm518_vm4, %v560_v7, %v562_v8  ;;  %v6188_v6 = vld [vmem:[#allocation2 + $0x118] sm:$0x3] }
  0x73   : > { %4697 = vrot.lane.b32.xlu1 %v4696_v36, %s5768_s14  ;;  %v6126_v15 = vpack.i.bf16 %v563_v12, %v561_v11  ;;  %v577_v18 = vrot.slane %v6188_v6, 1  ;;  %v754_v44 = vrot.slane %v6188_v6, 2 }
  0x74   : > { %4692 = vrot.lane.b32.xlu0 %v4646_v17, %s5768_s14  ;;  %v740_v17 = vsel %vm695_vm3, %v737_v13, %v739_v14  ;;  %v574_v13 = vrot.slane %v6178_v58, 1  ;;  %v575_v14 = vrot.slane %v6180_v59, 1 }
  0x75   : > { %v6133_v21 = vpack.i.bf16 %v740_v17, %v738_v16 }
  0x77   : > { %4707 = vrot.lane.b32.xlu1 %v4706_v45, %s5769_s20 }
  0x78   : > { %4702 = vrot.lane.b32.xlu0 %v4656_v20, %s5769_s20  ;;  %v445_v20 = vld [vmem:[#allocation2 + $0xe8] sm:$0x3] }
  0x79   : > { %v567_v24 = vrot.slane %v445_v20, 1  ;;  %v744_v32 = vrot.slane %v445_v20, 2 }
  0x7b   : > { %4717 = vrot.lane.b32.xlu1 %v4716_v50, %s5767_s23  ;;  %v745_v35 = vsel %vm695_vm3, %v742_v31, %v744_v32 }
  0x7c   : > { %4712 = vrot.lane.b32.xlu0 %v4686_v30, %s5767_s23  ;;  %v568_v30 = vsel %vm518_vm4, %v565_v23, %v567_v24  ;;  %v6160_v41 = vpack.i.bf16 %v745_v35, %v743_v34 }
  0x7d   : > { %v6149_v33 = vpack.i.bf16 %v568_v30, %v566_v29 }
  0x7f   : > { %4727 = vrot.lane.b32.xlu1 %v4726_v57, %s5770_s21 }
  0x80   : > { %4722 = vrot.lane.b32.xlu0 %v4696_v36, %s5770_s21 }
  0x83   : > { %4737 = vrot.lane.b32.xlu1 %v4736_v60, %s5771_s29 }
  0x84   : > { %4732 = vrot.lane.b32.xlu0 %v4706_v45, %s5771_s29 }
  0x87   : > { %4747 = vrot.lane.b32.xlu1 %v4726_v57, %s5765_s19 }
  0x88   : > { %4742 = vrot.lane.b32.xlu0 %v4696_v36, %s5765_s19  ;;  %v446_v36 = vld [vmem:[#allocation2 + $0xf0] sm:$0xff] }
  0x89   : > { %v569_v42 = vrot.slane %v446_v36, 1 }
  0x8b   : > { %4757 = vrot.lane.b32.xlu1 %v4736_v60, %s5764_s18  ;;  %v571_v52 = vsel %vm518_vm4, %v569_v42, %v570_v43  ;;  %v752_v43 = vrot.slane %v6180_v59, 2 }
  0x8c   : > { %4752 = vrot.lane.b32.xlu0 %v4706_v45, %s5764_s18  ;;  %v746_v45 = vrot.slane %v446_v36, 2  ;;  %v6184_v2 = vpack.i.bf16 %v573_v53, %v571_v52 }
  0x8e   : > { %v748_v54 = vsel %vm695_vm3, %v746_v45, %v747_v46 }
  0x8f   : > { %4767 = vrot.lane.b32.xlu1 %v4766_v9, %s5766_s22  ;;  %v6186_v3 = vpack.i.bf16 %v750_v55, %v748_v54 }
  0x90   : > { %4762 = vrot.lane.b32.xlu0 %v4716_v50, %s5766_s22 }
  0x92   : > { %v6138_v25 = vpop.permute.xlu1 %4507 }
  0x93   : > { %4777 = vrot.lane.b32.xlu1 %v6126_v15, %s5768_s14  ;;  %v4509_v20 = vunpack.i.l.bf16 %v6138_v25 }
  0x94   : > { %4772 = vrot.lane.b32.xlu0 %v4726_v57, %s5768_s14  ;;  %v6143_v28 = vpop.permute.xlu0 %4502  ;;  %v6176_v57 = vpack.i.bf16 %v447_v37, %v446_v36 }
  0x95   : > { %v4505_v7 = vunpack.i.h.bf16 %v6143_v28  ;;  %v4504_v8 = vunpack.i.l.bf16 %v6143_v28 }
  0x97   : > { %4787 = vrot.lane.b32.xlu1 %v6133_v21, %s5769_s20  ;;  %v1475_v23 = vsel %vm277_vm0, %v5951_v5, %v4505_v7  ;;  %v1474_v24 = vsel %vm277_vm0, %v5949_v4, %v4504_v8 }
  0x98   : > { %4782 = vrot.lane.b32.xlu0 %v4736_v60, %s5769_s20  ;;  %v1507_v37 = vsel %vm1506_vm7, %v1474_v24, %v4509_v20 }
  0x9b   : > { %4797 = vrot.lane.b32.xlu1 %v6140_v26, %s5767_s23 }
  0x9c   : > { %4792 = vrot.lane.b32.xlu0 %v4766_v9, %s5767_s23  ;;  %v6196_v9 = vpack.i.bf16 %v6180_v59, %v6178_v58 }
  0x9d   : > { %v6154_v38 = vpop.permute.xlu1 %4517 }
  0x9e   : > { %v6156_v40 = vpop.permute.xlu0 %4512  ;;  %v4519_v22 = vunpack.i.l.bf16 %v6154_v38 }
  0x9f   : > { %4807 = vrot.lane.b32.xlu1 %v6149_v33, %s5770_s21  ;;  %v4515_v27 = vunpack.i.h.bf16 %v6156_v40  ;;  %v4514_v28 = vunpack.i.l.bf16 %v6156_v40 }
  0xa0   : > { %4802 = vrot.lane.b32.xlu0 %v6126_v15, %s5770_s21 }
  0xa1   : > { %v6164_v48 = vpop.permute.xlu1 %4527  ;;  %v1540_v42 = vsel %vm1539_vm8, %v1507_v37, %v4514_v28 }
  0xa2   : > { %v6166_v50 = vpop.permute.xlu0 %4522  ;;  %v4530_v45 = vunpack.i.h.bf16 %v6164_v48  ;;  %v4529_v46 = vunpack.i.l.bf16 %v6164_v48 }
  0xa3   : > { %4817 = vrot.lane.b32.xlu1 %v6160_v41, %s5771_s29  ;;  %v4524_v6 = vunpack.i.l.bf16 %v6166_v50 }
  0xa4   : > { %4812 = vrot.lane.b32.xlu0 %v6133_v21, %s5771_s29 }
  0xa5   : > { %v4538_v56 = vpop.permute.xlu1 %4537 }
  0xa6   : > { %v4540_v60 = vunpack.i.h.bf16 %v4538_v56  ;;  %v4539_v61 = vunpack.i.l.bf16 %v4538_v56  ;;  %v4533_v62 = vpop.permute.xlu0 %4532 }
  0xa7   : > { %v4535_v63 = vunpack.i.h.bf16 %v4533_v62  ;;  %v4534_v1 = vunpack.i.l.bf16 %v4533_v62  ;;  %4827 = vrot.lane.b32.xlu1 %v6149_v33, %s5765_s19 }
  0xa8   : > { %4822 = vrot.lane.b32.xlu0 %v6126_v15, %s5765_s19 }
  0xa9   : > { %v1477_v10 = vsel %vm277_vm0, %v5995_v51, %v4535_v63  ;;  %v1476_v11 = vsel %vm277_vm0, %v5989_v49, %v4534_v1  ;;  %v4548_v12 = vpop.permute.xlu1 %4547  ;;  %v4510_v51 = vunpack.i.h.bf16 %v6138_v25  ;;  %v4520_v49 = vunpack.i.h.bf16 %v6154_v38 }
  0xaa   : > { %v1510_v16 = vsel %vm1506_vm7, %v1477_v10, %v4540_v60  ;;  %v1509_v17 = vsel %vm1506_vm7, %v1476_v11, %v4539_v61  ;;  %v4543_v15 = vpop.permute.xlu0 %4542  ;;  %v4550_v25 = vunpack.i.h.bf16 %v4548_v12  ;;  %v4549_v29 = vunpack.i.l.bf16 %v4548_v12 }
  0xab   : > { %4837 = vrot.lane.b32.xlu1 %v6160_v41, %s5764_s18  ;;  %v1542_v30 = vsel %vm1539_vm8, %v1509_v17, %v4519_v22  ;;  %v1543_v31 = vsel %vm1539_vm8, %v1510_v16, %v4520_v49  ;;  %v4545_v5 = vunpack.i.h.bf16 %v4543_v15  ;;  %v4544_v34 = vunpack.i.l.bf16 %v4543_v15 }
  0xac   : > { %4832 = vrot.lane.b32.xlu0 %v6133_v21, %s5764_s18  ;;  %v1508_v38 = vsel %vm1506_vm7, %v1475_v23, %v4510_v51  ;;  %v1575_v47 = vsel %vm1572_vm5, %v1542_v30, %v4549_v29  ;;  %v1576_v52 = vsel %vm1572_vm5, %v1543_v31, %v4550_v25  ;;  %v4525_v1 = vunpack.i.h.bf16 %v6166_v50 }
  0xad   : > { %v4558_v32 = vpop.permute.xlu1 %4557  ;;  %v1541_v40 = vsel %vm1539_vm8, %v1508_v38, %v4515_v27  ;;  %v1573_v55 = vsel %vm1572_vm5, %v1540_v42, %v4544_v34  ;;  %v576_v16 = vsel %vm518_vm4, %v574_v13, %v575_v14  ;;  %v578_v50 = vsel %vm518_vm4, %v575_v14, %v577_v18 }
  0xae   : > { %v4560_v35 = vunpack.i.h.bf16 %v4558_v32  ;;  %v4559_v4 = vunpack.i.l.bf16 %v4558_v32  ;;  %v4553_v36 = vpop.permute.xlu0 %4552  ;;  %v1574_v54 = vsel %vm1572_vm5, %v1541_v40, %v4545_v5  ;;  %v6280_v32 = vpack.i.bf16 %v578_v50, %v576_v16 }
  0xaf   : > { %v4555_v39 = vunpack.i.h.bf16 %v4553_v36  ;;  %v4554_v21 = vunpack.i.l.bf16 %v4553_v36  ;;  %4847 = vrot.lane.b32.xlu1 %v6176_v57, %s5766_s22  ;;  %v755_v5 = vsel %vm695_vm3, %v752_v43, %v754_v44  ;;  %v454_v36 = vld [vmem:[#allocation2 + $0x130] sm:$0x3]  ;;  %v6306_v44 = vld [vmem:[#allocation2 + $0x138] sm:$0xff] }
  0xb0   : > { %4842 = vrot.lane.b32.xlu0 %v6140_v26, %s5766_s22  ;;  %v1608_v56 = vsel %vm1605_vm9, %v1575_v47, %v4559_v4  ;;  %v1609_v26 = vsel %vm1605_vm9, %v1576_v52, %v4560_v35  ;;  %v452_v35 = vld [vmem:[#allocation2 + $0x120] sm:$0xff]  ;;  %v453_v4 = vld [vmem:[#allocation2 + $0x128] sm:$0xff]  ;;  %v582_v38 = vrot.slane %v454_v36, 1  ;;  %v759_v42 = vrot.slane %v454_v36, 2 }
  0xb1   : > { %v4568_v53 = vpop.permute.xlu1 %4567  ;;  %v1606_v61 = vsel %vm1605_vm9, %v1573_v55, %v4554_v21  ;;  %v1607_v62 = vsel %vm1605_vm9, %v1574_v54, %v4555_v39  ;;  %v1641_v10 = vsel %vm1638_vm10, %v1608_v56, %v4529_v46  ;;  %v1642_v11 = vsel %vm1638_vm10, %v1609_v26, %v4530_v45  ;;  %v6308_v45 = vld [vmem:[#allocation2 + $0x140] sm:$0xff]  ;;  %v6314_v52 = vld [vmem:[#allocation2 + $0x148] sm:$0x3] }
  0xb2   : > { %v4563_v60 = vpop.permute.xlu0 %4562  ;;  %v4570_v63 = vunpack.i.h.bf16 %v4568_v53  ;;  %v4569_v48 = vunpack.i.l.bf16 %v4568_v53  ;;  %v1640_v20 = vsel %vm1638_vm10, %v1607_v62, %v4525_v1  ;;  %v579_v58 = vrot.slane %v452_v35, 1 }
  0xb3   : > { %4857 = vrot.lane.b32.xlu1 %v6184_v2, %s5768_s14  ;;  %v4565_v7 = vunpack.i.h.bf16 %v4563_v60  ;;  %v4564_v8 = vunpack.i.l.bf16 %v4563_v60  ;;  %v756_v21 = vrot.slane %v452_v35, 2  ;;  %v757_v40 = vrot.slane %v453_v4, 2 }
  0xb4   : > { %4852 = vrot.lane.b32.xlu0 %v6149_v33, %s5768_s14  ;;  %v1639_v33 = vsel %vm1638_vm10, %v1606_v61, %v4524_v6  ;;  %v1674_v49 = vsel %vm1671_vm11, %v1641_v10, %v4569_v48  ;;  %v1675_v22 = vsel %vm1671_vm11, %v1642_v11, %v4570_v63  ;;  %v6318_v54 = vpack.i.bf16 %v453_v4, %v452_v35 }
  0xb5   : > { %v4578_v12 = vpop.permute.xlu1 %4577  ;;  %v1672_v14 = vsel %vm1671_vm11, %v1639_v33, %v4564_v8  ;;  %v1673_v18 = vsel %vm1671_vm11, %v1640_v20, %v4565_v7  ;;  %v758_v55 = vsel %vm695_vm3, %v756_v21, %v757_v40  ;;  %v760_v56 = vsel %vm695_vm3, %v757_v40, %v759_v42 }
  0xb6   : > { %v4580_v17 = vunpack.i.h.bf16 %v4578_v12  ;;  %v4579_v15 = vunpack.i.l.bf16 %v4578_v12  ;;  %v4573_v51 = vpop.permute.xlu0 %4572  ;;  %v584_v60 = vrot.slane %v6306_v44, 1  ;;  %v585_v61 = vrot.slane %v6308_v45, 1 }
  0xb7   : > { %v4575_v23 = vunpack.i.h.bf16 %v4573_v51  ;;  %v4574_v24 = vunpack.i.l.bf16 %v4573_v51  ;;  %4867 = vrot.lane.b32.xlu1 %v6186_v3, %s5769_s20  ;;  %v6332_v63 = vpack.i.bf16 %v6308_v45, %v6306_v44  ;;  %v587_v48 = vrot.slane %v6314_v52, 1 }
  0xb8   : > { %v1707_v59 = vsel %vm1704_vm12, %v1674_v49, %v4579_v15  ;;  %v1708_v13 = vsel %vm1704_vm12, %v1675_v22, %v4580_v17  ;;  %4862 = vrot.lane.b32.xlu0 %v6160_v41, %s5769_s20  ;;  %v753_v41 = vsel %vm695_vm3, %v751_v19, %v752_v43  ;;  %v580_v19 = vrot.slane %v453_v4, 1 }
  0xb9   : > { %v6272_v27 = vpop.permute.xlu1 %4587  ;;  %v1705_v28 = vsel %vm1704_vm12, %v1672_v14, %v4574_v24  ;;  %v1706_v25 = vsel %vm1704_vm12, %v1673_v18, %v4575_v23  ;;  %v1738_v29 = vpack.c.bf16 %v1708_v13, %v1707_v59  ;;  %v6339_v7 = vpack.i.bf16 %v760_v56, %v758_v55  ;;  %v5648_v24 = vld [vmem:[#allocation2 + $0x50] sm:$0xff]  ;;  %v5649_v13 = vld [vmem:[#allocation2 + $0x48] sm:$0xff] }
  0xba   : > { %v6276_v30 = vpop.permute.xlu0 %4582  ;;  %v1737_v31 = vpack.c.bf16 %v1706_v25, %v1705_v28  ;;  %v581_v46 = vsel %vm518_vm4, %v579_v58, %v580_v19  ;;  %v583_v47 = vsel %vm518_vm4, %v580_v19, %v582_v38  ;;  %v4590_v1 = vunpack.i.h.bf16 %v6272_v27  ;;  %v5650_v28 = vld [vmem:[#allocation2 + $0x38] sm:$0xff] }
  0xbb   : > { %4877 = vrot.lane.b32.xlu1 %v6196_v9, %s5767_s23  ;;  %v6328_v62 = vpack.i.bf16 %v583_v47, %v581_v46  ;;  %v4589_v6 = vunpack.i.l.bf16 %v6272_v27  ;;  %v761_v8 = vrot.slane %v6306_v44, 2  ;;  %v4585_v10 = vunpack.i.h.bf16 %v6276_v30 }
  0xbc   : > { %4872 = vrot.lane.b32.xlu0 %v6176_v57, %s5767_s23  ;;  %4370 = vmatprep.mubr.msk.bf16.mxu0 %vm1796_vm13, %v1737_v31  ;;  %v6296_v57 = vpack.i.bf16 %v755_v5, %v753_v41  ;;  %v4584_v11 = vunpack.i.l.bf16 %v6276_v30  ;;  %v762_v33 = vrot.slane %v6308_v45, 2  ;;  %v6357_v22 = vsel %vm518_vm4, %v585_v61, %v587_v48 }
  0xbd   : > { %4371 = vmatmul.mubr.msk.bf16.vlgmr.msra.gmra.mrb[0].mxu0 %vm1796_vm13, %v1738_v29  ;;  %v6290_v34 = vpop.permute.xlu1 %4597  ;;  %v764_v23 = vrot.slane %v6314_v52, 2  ;;  %v1481_v59 = vsel %vm277_vm0, %v5648_v24, %v4590_v1  ;;  %v1480_v14 = vsel %vm277_vm0, %v5649_v13, %v4589_v6  ;;  %v1479_v25 = vsel %vm277_vm0, %v5650_v28, %v4585_v10  ;;  %v5651_v29 = vld [vmem:[#allocation2 + $0x30] sm:$0xff] }
  0xbe   : > { %v6292_v37 = vpop.permute.xlu0 %4592  ;;  %v4600_v12 = vunpack.i.h.bf16 %v6290_v34  ;;  %v4599_v16 = vunpack.i.l.bf16 %v6290_v34  ;;  %v1478_v30 = vsel %vm277_vm0, %v5651_v29, %v4584_v11 }
  0xbf   : > { %4887 = vrot.lane.b32.xlu1 %v6280_v32, %s5770_s21  ;;  %v4595_v17 = vunpack.i.h.bf16 %v6292_v37  ;;  %v4594_v15 = vunpack.i.l.bf16 %v6292_v37 }
  0xc0   : > { %4882 = vrot.lane.b32.xlu0 %v6184_v2, %s5770_s21  ;;  %v1513_v31 = vsel %vm1506_vm7, %v1480_v14, %v4599_v16  ;;  %v1514_v41 = vsel %vm1506_vm7, %v1481_v59, %v4600_v12 }
  0xc1   : > { %v6300_v39 = vpop.permute.xlu1 %4607  ;;  %v1511_v34 = vsel %vm1506_vm7, %v1478_v30, %v4594_v15  ;;  %v1512_v35 = vsel %vm1506_vm7, %v1479_v25, %v4595_v17 }
  0xc2   : > { %v6302_v43 = vpop.permute.xlu0 %4602  ;;  %v4610_v20 = vunpack.i.h.bf16 %v6300_v39  ;;  %v4609_v49 = vunpack.i.l.bf16 %v6300_v39 }
  0xc3   : > { %4897 = vrot.lane.b32.xlu1 %v6296_v57, %s5771_s29  ;;  %v4605_v18 = vunpack.i.h.bf16 %v6302_v43  ;;  %v4604_v27 = vunpack.i.l.bf16 %v6302_v43 }
  0xc4   : > { %4892 = vrot.lane.b32.xlu0 %v6186_v3, %s5771_s29  ;;  %v1546_v37 = vsel %vm1539_vm8, %v1513_v31, %v4609_v49  ;;  %v1547_v58 = vsel %vm1539_vm8, %v1514_v41, %v4610_v20 }
  0xc5   : > { %v6316_v53 = vpop.permute.xlu1 %4617  ;;  %v1544_v39 = vsel %vm1539_vm8, %v1511_v34, %v4604_v27  ;;  %v1545_v21 = vsel %vm1539_vm8, %v1512_v35, %v4605_v18 }
  0xc6   : > { %v6322_v26 = vpop.permute.xlu0 %4612  ;;  %v4620_v4 = vunpack.i.h.bf16 %v6316_v53  ;;  %v4619_v36 = vunpack.i.l.bf16 %v6316_v53 }
  0xc7   : > { %4907 = vrot.lane.b32.xlu1 %v6280_v32, %s5765_s19  ;;  %v4615_v19 = vunpack.i.h.bf16 %v6322_v26  ;;  %v4614_v38 = vunpack.i.l.bf16 %v6322_v26 }
  0xc8   : > { %4902 = vrot.lane.b32.xlu0 %v6184_v2, %s5765_s19  ;;  %v6349_v2 = vsel %vm518_vm4, %v584_v60, %v585_v61  ;;  %v1579_v56 = vsel %vm1572_vm5, %v1546_v37, %v4619_v36  ;;  %v1580_v26 = vsel %vm1572_vm5, %v1547_v58, %v4620_v4  ;;  %v765_v58 = vsel %vm695_vm3, %v762_v33, %v764_v23 }
  0xc9   : > { %v4628_v50 = vpop.permute.xlu1 %4627  ;;  %v1577_v1 = vsel %vm1572_vm5, %v1544_v39, %v4614_v38  ;;  %v1578_v6 = vsel %vm1572_vm5, %v1545_v21, %v4615_v19  ;;  %v6420_v37 = vpack.i.bf16 %v6357_v22, %v6349_v2  ;;  %v458_v19 = vld [vmem:[#allocation2 + $0x150] sm:$0xff]  ;;  %v459_v2 = vld [vmem:[#allocation2 + $0x158] sm:$0xff]  ;;  %v460_v22 = vld [vmem:[#allocation2 + $0x160] sm:$0x3] }
  0xca   : > { %v4623_v51 = vpop.permute.xlu0 %4622  ;;  %v4630_v40 = vunpack.i.h.bf16 %v4628_v50  ;;  %v4629_v42 = vunpack.i.l.bf16 %v4628_v50  ;;  %v590_v52 = vrot.slane %v459_v2, 1  ;;  %v592_v39 = vrot.slane %v460_v22, 1 }
  0xcb   : > { %4917 = vrot.lane.b32.xlu1 %v6296_v57, %s5764_s18  ;;  %v4625_v43 = vunpack.i.h.bf16 %v4623_v51  ;;  %v4624_v46 = vunpack.i.l.bf16 %v4623_v51  ;;  %v766_v45 = vrot.slane %v458_v19, 2  ;;  %v769_v23 = vrot.slane %v460_v22, 2 }
  0xcc   : > { %4912 = vrot.lane.b32.xlu0 %v6186_v3, %s5764_s18  ;;  %v1613_v12 = vsel %vm1605_vm9, %v1580_v26, %v4630_v40  ;;  %v6446_v40 = vld [vmem:[#allocation2 + $0x168] sm:$0xff] }
  0xcd   : > { %v4638_v5 = vpop.permute.xlu1 %4637  ;;  %v1610_v17 = vsel %vm1605_vm9, %v1577_v1, %v4624_v46  ;;  %v1611_v15 = vsel %vm1605_vm9, %v1578_v6, %v4625_v43  ;;  %v594_v26 = vrot.slane %v6446_v40, 1  ;;  %v6468_v1 = vpack.i.bf16 %v459_v2, %v458_v19 }
  0xce   : > { %v4633_v3 = vpop.permute.xlu0 %4632  ;;  %v4640_v47 = vunpack.i.h.bf16 %v4638_v5  ;;  %v4639_v53 = vunpack.i.l.bf16 %v4638_v5 }
  0xcf   : > { %4927 = vrot.lane.b32.xlu1 %v6318_v54, %s5766_s22  ;;  %v4635_v60 = vunpack.i.h.bf16 %v4633_v3  ;;  %v4634_v61 = vunpack.i.l.bf16 %v4633_v3 }
  0xd0   : > { %4922 = vrot.lane.b32.xlu0 %v6196_v9, %s5766_s22  ;;  %v1612_v9 = vsel %vm1605_vm9, %v1579_v56, %v4629_v42  ;;  %v1646_v20 = vsel %vm1638_vm10, %v1613_v12, %v4640_v47  ;;  %v6448_v42 = vld [vmem:[#allocation2 + $0x170] sm:$0xff]  ;;  %v593_v47 = vsel %vm518_vm4, %v590_v52, %v592_v39 }
  0xd1   : > { %v4648_v55 = vpop.permute.xlu1 %4647  ;;  %v1645_v51 = vsel %vm1638_vm10, %v1612_v9, %v4639_v53  ;;  %v1643_v24 = vsel %vm1638_vm10, %v1610_v17, %v4634_v61  ;;  %v1644_v59 = vsel %vm1638_vm10, %v1611_v15, %v4635_v60  ;;  %v6456_v53 = vld [vmem:[#allocation2 + $0x178] sm:$0x3]  ;;  %v595_v60 = vrot.slane %v6448_v42, 1 }
  0xd2   : > { %v4643_v48 = vpop.permute.xlu0 %4642  ;;  %v4650_v10 = vunpack.i.h.bf16 %v4648_v55  ;;  %v4649_v11 = vunpack.i.l.bf16 %v4648_v55  ;;  %v597_v6 = vrot.slane %v6456_v53, 1  ;;  %v6479_v9 = vpack.i.bf16 %v6448_v42, %v6446_v40 }
  0xd3   : > { %4937 = vrot.lane.b32.xlu1 %v6328_v62, %s5768_s14  ;;  %v4645_v16 = vunpack.i.h.bf16 %v4643_v48  ;;  %v4644_v50 = vunpack.i.l.bf16 %v4643_v48 }
  0xd4   : > { %4932 = vrot.lane.b32.xlu0 %v6280_v32, %s5768_s14  ;;  %v1678_v27 = vsel %vm1671_vm11, %v1645_v51, %v4649_v11  ;;  %v1679_v32 = vsel %vm1671_vm11, %v1646_v20, %v4650_v10 }
  0xd5   : > { %v4658_v49 = vpop.permute.xlu1 %4657  ;;  %v1676_v29 = vsel %vm1671_vm11, %v1643_v24, %v4644_v50  ;;  %v1677_v30 = vsel %vm1671_vm11, %v1644_v59, %v4645_v16  ;;  %v6486_v50 = vsel %vm518_vm4, %v594_v26, %v595_v60 }
  0xd6   : > { %v4660_v13 = vunpack.i.h.bf16 %v4658_v49  ;;  %v4659_v14 = vunpack.i.l.bf16 %v4658_v49  ;;  %v4653_v18 = vpop.permute.xlu0 %4652 }
  0xd7   : > { %v4655_v28 = vunpack.i.h.bf16 %v4653_v18  ;;  %v4654_v25 = vunpack.i.l.bf16 %v4653_v18  ;;  %4947 = vrot.lane.b32.xlu1 %v6339_v7, %s5769_s20 }
  0xd8   : > { %v1711_v31 = vsel %vm1704_vm12, %v1678_v27, %v4659_v14  ;;  %v1712_v41 = vsel %vm1704_vm12, %v1679_v32, %v4660_v13  ;;  %4942 = vrot.lane.b32.xlu0 %v6296_v57, %s5769_s20  ;;  %v763_v57 = vsel %vm695_vm3, %v761_v8, %v762_v33  ;;  %v589_v8 = vrot.slane %v458_v19, 1 }
  0xd9   : > { %v1709_v5 = vsel %vm1704_vm12, %v1676_v29, %v4654_v25  ;;  %v1710_v34 = vsel %vm1704_vm12, %v1677_v30, %v4655_v28  ;;  %v6412_v35 = vpop.permute.xlu1 %4667  ;;  %v1740_v4 = vpack.c.bf16 %v1712_v41, %v1711_v31  ;;  %v6442_v44 = vpack.i.bf16 %v765_v58, %v763_v57  ;;  %v5652_v25 = vld [vmem:[#allocation2 + $0x80] sm:$0xff]  ;;  %v5653_v30 = vld [vmem:[#allocation2 + $0x78] sm:$0xff] }
  0xda   : > { %v6414_v36 = vpop.permute.xlu0 %4662  ;;  %v1739_v3 = vpack.c.bf16 %v1710_v34, %v1709_v5  ;;  %v767_v33 = vrot.slane %v459_v2, 2  ;;  %v591_v46 = vsel %vm518_vm4, %v589_v8, %v590_v52  ;;  %v4670_v12 = vunpack.i.h.bf16 %v6412_v35  ;;  %v5654_v34 = vld [vmem:[#allocation2 + $0x68] sm:$0xff] }
  0xdb   : > { %4957 = vrot.lane.b32.xlu1 %v6332_v63, %s5767_s23  ;;  %v6473_v10 = vpack.i.bf16 %v593_v47, %v591_v46  ;;  %v4669_v16 = vunpack.i.l.bf16 %v6412_v35  ;;  %v4665_v17 = vunpack.i.h.bf16 %v6414_v36  ;;  %v4664_v15 = vunpack.i.l.bf16 %v6414_v36 }
  0xdc   : > { %4952 = vrot.lane.b32.xlu0 %v6318_v54, %s5767_s23  ;;  %4374 = vmatprep.mubr.msk.bf16.mxu0 %vm1796_vm13, %v1739_v3  ;;  %v768_v55 = vsel %vm695_vm3, %v766_v45, %v767_v33  ;;  %v770_v56 = vsel %vm695_vm3, %v767_v33, %v769_v23  ;;  %v6495_v14 = vsel %vm518_vm4, %v595_v60, %v597_v6  ;;  %v772_v32 = vrot.slane %v6448_v42, 2 }
  0xdd   : > { %4375 = vmatmul.mubr.msk.bf16.gmra.mrb[4].mxu0 %vm1796_vm13, %v1740_v4  ;;  %v6436_v54 = vpop.permute.xlu1 %4677  ;;  %v6475_v11 = vpack.i.bf16 %v770_v56, %v768_v55  ;;  %v774_v28 = vrot.slane %v6456_v53, 2  ;;  %v1485_v29 = vsel %vm277_vm0, %v5652_v25, %v4670_v12  ;;  %v1484_v31 = vsel %vm277_vm0, %v5653_v30, %v4669_v16  ;;  %v5655_v4 = vld [vmem:[#allocation2 + $0x60] sm:$0xff] }
  0xde   : > { %v6438_v38 = vpop.permute.xlu0 %4672  ;;  %v4680_v51 = vunpack.i.h.bf16 %v6436_v54  ;;  %v4679_v20 = vunpack.i.l.bf16 %v6436_v54  ;;  %v1483_v35 = vsel %vm277_vm0, %v5654_v34, %v4665_v17  ;;  %v1482_v36 = vsel %vm277_vm0, %v5655_v4, %v4664_v15 }
  0xdf   : > { %4967 = vrot.lane.b32.xlu1 %v6420_v37, %s5770_s21  ;;  %v4675_v24 = vunpack.i.h.bf16 %v6438_v38  ;;  %v4674_v59 = vunpack.i.l.bf16 %v6438_v38 }
  0xe0   : > { %4962 = vrot.lane.b32.xlu0 %v6328_v62, %s5770_s21  ;;  %v1517_v3 = vsel %vm1506_vm7, %v1484_v31, %v4679_v20  ;;  %v1518_v57 = vsel %vm1506_vm7, %v1485_v29, %v4680_v51 }
  0xe1   : > { %v4688_v21 = vpop.permute.xlu1 %4687  ;;  %v1515_v19 = vsel %vm1506_vm7, %v1482_v36, %v4674_v59  ;;  %v1516_v2 = vsel %vm1506_vm7, %v1483_v35, %v4675_v24 }
  0xe2   : > { %v6450_v43 = vpop.permute.xlu0 %4682  ;;  %v4690_v18 = vunpack.i.h.bf16 %v4688_v21  ;;  %v4689_v27 = vunpack.i.l.bf16 %v4688_v21 }
  0xe3   : > { %4977 = vrot.lane.b32.xlu1 %v6442_v44, %s5771_s29  ;;  %v4685_v41 = vunpack.i.h.bf16 %v6450_v43  ;;  %v4684_v5 = vunpack.i.l.bf16 %v6450_v43 }
  0xe4   : > { %4972 = vrot.lane.b32.xlu0 %v6339_v7, %s5771_s29  ;;  %v1550_v38 = vsel %vm1539_vm8, %v1517_v3, %v4689_v27  ;;  %v1551_v8 = vsel %vm1539_vm8, %v1518_v57, %v4690_v18 }
  0xe5   : > { %v6464_v61 = vpop.permute.xlu1 %4697  ;;  %v1548_v45 = vsel %vm1539_vm8, %v1515_v19, %v4684_v5  ;;  %v1549_v33 = vsel %vm1539_vm8, %v1516_v2, %v4685_v41 }
  0xe6   : > { %v6466_v48 = vpop.permute.xlu0 %4692  ;;  %v4700_v22 = vunpack.i.h.bf16 %v6464_v61  ;;  %v4699_v54 = vunpack.i.l.bf16 %v6464_v61 }
  0xe7   : > { %4987 = vrot.lane.b32.xlu1 %v6420_v37, %s5765_s19  ;;  %v4695_v52 = vunpack.i.h.bf16 %v6466_v48  ;;  %v4694_v39 = vunpack.i.l.bf16 %v6466_v48 }
  0xe8   : > { %4982 = vrot.lane.b32.xlu0 %v6328_v62, %s5765_s19  ;;  %v771_v62 = vrot.slane %v6446_v40, 2  ;;  %v1583_v26 = vsel %vm1572_vm5, %v1550_v38, %v4699_v54  ;;  %v1584_v60 = vsel %vm1572_vm5, %v1551_v8, %v4700_v22  ;;  %v6562_v38 = vpack.i.bf16 %v6495_v14, %v6486_v50  ;;  %v466_v50 = vld [vmem:[#allocation2 + $0x190] sm:$0x3] }
  0xe9   : > { %v4708_v49 = vpop.permute.xlu1 %4707  ;;  %v1581_v12 = vsel %vm1572_vm5, %v1548_v45, %v4694_v39  ;;  %v1582_v16 = vsel %vm1572_vm5, %v1549_v33, %v4695_v52  ;;  %v775_v8 = vsel %vm695_vm3, %v772_v32, %v774_v28  ;;  %v464_v52 = vld [vmem:[#allocation2 + $0x180] sm:$0xff]  ;;  %v465_v39 = vld [vmem:[#allocation2 + $0x188] sm:$0xff] }
  0xea   : > { %v4703_v13 = vpop.permute.xlu0 %4702  ;;  %v4710_v23 = vunpack.i.h.bf16 %v4708_v49  ;;  %v4709_v21 = vunpack.i.l.bf16 %v4708_v49  ;;  %v971_v53 = vrot.slane %v464_v52, 1  ;;  %v972_v42 = vrot.slane %v465_v39, 1 }
  0xeb   : > { %4997 = vrot.lane.b32.xlu1 %v6442_v44, %s5764_s18  ;;  %v4705_v43 = vunpack.i.h.bf16 %v4703_v13  ;;  %v4704_v46 = vunpack.i.l.bf16 %v4703_v13  ;;  %v1072_v28 = vrot.slane %v464_v52, 2  ;;  %v1073_v45 = vrot.slane %v465_v39, 2 }
  0xec   : > { %4992 = vrot.lane.b32.xlu0 %v6339_v7, %s5764_s18  ;;  %v1617_v51 = vsel %vm1605_vm9, %v1584_v60, %v4710_v23 }
  0xed   : > { %v4718_v58 = vpop.permute.xlu1 %4717  ;;  %v1614_v24 = vsel %vm1605_vm9, %v1581_v12, %v4704_v46  ;;  %v1615_v59 = vsel %vm1605_vm9, %v1582_v16, %v4705_v43  ;;  %v6594_v43 = vld [vmem:[#allocation2 + $0x1a0] sm:$0xff]  ;;  %v973_v46 = vsel %vm518_vm4, %v971_v53, %v972_v42 }
  0xee   : > { %v4713_v7 = vpop.permute.xlu0 %4712  ;;  %v4720_v47 = vunpack.i.h.bf16 %v4718_v58  ;;  %v4719_v55 = vunpack.i.l.bf16 %v4718_v58 }
  0xef   : > { %5007 = vrot.lane.b32.xlu1 %v6468_v1, %s5766_s22  ;;  %v4715_v61 = vunpack.i.h.bf16 %v4713_v7  ;;  %v4714_v48 = vunpack.i.l.bf16 %v4713_v7 }
  0xf0   : > { %5002 = vrot.lane.b32.xlu0 %v6332_v63, %s5766_s22  ;;  %v1616_v63 = vsel %vm1605_vm9, %v1583_v26, %v4709_v21  ;;  %v1650_v18 = vsel %vm1638_vm10, %v1617_v51, %v4720_v47  ;;  %v6592_v21 = vld [vmem:[#allocation2 + $0x198] sm:$0xff]  ;;  %v6602_v26 = vld [vmem:[#allocation2 + $0x1a8] sm:$0x3] }
  0xf1   : > { %v4728_v56 = vpop.permute.xlu1 %4727  ;;  %v1649_v13 = vsel %vm1638_vm10, %v1616_v63, %v4719_v55  ;;  %v1647_v25 = vsel %vm1638_vm10, %v1614_v24, %v4714_v48  ;;  %v1648_v29 = vsel %vm1638_vm10, %v1615_v59, %v4715_v61  ;;  %v1074_v55 = vsel %vm695_vm3, %v1072_v28, %v1073_v45 }
  0xf2   : > { %v4723_v6 = vpop.permute.xlu0 %4722  ;;  %v4730_v17 = vunpack.i.h.bf16 %v4728_v56  ;;  %v4729_v15 = vunpack.i.l.bf16 %v4728_v56  ;;  %v6608_v61 = vpack.i.bf16 %v465_v39, %v464_v52  ;;  %v1273_v48 = vrot.slane %v6594_v43, 1 }
  0xf3   : > { %5017 = vrot.lane.b32.xlu1 %v6473_v10, %s5768_s14  ;;  %v4725_v20 = vunpack.i.h.bf16 %v4723_v6  ;;  %v4724_v49 = vunpack.i.l.bf16 %v4723_v6  ;;  %v1272_v6 = vrot.slane %v6592_v21, 1  ;;  %v5116_v51 = vpack.i.bf16 %v6594_v43, %v6592_v21 }
  0xf4   : > { %5012 = vrot.lane.b32.xlu0 %v6420_v37, %s5768_s14  ;;  %v1682_v5 = vsel %vm1671_vm11, %v1649_v13, %v4729_v15  ;;  %v1683_v37 = vsel %vm1671_vm11, %v1650_v18, %v4730_v17  ;;  %v1275_v15 = vrot.slane %v6602_v26, 1  ;;  %v1374_v24 = vrot.slane %v6594_v43, 2 }
  0xf5   : > { %v4738_v27 = vpop.permute.xlu1 %4737  ;;  %v1680_v4 = vsel %vm1671_vm11, %v1647_v25, %v4724_v49  ;;  %v1681_v36 = vsel %vm1671_vm11, %v1648_v29, %v4725_v20  ;;  %v1373_v59 = vrot.slane %v6592_v21, 2  ;;  %v6634_v29 = vsel %vm518_vm4, %v1272_v6, %v1273_v48 }
  0xf6   : > { %v4740_v30 = vunpack.i.h.bf16 %v4738_v27  ;;  %v4739_v31 = vunpack.i.l.bf16 %v4738_v27  ;;  %v4733_v41 = vpop.permute.xlu0 %4732 }
  0xf7   : > { %v4735_v34 = vunpack.i.h.bf16 %v4733_v41  ;;  %v4734_v35 = vunpack.i.l.bf16 %v4733_v41  ;;  %5027 = vrot.lane.b32.xlu1 %v6475_v11, %s5769_s20 }
  0xf8   : > { %v1715_v3 = vsel %vm1704_vm12, %v1682_v5, %v4739_v31  ;;  %v1716_v57 = vsel %vm1704_vm12, %v1683_v37, %v4740_v30  ;;  %5022 = vrot.lane.b32.xlu0 %v6442_v44, %s5769_s20  ;;  %v773_v44 = vsel %vm695_vm3, %v771_v62, %v772_v32  ;;  %v974_v32 = vrot.slane %v466_v50, 1  ;;  %v5656_v37 = vld [vmem:[#allocation2 + $0xb0] sm:$0xff] }
  0xf9   : > { %v1713_v58 = vsel %vm1704_vm12, %v1680_v4, %v4734_v35  ;;  %v1714_v19 = vsel %vm1704_vm12, %v1681_v36, %v4735_v34  ;;  %v6554_v2 = vpop.permute.xlu1 %4747  ;;  %v1742_v22 = vpack.c.bf16 %v1716_v57, %v1715_v3  ;;  %v6582_v62 = vpack.i.bf16 %v775_v8, %v773_v44  ;;  %v5657_v36 = vld [vmem:[#allocation2 + $0xa8] sm:$0xff]  ;;  %v5658_v57 = vld [vmem:[#allocation2 + $0x98] sm:$0xff] }
  0xfa   : > { %v6556_v54 = vpop.permute.xlu0 %4742  ;;  %v1741_v7 = vpack.c.bf16 %v1714_v19, %v1713_v58  ;;  %v975_v47 = vsel %vm518_vm4, %v972_v42, %v974_v32  ;;  %v4750_v63 = vunpack.i.h.bf16 %v6554_v2  ;;  %v4749_v20 = vunpack.i.l.bf16 %v6554_v2 }
  0xfb   : > { %5037 = vrot.lane.b32.xlu1 %v6479_v9, %s5767_s23  ;;  %v6614_v16 = vpack.i.bf16 %v975_v47, %v973_v46  ;;  %v4745_v49 = vunpack.i.h.bf16 %v6556_v54  ;;  %v4744_v13 = vunpack.i.l.bf16 %v6556_v54  ;;  %v1376_v5 = vrot.slane %v6602_v26, 2 }
  0xfc   : > { %5032 = vrot.lane.b32.xlu0 %v6468_v1, %s5767_s23  ;;  %4378 = vmatprep.mubr.msk.bf16.mxu0 %vm1796_vm13, %v1741_v7  ;;  %v1075_v1 = vrot.slane %v466_v50, 2  ;;  %v1489_v34 = vsel %vm277_vm0, %v5656_v37, %v4750_v63  ;;  %v1488_v3 = vsel %vm277_vm0, %v5657_v36, %v4749_v20 }
  0xfd   : > { %4379 = vmatmul.mubr.msk.bf16.gmra.mrb[8].mxu0 %vm1796_vm13, %v1742_v22  ;;  %v6578_v14 = vpop.permute.xlu1 %4757  ;;  %v1487_v58 = vsel %vm277_vm0, %v5658_v57, %v4745_v49  ;;  %v5659_v22 = vld [vmem:[#allocation2 + $0x90] sm:$0xff] }
  0xfe   : > { %v6580_v40 = vpop.permute.xlu0 %4752  ;;  %v1076_v56 = vsel %vm695_vm3, %v1073_v45, %v1075_v1  ;;  %v4760_v18 = vunpack.i.h.bf16 %v6578_v14  ;;  %v4759_v27 = vunpack.i.l.bf16 %v6578_v14  ;;  %v1486_v54 = vsel %vm277_vm0, %v5659_v22, %v4744_v13 }
  0xff   : > { %5047 = vrot.lane.b32.xlu1 %v6562_v38, %s5770_s21  ;;  %v6616_v17 = vpack.i.bf16 %v1076_v56, %v1074_v55  ;;  %v4755_v30 = vunpack.i.h.bf16 %v6580_v40  ;;  %v4754_v31 = vunpack.i.l.bf16 %v6580_v40 }
 0x100   : > { %5042 = vrot.lane.b32.xlu0 %v6473_v10, %s5770_s21  ;;  %v1521_v7 = vsel %vm1506_vm7, %v1488_v3, %v4759_v27  ;;  %v1522_v44 = vsel %vm1506_vm7, %v1489_v34, %v4760_v18 }
 0x101   : > { %v6588_v33 = vpop.permute.xlu1 %4767  ;;  %v1519_v39 = vsel %vm1506_vm7, %v1486_v54, %v4754_v31  ;;  %v1520_v50 = vsel %vm1506_vm7, %v1487_v58, %v4755_v30 }
 0x102   : > { %v6590_v23 = vpop.permute.xlu0 %4762  ;;  %v4770_v35 = vunpack.i.h.bf16 %v6588_v33  ;;  %v4769_v4 = vunpack.i.l.bf16 %v6588_v33 }
 0x103   : > { %5057 = vrot.lane.b32.xlu1 %v6582_v62, %s5771_s29  ;;  %v4765_v19 = vunpack.i.h.bf16 %v6590_v23  ;;  %v4764_v2 = vunpack.i.l.bf16 %v6590_v23 }
 0x104   : > { %5052 = vrot.lane.b32.xlu0 %v6475_v11, %s5771_s29  ;;  %v1554_v53 = vsel %vm1539_vm8, %v1521_v7, %v4769_v4  ;;  %v1555_v42 = vsel %vm1539_vm8, %v1522_v44, %v4770_v35 }
 0x105   : > { %v6606_v60 = vpop.permute.xlu1 %4777  ;;  %v1552_v45 = vsel %vm1539_vm8, %v1519_v39, %v4764_v2  ;;  %v1553_v1 = vsel %vm1539_vm8, %v1520_v50, %v4765_v19 }
 0x106   : > { %v6612_v12 = vpop.permute.xlu0 %4772  ;;  %v4779_v8 = vunpack.i.l.bf16 %v6606_v60 }
 0x107   : > { %5067 = vrot.lane.b32.xlu1 %v6562_v38, %s5765_s19  ;;  %v4774_v14 = vunpack.i.l.bf16 %v6612_v12  ;;  %v4775_v32 = vunpack.i.h.bf16 %v6612_v12 }
 0x108   : > { %5062 = vrot.lane.b32.xlu0 %v6473_v10, %s5765_s19  ;;  %v6639_v10 = vsel %vm518_vm4, %v1273_v48, %v1275_v15  ;;  %v1587_v46 = vsel %vm1572_vm5, %v1554_v53, %v4779_v8  ;;  %v2116_v8 = vld [vmem:[#allocation3] sm:$0xff] }
 0x109   : > { %v4788_v25 = vpop.permute.xlu1 %4787  ;;  %v1585_v6 = vsel %vm1572_vm5, %v1552_v45, %v4774_v14  ;;  %v1586_v20 = vsel %vm1572_vm5, %v1553_v1, %v4775_v32  ;;  %v5126_v32 = vpack.i.bf16 %v6639_v10, %v6634_v29  ;;  %v1375_v45 = vsel %vm695_vm3, %v1373_v59, %v1374_v24 }
 0x10a   : > { %v4783_v41 = vpop.permute.xlu0 %4782  ;;  %v4789_v28 = vunpack.i.l.bf16 %v4788_v25  ;;  %v4790_v33 = vunpack.i.h.bf16 %v4788_v25  ;;  %v2394_v26 = vrot.slane %v2116_v8, 2 }
 0x10b   : > { %5077 = vrot.lane.b32.xlu1 %v6582_v62, %s5764_s18  ;;  %v4784_v23 = vunpack.i.l.bf16 %v4783_v41  ;;  %v4785_v47 = vunpack.i.h.bf16 %v4783_v41 }
 0x10c   : > { %5072 = vrot.lane.b32.xlu0 %v6475_v11, %s5764_s18  ;;  %v4780_v11 = vunpack.i.h.bf16 %v6606_v60  ;;  %v1620_v49 = vsel %vm1605_vm9, %v1587_v46, %v4789_v28  ;;  %s269_s18 = sand.u32 1, %s5753_s25  }
 0x10d   : > { %v4798_v52 = vpop.permute.xlu1 %4797  ;;  %v1618_v27 = vsel %vm1605_vm9, %v1585_v6, %v4784_v23  ;;  %v1619_v31 = vsel %vm1605_vm9, %v1586_v20, %v4785_v47 }
 0x10e   : > { %v4793_v40 = vpop.permute.xlu0 %4792  ;;  %v4800_v55 = vunpack.i.h.bf16 %v4798_v52  ;;  %v4799_v56 = vunpack.i.l.bf16 %v4798_v52  ;;  %v1588_v48 = vsel %vm1572_vm5, %v1555_v42, %v4780_v11  ;;  %v2117_v52 = vld [vmem:[#allocation3 + $0x8] sm:$0xff] }
 0x10f   : > { %5087 = vrot.lane.b32.xlu1 %v6608_v61, %s5766_s22  ;;  %v4795_v12 = vunpack.i.h.bf16 %v4793_v40  ;;  %v4794_v15 = vunpack.i.l.bf16 %v4793_v40  ;;  %v2118_v40 = vld [vmem:[#allocation3 + $0x10] sm:$0x3]  ;;  %v2219_v28 = vrot.slane %v2117_v52, 1  ;;  %v2395_v59 = vrot.slane %v2117_v52, 2 }
 0x110   : > { %5082 = vrot.lane.b32.xlu0 %v6479_v9, %s5766_s22  ;;  %v1621_v9 = vsel %vm1605_vm9, %v1588_v48, %v4790_v33  ;;  %v1653_v41 = vsel %vm1638_vm10, %v1620_v49, %v4799_v56  ;;  %v2221_v29 = vrot.slane %v2118_v40, 1  ;;  %v2397_v43 = vrot.slane %v2118_v40, 2 }
 0x111   : > { %v4808_v60 = vpop.permute.xlu1 %4807  ;;  %v1654_v37 = vsel %vm1638_vm10, %v1621_v9, %v4800_v55  ;;  %v1651_v35 = vsel %vm1638_vm10, %v1618_v27, %v4794_v15  ;;  %v1652_v4 = vsel %vm1638_vm10, %v1619_v31, %v4795_v12  ;;  %v2396_v46 = vsel %vm695_vm3, %v2394_v26, %v2395_v59  ;;  %v5660_v27 = vld [vmem:[#allocation2 + $0xe0] sm:$0xff] }
 0x112   : > { %v4803_v63 = vpop.permute.xlu0 %4802  ;;  %v4810_v13 = vunpack.i.h.bf16 %v4808_v60  ;;  %v4809_v18 = vunpack.i.l.bf16 %v4808_v60  ;;  %v2222_v21 = vsel %vm518_vm4, %v2219_v28, %v2221_v29  ;;  %v2398_v47 = vsel %vm695_vm3, %v2395_v59, %v2397_v43 }
 0x113   : > { %5097 = vrot.lane.b32.xlu1 %v6614_v16, %s5768_s14  ;;  %v4805_v25 = vunpack.i.h.bf16 %v4803_v63  ;;  %v4804_v30 = vunpack.i.l.bf16 %v4803_v63 }
 0x114   : > { %5092 = vrot.lane.b32.xlu0 %v6562_v38, %s5768_s14  ;;  %v1686_v38 = vsel %vm1671_vm11, %v1653_v41, %v4809_v18  ;;  %v1687_v58 = vsel %vm1671_vm11, %v1654_v37, %v4810_v13 }
 0x115   : > { %v4818_v34 = vpop.permute.xlu1 %4817  ;;  %v1684_v22 = vsel %vm1671_vm11, %v1651_v35, %v4804_v30  ;;  %v1685_v54 = vsel %vm1671_vm11, %v1652_v4, %v4805_v25  ;;  %v5661_v30 = vld [vmem:[#allocation2 + $0xd8] sm:$0xff]  ;;  %v5663_v4 = vld [vmem:[#allocation2 + $0xc0] sm:$0xff] }
 0x116   : > { %v4820_v36 = vunpack.i.h.bf16 %v4818_v34  ;;  %v4819_v3 = vunpack.i.l.bf16 %v4818_v34  ;;  %v4813_v57 = vpop.permute.xlu0 %4812  ;;  %v5662_v34 = vld [vmem:[#allocation2 + $0xc8] sm:$0xff] }
 0x117   : > { %v4815_v19 = vunpack.i.h.bf16 %v4813_v57  ;;  %v4814_v2 = vunpack.i.l.bf16 %v4813_v57  ;;  %5107 = vrot.lane.b32.xlu1 %v6616_v17, %s5769_s20 }
 0x118   : > { %v1719_v7 = vsel %vm1704_vm12, %v1686_v38, %v4819_v3  ;;  %v1720_v44 = vsel %vm1704_vm12, %v1687_v58, %v4820_v36  ;;  %5102 = vrot.lane.b32.xlu0 %v6582_v62, %s5769_s20  ;;  %v2218_v62 = vrot.slane %v2116_v8, 1  ;;  %s3986_s20 = scalar_lea.sflag [#allocation5], %s269_s18 }
 0x119   : > { %v1717_v39 = vsel %vm1704_vm12, %v1684_v22, %v4814_v2  ;;  %v1718_v50 = vsel %vm1704_vm12, %v1685_v54, %v4815_v19  ;;  %v4828_v11 = vpop.permute.xlu1 %4827  ;;  %v1744_v14 = vpack.c.bf16 %v1720_v44, %v1719_v7 }
 0x11a   : > { %v4823_v53 = vpop.permute.xlu0 %4822  ;;  %v1743_v42 = vpack.c.bf16 %v1718_v50, %v1717_v39  ;;  %v2220_v33 = vsel %vm518_vm4, %v2218_v62, %v2219_v28  ;;  %v4830_v60 = vunpack.i.h.bf16 %v4828_v11  ;;  %v4829_v48 = vunpack.i.l.bf16 %v4828_v11 }
 0x11b   : > { %5117 = vrot.lane.b32.xlu1 %v5116_v51, %s5767_s23  ;;  %v1377_v51 = vsel %vm695_vm3, %v1374_v24, %v1376_v5  ;;  %v5141_v5 = vpack.i.bf16 %v2222_v21, %v2220_v33  ;;  %v4825_v6 = vunpack.i.h.bf16 %v4823_v53  ;;  %v4824_v12 = vunpack.i.l.bf16 %v4823_v53 }
 0x11c   : > { %5112 = vrot.lane.b32.xlu0 %v6608_v61, %s5767_s23  ;;  %4382 = vmatprep.mubr.msk.bf16.mxu0 %vm1796_vm13, %v1743_v42  ;;  %v5136_v61 = vpack.i.bf16 %v1377_v51, %v1375_v45  ;;  %v1493_v25 = vsel %vm277_vm0, %v5660_v27, %v4830_v60  ;;  %v1492_v31 = vsel %vm277_vm0, %v5661_v30, %v4829_v48  ;;  %v5627_v27 = vld [vmem:[%s8160_s3 + $0x88] sm:$0xff]   ;;  %s4121_s23 = sshll.u32 %s5836_s28, 4 }
 0x11d   : > { %4383 = vmatmul.mubr.msk.bf16.gmra.mrb[12].mxu0 %vm1796_vm13, %v1744_v14  ;;  %v4838_v10 = vpop.permute.xlu1 %4837  ;;  %v1491_v35 = vsel %vm277_vm0, %v5662_v34, %v4825_v6  ;;  %v1490_v36 = vsel %vm277_vm0, %v5663_v4, %v4824_v12  ;;  %s8115_s16 = scalar_lea.hbm %s8164_s7, %s4121_s23 }
 0x11e   : > { %v4833_v1 = vpop.permute.xlu0 %4832  ;;  %v4840_v15 = vunpack.i.h.bf16 %v4838_v10  ;;  %v4839_v63 = vunpack.i.l.bf16 %v4838_v10 }
 0x11f   : > { %5127 = vrot.lane.b32.xlu1 %v5126_v32, %s5770_s21  ;;  %v4835_v49 = vunpack.i.h.bf16 %v4833_v1  ;;  %v4834_v13 = vunpack.i.l.bf16 %v4833_v1 }
 0x120   : > { %5122 = vrot.lane.b32.xlu0 %v6614_v16, %s5770_s21  ;;  %v5146_v16 = vpack.i.bf16 %v2398_v47, %v2396_v46  ;;  %v1525_v3 = vsel %vm1506_vm7, %v1492_v31, %v4839_v63  ;;  %v1526_v57 = vsel %vm1506_vm7, %v1493_v25, %v4840_v15  ;;  %s5774_s21 = smov [#allocation4]  }
 0x121   : > { %v4848_v23 = vpop.permute.xlu1 %4847  ;;  %v1523_v58 = vsel %vm1506_vm7, %v1490_v36, %v4834_v13  ;;  %v1524_v19 = vsel %vm1506_vm7, %v1491_v35, %v4835_v49  ;;  %s5703_s8 = sshll.u32 %s5774_s21, 4  ;;  %s5704_s8 = int_to_ptr.vmem [resolvable:$false] %s5703_s8 }
 0x122   : > { %v4843_v24 = vpop.permute.xlu0 %4842  ;;  %v4849_v9 = vunpack.i.l.bf16 %v4848_v23  ;;  %s5705_s9 = scalar_lea.vmem %s5704_s8, 32 }
 0x123   : > { %5137 = vrot.lane.b32.xlu1 %v5136_v61, %s5771_s29  ;;  %v4845_v41 = vunpack.i.h.bf16 %v4843_v24  ;;  %v4844_v37 = vunpack.i.l.bf16 %v4843_v24 }
 0x124   : > { %5132 = vrot.lane.b32.xlu0 %v6616_v17, %s5771_s29  ;;  %v4850_v17 = vunpack.i.h.bf16 %v4848_v23  ;;  %v1558_v7 = vsel %vm1539_vm8, %v1525_v3, %v4849_v9  ;;  %v5626_v9 = vld [vmem:[%s8160_s3 + $0x80] sm:$0xff]  }
 0x125   : > { %v4858_v55 = vpop.permute.xlu1 %4857  ;;  %v1556_v39 = vsel %vm1539_vm8, %v1523_v58, %v4844_v37  ;;  %v1557_v50 = vsel %vm1539_vm8, %v1524_v19, %v4845_v41  ;;  %4402 = vmatprep.subr.bf16.mxu0 %v5626_v9 }
 0x126   : > { %v4853_v56 = vpop.permute.xlu0 %4852  ;;  %v4860_v2 = vunpack.i.h.bf16 %v4858_v55  ;;  %v4859_v22 = vunpack.i.l.bf16 %v4858_v55  ;;  %v1559_v44 = vsel %vm1539_vm8, %v1526_v57, %v4850_v17  ;;  %4403 = vmatpush3.bf16.msra.mxu0 %v5626_v9 }
 0x127   : > { %5142 = vrot.lane.b32.xlu1 %v5141_v5, %s5768_s14  ;;  %v4855_v8 = vunpack.i.h.bf16 %v4853_v56  ;;  %v4854_v52 = vunpack.i.l.bf16 %v4853_v56  ;;  %4404 = vmatprep.subr.bf16.mxu0 %v5627_v27 }
 0x128   : > { %v1591_v28 = vsel %vm1572_vm5, %v1558_v7, %v4859_v22  ;;  %v1592_v45 = vsel %vm1572_vm5, %v1559_v44, %v4860_v2 }
 0x129   : > { %v4868_v20 = vpop.permute.xlu1 %4867  ;;  %v1589_v1 = vsel %vm1572_vm5, %v1556_v39, %v4854_v52  ;;  %v1590_v61 = vsel %vm1572_vm5, %v1557_v50, %v4855_v8 }
 0x12a   : > { %v4863_v18 = vpop.permute.xlu0 %4862  ;;  %v4870_v11 = vunpack.i.h.bf16 %v4868_v20  ;;  %v4869_v14 = vunpack.i.l.bf16 %v4868_v20  ;;  %4405 = vmatpush3.bf16.msra.mxu0 %v5627_v27 }
 0x12b   : > { %5147 = vrot.lane.b32.xlu1 %v5146_v16, %s5771_s29  ;;  %v4865_v40 = vunpack.i.h.bf16 %v4863_v18  ;;  %v4864_v53 = vunpack.i.l.bf16 %v4863_v18  ;;  %4438 = vmatprep.subr.bf16.mxu0 %v8165_v0 }
 0x12c   : > { %v1624_v26 = vsel %vm1605_vm9, %v1591_v28, %v4869_v14  ;;  %v1625_v59 = vsel %vm1605_vm9, %v1592_v45, %v4870_v11  ;;  %v5664_v14 = vld [vmem:[#allocation2 + $0x110] sm:$0xff]  ;;  %v5666_v28 = vld [vmem:[#allocation2 + $0xf8] sm:$0xff] }
 0x12d   : > { %v4878_v38 = vpop.permute.xlu1 %4877  ;;  %v1622_v24 = vsel %vm1605_vm9, %v1589_v1, %v4864_v53  ;;  %v1623_v5 = vsel %vm1605_vm9, %v1590_v61, %v4865_v40  ;;  %v5665_v53 = vld [vmem:[#allocation2 + $0x108] sm:$0xff] }
 0x12e   : > { %v4873_v54 = vpop.permute.xlu0 %4872  ;;  %v4880_v42 = vunpack.i.h.bf16 %v4878_v38  ;;  %v4879_v32 = vunpack.i.l.bf16 %v4878_v38 }
 0x12f   : > { %v4875_v51 = vunpack.i.h.bf16 %v4873_v54  ;;  %v4874_v29 = vunpack.i.l.bf16 %v4873_v54 }
 0x130   : > { %v1657_v46 = vsel %vm1638_vm10, %v1624_v26, %v4879_v32  ;;  %v1658_v47 = vsel %vm1638_vm10, %v1625_v59, %v4880_v42 }
 0x131   : > { %v4888_v62 = vpop.permute.xlu1 %4887  ;;  %v1655_v56 = vsel %vm1638_vm10, %v1622_v24, %v4874_v29  ;;  %v1656_v16 = vsel %vm1638_vm10, %v1623_v5, %v4875_v51  ;;  %v5667_v51 = vld [vmem:[#allocation2 + $0xf0] sm:$0xff] }
 0x132   : > { %v4883_v10 = vpop.permute.xlu0 %4882  ;;  %v4890_v33 = vunpack.i.h.bf16 %v4888_v62  ;;  %v4889_v21 = vunpack.i.l.bf16 %v4888_v62 }
 0x133   : > { %v4885_v43 = vunpack.i.h.bf16 %v4883_v10  ;;  %v4884_v23 = vunpack.i.l.bf16 %v4883_v10 }
 0x134   : > { %v1690_v12 = vsel %vm1671_vm11, %v1657_v46, %v4889_v21  ;;  %v1691_v15 = vsel %vm1671_vm11, %v1658_v47, %v4890_v33 }
 0x135   : > { %v4898_v55 = vpop.permute.xlu1 %4897  ;;  %v1688_v49 = vsel %vm1671_vm11, %v1655_v56, %v4884_v23  ;;  %v1689_v13 = vsel %vm1671_vm11, %v1656_v16, %v4885_v43 }
 0x136   : > { %v4900_v60 = vunpack.i.h.bf16 %v4898_v55  ;;  %v4899_v48 = vunpack.i.l.bf16 %v4898_v55  ;;  %v4893_v6 = vpop.permute.xlu0 %4892 }
 0x137   : > { %v4895_v63 = vunpack.i.h.bf16 %v4893_v6  ;;  %v4894_v20 = vunpack.i.l.bf16 %v4893_v6 }
 0x138   : > { %v1723_v18 = vsel %vm1704_vm12, %v1690_v12, %v4899_v48  ;;  %v1724_v17 = vsel %vm1704_vm12, %v1691_v15, %v4900_v60 }
 0x139   : > { %v1721_v25 = vsel %vm1704_vm12, %v1688_v49, %v4894_v20  ;;  %v1722_v30 = vsel %vm1704_vm12, %v1689_v13, %v4895_v63  ;;  %v4908_v31 = vpop.permute.xlu1 %4907  ;;  %v1746_v41 = vpack.c.bf16 %v1724_v17, %v1723_v18 }
 0x13a   : > { %v4903_v37 = vpop.permute.xlu0 %4902  ;;  %v1745_v34 = vpack.c.bf16 %v1722_v30, %v1721_v25  ;;  %v4910_v58 = vunpack.i.h.bf16 %v4908_v31  ;;  %v4909_v19 = vunpack.i.l.bf16 %v4908_v31 }
 0x13b   : > { %v4905_v2 = vunpack.i.h.bf16 %v4903_v37  ;;  %v4904_v22 = vunpack.i.l.bf16 %v4903_v37 }
 0x13c   : > { %4386 = vmatprep.mubr.msk.bf16.mxu0 %vm1796_vm13, %v1745_v34  ;;  %v1497_v40 = vsel %vm277_vm0, %v5664_v14, %v4910_v58  ;;  %v1496_v42 = vsel %vm277_vm0, %v5665_v53, %v4909_v19 }
 0x13d   : > { %4387 = vmatmul.mubr.msk.bf16.gmra.mrb[16].mxu0 %vm1796_vm13, %v1746_v41  ;;  %v4918_v35 = vpop.permute.xlu1 %4917  ;;  %v1495_v45 = vsel %vm277_vm0, %v5666_v28, %v4905_v2  ;;  %v1494_v29 = vsel %vm277_vm0, %v5667_v51, %v4904_v22 }
 0x13e   : > { %v4913_v4 = vpop.permute.xlu0 %4912  ;;  %v4920_v54 = vunpack.i.h.bf16 %v4918_v35  ;;  %v4919_v7 = vunpack.i.l.bf16 %v4918_v35 }
 0x13f   : > { %v4915_v8 = vunpack.i.h.bf16 %v4913_v4  ;;  %v4914_v52 = vunpack.i.l.bf16 %v4913_v4 }
 0x140   : > { %v1529_v10 = vsel %vm1506_vm7, %v1496_v42, %v4919_v7  ;;  %v1530_v1 = vsel %vm1506_vm7, %v1497_v40, %v4920_v54 }
 0x141   : > { %v4928_v36 = vpop.permute.xlu1 %4927  ;;  %v1527_v33 = vsel %vm1506_vm7, %v1494_v29, %v4914_v52  ;;  %v1528_v21 = vsel %vm1506_vm7, %v1495_v45, %v4915_v8 }
 0x142   : > { %v4923_v3 = vpop.permute.xlu0 %4922  ;;  %v4930_v50 = vunpack.i.h.bf16 %v4928_v36  ;;  %v4929_v11 = vunpack.i.l.bf16 %v4928_v36 }
 0x143   : > { %v4925_v32 = vunpack.i.h.bf16 %v4923_v3  ;;  %v4924_v62 = vunpack.i.l.bf16 %v4923_v3 }
 0x144   : > { %v1562_v23 = vsel %vm1539_vm8, %v1529_v10, %v4929_v11  ;;  %v1563_v24 = vsel %vm1539_vm8, %v1530_v1, %v4930_v50 }
 0x145   : > { %v4938_v57 = vpop.permute.xlu1 %4937  ;;  %v1560_v47 = vsel %vm1539_vm8, %v1527_v33, %v4924_v62  ;;  %v1561_v55 = vsel %vm1539_vm8, %v1528_v21, %v4925_v32 }
 0x146   : > { %v4933_v38 = vpop.permute.xlu0 %4932  ;;  %v4940_v26 = vunpack.i.h.bf16 %v4938_v57  ;;  %v4939_v59 = vunpack.i.l.bf16 %v4938_v57 }
 0x147   : > { %v4935_v5 = vunpack.i.h.bf16 %v4933_v38  ;;  %v4934_v46 = vunpack.i.l.bf16 %v4933_v38 }
 0x148   : > { %v1595_v63 = vsel %vm1572_vm5, %v1562_v23, %v4939_v59  ;;  %v1596_v20 = vsel %vm1572_vm5, %v1563_v24, %v4940_v26 }
 0x149   : > { %v4948_v44 = vpop.permute.xlu1 %4947  ;;  %v1593_v17 = vsel %vm1572_vm5, %v1560_v47, %v4934_v46  ;;  %v1594_v9 = vsel %vm1572_vm5, %v1561_v55, %v4935_v5  ;;  %v5668_v55 = vld [vmem:[#allocation2 + $0x140] sm:$0xff] }
 0x14a   : > { %v4943_v39 = vpop.permute.xlu0 %4942  ;;  %v4950_v56 = vunpack.i.h.bf16 %v4948_v44  ;;  %v4949_v16 = vunpack.i.l.bf16 %v4948_v44 }
 0x14b   : > { %v4945_v60 = vunpack.i.h.bf16 %v4943_v39  ;;  %v4944_v48 = vunpack.i.l.bf16 %v4943_v39 }
 0x14c   : > { %v1628_v30 = vsel %vm1605_vm9, %v1595_v63, %v4949_v16  ;;  %v1629_v31 = vsel %vm1605_vm9, %v1596_v20, %v4950_v56  ;;  %v5669_v16 = vld [vmem:[#allocation2 + $0x138] sm:$0xff]  ;;  %v5671_v63 = vld [vmem:[#allocation2 + $0x120] sm:$0xff] }
 0x14d   : > { %v4958_v61 = vpop.permute.xlu1 %4957  ;;  %v1626_v34 = vsel %vm1605_vm9, %v1593_v17, %v4944_v48  ;;  %v1627_v35 = vsel %vm1605_vm9, %v1594_v9, %v4945_v60 }
 0x14e   : > { %v4953_v43 = vpop.permute.xlu0 %4952  ;;  %v4960_v6 = vunpack.i.h.bf16 %v4958_v61  ;;  %v4959_v12 = vunpack.i.l.bf16 %v4958_v61 }
 0x14f   : > { %v4955_v49 = vunpack.i.h.bf16 %v4953_v43  ;;  %v4954_v13 = vunpack.i.l.bf16 %v4953_v43 }
 0x150   : > { %v1661_v4 = vsel %vm1638_vm10, %v1628_v30, %v4959_v12  ;;  %v1662_v36 = vsel %vm1638_vm10, %v1629_v31, %v4960_v6  ;;  %v5670_v12 = vld [vmem:[#allocation2 + $0x128] sm:$0xff] }
 0x151   : > { %v4968_v15 = vpop.permute.xlu1 %4967  ;;  %v1659_v57 = vsel %vm1638_vm10, %v1626_v34, %v4954_v13  ;;  %v1660_v38 = vsel %vm1638_vm10, %v1627_v35, %v4955_v49 }
 0x152   : > { %v4963_v18 = vpop.permute.xlu0 %4962  ;;  %v4970_v27 = vunpack.i.h.bf16 %v4968_v15  ;;  %v4969_v25 = vunpack.i.l.bf16 %v4968_v15 }
 0x153   : > { %v4965_v41 = vunpack.i.h.bf16 %v4963_v18  ;;  %v4964_v37 = vunpack.i.l.bf16 %v4963_v18 }
 0x154   : > { %v1694_v22 = vsel %vm1671_vm11, %v1661_v4, %v4969_v25  ;;  %v1695_v54 = vsel %vm1671_vm11, %v1662_v36, %v4970_v27 }
 0x155   : > { %v4978_v3 = vpop.permute.xlu1 %4977  ;;  %v1692_v8 = vsel %vm1671_vm11, %v1659_v57, %v4964_v37  ;;  %v1693_v52 = vsel %vm1671_vm11, %v1660_v38, %v4965_v41 }
 0x156   : > { %v4980_v58 = vunpack.i.h.bf16 %v4978_v3  ;;  %v4979_v19 = vunpack.i.l.bf16 %v4978_v3  ;;  %v4973_v2 = vpop.permute.xlu0 %4972 }
 0x157   : > { %v4975_v7 = vunpack.i.h.bf16 %v4973_v2  ;;  %v4974_v44 = vunpack.i.l.bf16 %v4973_v2 }
 0x158   : > { %v1727_v39 = vsel %vm1704_vm12, %v1694_v22, %v4979_v19  ;;  %v1728_v50 = vsel %vm1704_vm12, %v1695_v54, %v4980_v58 }
 0x159   : > { %v1725_v11 = vsel %vm1704_vm12, %v1692_v8, %v4974_v44  ;;  %v1726_v14 = vsel %vm1704_vm12, %v1693_v52, %v4975_v7  ;;  %v4988_v40 = vpop.permute.xlu1 %4987  ;;  %v1748_v53 = vpack.c.bf16 %v1728_v50, %v1727_v39 }
 0x15a   : > { %v4983_v42 = vpop.permute.xlu0 %4982  ;;  %v1747_v32 = vpack.c.bf16 %v1726_v14, %v1725_v11  ;;  %v4990_v1 = vunpack.i.h.bf16 %v4988_v40  ;;  %v4989_v61 = vunpack.i.l.bf16 %v4988_v40 }
 0x15b   : > { %v4985_v33 = vunpack.i.h.bf16 %v4983_v42  ;;  %v4984_v21 = vunpack.i.l.bf16 %v4983_v42 }
 0x15c   : > { %4390 = vmatprep.mubr.msk.bf16.mxu0 %vm1796_vm13, %v1747_v32  ;;  %v1501_v56 = vsel %vm277_vm0, %v5668_v55, %v4990_v1  ;;  %v1500_v60 = vsel %vm277_vm0, %v5669_v16, %v4989_v61 }
 0x15d   : > { %4391 = vmatmul.mubr.msk.bf16.gmra.mrb[20].mxu0 %vm1796_vm13, %v1748_v53  ;;  %v4998_v62 = vpop.permute.xlu1 %4997  ;;  %v1499_v15 = vsel %vm277_vm0, %v5670_v12, %v4985_v33  ;;  %v1498_v20 = vsel %vm277_vm0, %v5671_v63, %v4984_v21 }
 0x15e   : > { %v4993_v28 = vpop.permute.xlu0 %4992  ;;  %v5000_v26 = vunpack.i.h.bf16 %v4998_v62  ;;  %v4999_v59 = vunpack.i.l.bf16 %v4998_v62 }
 0x15f   : > { %v4995_v23 = vunpack.i.h.bf16 %v4993_v28  ;;  %v4994_v24 = vunpack.i.l.bf16 %v4993_v28 }
 0x160   : > { %v1533_v49 = vsel %vm1506_vm7, %v1500_v60, %v4999_v59  ;;  %v1534_v13 = vsel %vm1506_vm7, %v1501_v56, %v5000_v26 }
 0x161   : > { %v5008_v45 = vpop.permute.xlu1 %5007  ;;  %v1531_v17 = vsel %vm1506_vm7, %v1498_v20, %v4994_v24  ;;  %v1532_v9 = vsel %vm1506_vm7, %v1499_v15, %v4995_v23 }
 0x162   : > { %v5003_v51 = vpop.permute.xlu0 %5002  ;;  %v5010_v46 = vunpack.i.h.bf16 %v5008_v45  ;;  %v5009_v47 = vunpack.i.l.bf16 %v5008_v45 }
 0x163   : > { %v5005_v48 = vunpack.i.h.bf16 %v5003_v51  ;;  %v5004_v6 = vunpack.i.l.bf16 %v5003_v51 }
 0x164   : > { %v1566_v31 = vsel %vm1539_vm8, %v1533_v49, %v5009_v47  ;;  %v1567_v41 = vsel %vm1539_vm8, %v1534_v13, %v5010_v46 }
 0x165   : > { %v5018_v29 = vpop.permute.xlu1 %5017  ;;  %v1564_v35 = vsel %vm1539_vm8, %v1531_v17, %v5004_v6  ;;  %v1565_v4 = vsel %vm1539_vm8, %v1532_v9, %v5005_v48 }
 0x166   : > { %v5013_v10 = vpop.permute.xlu0 %5012  ;;  %v5020_v27 = vunpack.i.h.bf16 %v5018_v29  ;;  %v5019_v25 = vunpack.i.l.bf16 %v5018_v29 }
 0x167   : > { %v5015_v37 = vunpack.i.h.bf16 %v5013_v10  ;;  %v5014_v34 = vunpack.i.l.bf16 %v5013_v10 }
 0x168   : > { %v1599_v22 = vsel %vm1572_vm5, %v1566_v31, %v5019_v25  ;;  %v1600_v54 = vsel %vm1572_vm5, %v1567_v41, %v5020_v27  ;;  %v5628_v27 = vld [vmem:[%s8160_s3 + $0x40] sm:$0xff]   ;;  %v5673_v41 = vld [vmem:[#allocation2 + $0x168] sm:$0xff] }
 0x169   : > { %v5028_v43 = vpop.permute.xlu1 %5027  ;;  %v1597_v52 = vsel %vm1572_vm5, %v1564_v35, %v5014_v34  ;;  %v1598_v39 = vsel %vm1572_vm5, %v1565_v4, %v5015_v37  ;;  %v5629_v25 = vld [vmem:[%s8160_s3] sm:$0xff]   ;;  %4225 = vmatprep.subr.bf16.mxu1 %v5628_v27 }
 0x16a   : > { %v5023_v5 = vpop.permute.xlu0 %5022  ;;  %v5030_v36 = vunpack.i.h.bf16 %v5028_v43  ;;  %v5029_v3 = vunpack.i.l.bf16 %v5028_v43  ;;  %4226 = vmatpush3.bf16.msra.mxu1 %v5629_v25 }
 0x16b   : > { %v5025_v57 = vunpack.i.h.bf16 %v5023_v5  ;;  %v5024_v38 = vunpack.i.l.bf16 %v5023_v5 }
 0x16c   : > { %v1632_v14 = vsel %vm1605_vm9, %v1599_v22, %v5029_v3  ;;  %v1633_v40 = vsel %vm1605_vm9, %v1600_v54, %v5030_v36 }
 0x16d   : > { %v5038_v18 = vpop.permute.xlu1 %5037  ;;  %v1630_v32 = vsel %vm1605_vm9, %v1597_v52, %v5024_v38  ;;  %v1631_v62 = vsel %vm1605_vm9, %v1598_v39, %v5025_v57  ;;  %v5674_v57 = vld [vmem:[#allocation2 + $0x158] sm:$0xff] }
 0x16e   : > { %v5033_v30 = vpop.permute.xlu0 %5032  ;;  %v5040_v58 = vunpack.i.h.bf16 %v5038_v18  ;;  %v5039_v19 = vunpack.i.l.bf16 %v5038_v18 }
 0x16f   : > { %v5035_v7 = vunpack.i.h.bf16 %v5033_v30  ;;  %v5034_v44 = vunpack.i.l.bf16 %v5033_v30  ;;  %v5672_v30 = vld [vmem:[#allocation2 + $0x170] sm:$0xff] }
 0x170   : > { %v1665_v28 = vsel %vm1638_vm10, %v1632_v14, %v5039_v19  ;;  %v1666_v45 = vsel %vm1638_vm10, %v1633_v40, %v5040_v58  ;;  %v5675_v58 = vld [vmem:[#allocation2 + $0x150] sm:$0xff] }
 0x171   : > { %v5048_v2 = vpop.permute.xlu1 %5047  ;;  %v1663_v29 = vsel %vm1638_vm10, %v1630_v32, %v5034_v44  ;;  %v1664_v10 = vsel %vm1638_vm10, %v1631_v62, %v5035_v7  ;;  %v5630_v7 = vld [vmem:[%s8160_s3 + $0x48] sm:$0xff]  }
 0x172   : > { %v5043_v8 = vpop.permute.xlu0 %5042  ;;  %v5050_v50 = vunpack.i.h.bf16 %v5048_v2  ;;  %v5049_v11 = vunpack.i.l.bf16 %v5048_v2  ;;  %v5631_v44 = vld [vmem:[%s8160_s3 + $0x8] sm:$0xff]   ;;  %4227 = vmatprep.subr.bf16.mxu1 %v5630_v7  ;;  %v5634_v7 = vld [vmem:[%s8160_s3 + $0x58] sm:$0xff]  }
 0x173   : > { %v5045_v53 = vunpack.i.h.bf16 %v5043_v8  ;;  %v5044_v42 = vunpack.i.l.bf16 %v5043_v8  ;;  %4228 = vmatpush3.bf16.msra.mxu1 %v5631_v44 }
 0x174   : > { %v1698_v21 = vsel %vm1671_vm11, %v1665_v28, %v5049_v11  ;;  %v1699_v26 = vsel %vm1671_vm11, %v1666_v45, %v5050_v50 }
 0x175   : > { %v5058_v51 = vpop.permute.xlu1 %5057  ;;  %v1696_v23 = vsel %vm1671_vm11, %v1663_v29, %v5044_v42  ;;  %v1697_v24 = vsel %vm1671_vm11, %v1664_v10, %v5045_v53 }
 0x176   : > { %v5060_v1 = vunpack.i.h.bf16 %v5058_v51  ;;  %v5059_v61 = vunpack.i.l.bf16 %v5058_v51  ;;  %v5053_v33 = vpop.permute.xlu0 %5052 }
 0x177   : > { %v5055_v59 = vunpack.i.h.bf16 %v5053_v33  ;;  %v5054_v43 = vunpack.i.l.bf16 %v5053_v33  ;;  %v6930_v33 = vld [vmem:[%s8159_s2] ss:$0 sm:$0xff] }
 0x178   : > { %v1731_v5 = vsel %vm1704_vm12, %v1698_v21, %v5059_v61  ;;  %v1732_v46 = vsel %vm1704_vm12, %v1699_v26, %v5060_v1 }
 0x179   : > { %v1729_v47 = vsel %vm1704_vm12, %v1696_v23, %v5054_v43  ;;  %v1730_v55 = vsel %vm1704_vm12, %v1697_v24, %v5055_v59  ;;  %v5068_v56 = vpop.permute.xlu1 %5067  ;;  %v1750_v16 = vpack.c.bf16 %v1732_v46, %v1731_v5 }
 0x17a   : > { %v5063_v60 = vpop.permute.xlu0 %5062  ;;  %v1749_v48 = vpack.c.bf16 %v1730_v55, %v1729_v47  ;;  %v5070_v20 = vunpack.i.h.bf16 %v5068_v56  ;;  %v5069_v49 = vunpack.i.l.bf16 %v5068_v56 }
 0x17b   : > { %v5065_v18 = vunpack.i.h.bf16 %v5063_v60  ;;  %v5064_v17 = vunpack.i.l.bf16 %v5063_v60 }
 0x17c   : > { %4394 = vmatprep.mubr.msk.bf16.mxu0 %vm1796_vm13, %v1749_v48  ;;  %v1505_v31 = vsel %vm277_vm0, %v5672_v30, %v5070_v20  ;;  %v1504_v37 = vsel %vm277_vm0, %v5673_v41, %v5069_v49 }
 0x17d   : > { %4395 = vmatmul.mubr.msk.bf16.gmra.mrb[24].mxu0 %vm1796_vm13, %v1750_v16  ;;  %v5078_v6 = vpop.permute.xlu1 %5077  ;;  %v1503_v38 = vsel %vm277_vm0, %v5674_v57, %v5065_v18  ;;  %v1502_v19 = vsel %vm277_vm0, %v5675_v58, %v5064_v17  ;;  %v5632_v18 = vld [vmem:[%s8160_s3 + $0x50] sm:$0xff]   ;;  %vm3108_vm0 = vcmask 785408  }
 0x17e   : > { %v5073_v12 = vpop.permute.xlu0 %5072  ;;  %v5080_v34 = vunpack.i.h.bf16 %v5078_v6  ;;  %v5079_v35 = vunpack.i.l.bf16 %v5078_v6  ;;  %4229 = vmatprep.subr.bf16.mxu1 %v5632_v18 }
 0x17f   : > { %v5075_v4 = vunpack.i.h.bf16 %v5073_v12  ;;  %v5074_v36 = vunpack.i.l.bf16 %v5073_v12 }
 0x180   : > { %v1537_v42 = vsel %vm1506_vm7, %v1504_v37, %v5079_v35  ;;  %v1538_v32 = vsel %vm1506_vm7, %v1505_v31, %v5080_v34  ;;  %v5633_v31 = vld [vmem:[%s8160_s3 + $0x10] sm:$0xff]  }
 0x181   : > { %v5088_v15 = vpop.permute.xlu1 %5087  ;;  %v1535_v62 = vsel %vm1506_vm7, %v1502_v19, %v5074_v36  ;;  %v1536_v28 = vsel %vm1506_vm7, %v1503_v38, %v5075_v4  ;;  %4230 = vmatpush3.bf16.msra.mxu1 %v5633_v31 }
 0x182   : > { %v5083_v63 = vpop.permute.xlu0 %5082  ;;  %v5090_v2 = vunpack.i.h.bf16 %v5088_v15  ;;  %v5089_v22 = vunpack.i.l.bf16 %v5088_v15  ;;  %4231 = vmatprep.subr.bf16.mxu1 %v5634_v7 }
 0x183   : > { %v5085_v8 = vunpack.i.h.bf16 %v5083_v63  ;;  %v5084_v52 = vunpack.i.l.bf16 %v5083_v63 }
 0x184   : > { %v1570_v51 = vsel %vm1539_vm8, %v1537_v42, %v5089_v22  ;;  %v1571_v29 = vsel %vm1539_vm8, %v1538_v32, %v5090_v2 }
 0x185   : > { %v5098_v13 = vpop.permute.xlu1 %5097  ;;  %v1568_v21 = vsel %vm1539_vm8, %v1535_v62, %v5084_v52  ;;  %v1569_v26 = vsel %vm1539_vm8, %v1536_v28, %v5085_v8  ;;  %v5636_v28 = vld [vmem:[%s8160_s3 + $0x60] sm:$0xff]  }
 0x186   : > { %v5093_v9 = vpop.permute.xlu0 %5092  ;;  %v5100_v39 = vunpack.i.h.bf16 %v5098_v13  ;;  %v5099_v50 = vunpack.i.l.bf16 %v5098_v13 }
 0x187   : > { %v5095_v11 = vunpack.i.h.bf16 %v5093_v9  ;;  %v5094_v14 = vunpack.i.l.bf16 %v5093_v9 }
 0x188   : > { %v1603_v59 = vsel %vm1572_vm5, %v1570_v51, %v5099_v50  ;;  %v1604_v43 = vsel %vm1572_vm5, %v1571_v29, %v5100_v39  ;;  %v5635_v50 = vld [vmem:[%s8160_s3 + $0x18] sm:$0xff]  }
 0x189   : > { %v5108_v3 = vpop.permute.xlu1 %5107  ;;  %v1601_v23 = vsel %vm1572_vm5, %v1568_v21, %v5094_v14  ;;  %v1602_v24 = vsel %vm1572_vm5, %v1569_v26, %v5095_v11  ;;  %4232 = vmatpush3.bf16.msra.mxu1 %v5635_v50  ;;  %v5638_v21 = vld [vmem:[%s8160_s3 + $0x68] sm:$0xff]  }
 0x18a   : > { %v5103_v54 = vpop.permute.xlu0 %5102  ;;  %v5110_v40 = vunpack.i.h.bf16 %v5108_v3  ;;  %v5109_v53 = vunpack.i.l.bf16 %v5108_v3  ;;  %4233 = vmatprep.subr.bf16.mxu1 %v5636_v28 }
 0x18b   : > { %v5105_v10 = vunpack.i.h.bf16 %v5103_v54  ;;  %v5104_v1 = vunpack.i.l.bf16 %v5103_v54 }
 0x18c   : > { %v1636_v5 = vsel %vm1605_vm9, %v1603_v59, %v5109_v53  ;;  %v1637_v46 = vsel %vm1605_vm9, %v1604_v43, %v5110_v40 }
 0x18d   : > { %v5118_v45 = vpop.permute.xlu1 %5117  ;;  %v1634_v12 = vsel %vm1605_vm9, %v1601_v23, %v5104_v1  ;;  %v1635_v15 = vsel %vm1605_vm9, %v1602_v24, %v5105_v10  ;;  %v5639_v23 = vld [vmem:[%s8160_s3 + $0x28] sm:$0xff]  }
 0x18e   : > { %v5113_v61 = vpop.permute.xlu0 %5112  ;;  %v5120_v55 = vunpack.i.h.bf16 %v5118_v45  ;;  %v5119_v56 = vunpack.i.l.bf16 %v5118_v45  ;;  %v5637_v45 = vld [vmem:[%s8160_s3 + $0x20] sm:$0xff]  }
 0x18f   : > { %v5114_v16 = vunpack.i.l.bf16 %v5113_v61  ;;  %v5115_v63 = vunpack.i.h.bf16 %v5113_v61  ;;  %4234 = vmatpush3.bf16.msra.mxu1 %v5637_v45 }
 0x190   : > { %v4372_v47 = vpop.f32.mrb[0].mxu0  ;;  %v1669_v4 = vsel %vm1638_vm10, %v1636_v5, %v5119_v56  ;;  %v1670_v36 = vsel %vm1638_vm10, %v1637_v46, %v5120_v55  ;;  %4235 = vmatprep.subr.bf16.mxu1 %v5638_v21 }
 0x191   : > { %v1892_v60 = vadd.f32 %v4372_v47, %v6930_v33  ;;  %v1883_v48 = vpop.f32.mrb[1].mxu0  ;;  %v5128_v6 = vpop.permute.xlu1 %5127  ;;  %v1667_v3 = vsel %vm1638_vm10, %v1634_v12, %v5114_v16  ;;  %v1668_v58 = vsel %vm1638_vm10, %v1635_v15, %v5115_v63  ;;  %v5640_v15 = vld [vmem:[%s8160_s3 + $0x70] sm:$0xff]  }
 0x192   : > { %v1884_v20 = vadd.f32 %v6930_v33, %v1883_v48  ;;  %v5123_v49 = vpop.permute.xlu0 %5122  ;;  %v4373_v13 = vpop.f32.mrb[2].mxu0  ;;  %v5130_v9 = vunpack.i.h.bf16 %v5128_v6  ;;  %v5129_v27 = vunpack.i.l.bf16 %v5128_v6  ;;  %v5641_v63 = vld [vmem:[%s8160_s3 + $0x30] sm:$0xff]  }
 0x193   : > { %v2012_v17 = vmax.f32 %v1892_v60, 0.0  ;;  %v1895_v25 = vadd.f32 %v4373_v13, %v6930_v33  ;;  %v1886_v30 = vpop.f32.mrb[3].mxu0  ;;  %v5125_v37 = vunpack.i.h.bf16 %v5123_v49  ;;  %v5124_v34 = vunpack.i.l.bf16 %v5123_v49  ;;  %4236 = vmatpush3.bf16.msra.mxu1 %v5639_v23 }
 0x194   : > { %v2010_v41 = vmax.f32 %v1884_v20, 0.0  ;;  %v1887_v35 = vadd.f32 %v6930_v33, %v1886_v30  ;;  %v1702_v44 = vsel %vm1671_vm11, %v1669_v4, %v5129_v27  ;;  %v1703_v8 = vsel %vm1671_vm11, %v1670_v36, %v5130_v9  ;;  %4237 = vmatprep.subr.bf16.mxu1 %v5640_v15  ;;  %v5642_v9 = vld [vmem:[%s8160_s3 + $0x78] sm:$0xff]  }
 0x195   : > { %2086 = vst.msk [vmem:[#allocation3 + $0x31] sm:$0xff] %vm1572_vm5, %v2012_v17  ;;  %v2013_v57 = vmax.f32 %v1895_v25, 0.0  ;;  %v5138_v38 = vpop.permute.xlu1 %5137  ;;  %v1700_v11 = vsel %vm1671_vm11, %v1667_v3, %v5124_v34  ;;  %v1701_v14 = vsel %vm1671_vm11, %v1668_v58, %v5125_v37  ;;  %v5643_v27 = vld [vmem:[%s8160_s3 + $0x38] sm:$0xff]  }
 0x196   : > { %2084 = vst.msk [vmem:[#allocation3 + $0x19] sm:$0xff] %vm1572_vm5, %v2010_v41  ;;  %v2011_v19 = vmax.f32 %v1887_v35, 0.0  ;;  %v5140_v2 = vunpack.i.h.bf16 %v5138_v38  ;;  %v5139_v22 = vunpack.i.l.bf16 %v5138_v38  ;;  %v5133_v54 = vpop.permute.xlu0 %5132 }
 0x197   : > { %2087 = vst.msk [vmem:[#allocation3 + $0x39] sm:$0xff] %vm1572_vm5, %v2013_v57  ;;  %v5135_v52 = vunpack.i.h.bf16 %v5133_v54  ;;  %v5134_v39 = vunpack.i.l.bf16 %v5133_v54  ;;  %4238 = vmatpush3.bf16.msra.mxu1 %v5641_v63 }
 0x198   : > { %2085 = vst.msk [vmem:[#allocation3 + $0x21] sm:$0xff] %vm1572_vm5, %v2011_v19  ;;  %v1735_v40 = vsel %vm1704_vm12, %v1702_v44, %v5139_v22  ;;  %v1736_v53 = vsel %vm1704_vm12, %v1703_v8, %v5140_v2  ;;  %4239 = vmatprep.subr.bf16.mxu1 %v5642_v9 }
 0x199   : > { %v1752_v42 = vpack.c.bf16 %v1736_v53, %v1735_v40  ;;  %v1733_v32 = vsel %vm1704_vm12, %v1700_v11, %v5134_v39  ;;  %v1734_v62 = vsel %vm1704_vm12, %v1701_v14, %v5135_v52 }
 0x19a   : > { %v1751_v51 = vpack.c.bf16 %v1734_v62, %v1733_v32 }
 0x19b   : > { %4240 = vmatpush3.bf16.msra.mxu1 %v5643_v27 }
 0x19c   : > { %4398 = vmatprep.mubr.msk.bf16.mxu0 %vm1796_vm13, %v1751_v51  ;;  %v6981_v29 = vld [vmem:[#allocation3 + $0x30] sm:$0xff] }
 0x19d   : > { %4399 = vmatmul.mubr.msk.bf16.gmra.mrb[28].mxu0 %vm1796_vm13, %v1752_v42  ;;  %v2404_v61 = vrot.slane %v6981_v29, 2  ;;  %v2228_v24 = vrot.slane %v6981_v29, 1  ;;  %v7010_v12 = vld [vmem:[#allocation3 + $0x18] sm:$0xff] }
 0x19e   : > { %v6984_v10 = vld [vmem:[#allocation3 + $0x38] sm:$0xff]  ;;  %v2124_v1 = vld [vmem:[#allocation3 + $0x40] sm:$0x3]  ;;  %v2399_v17 = vrot.slane %v7010_v12, 2  ;;  %v2223_v34 = vrot.slane %v7010_v12, 1 }
 0x19f   : > { %v5156_v26 = vpack.i.bf16 %v6984_v10, %v6981_v29  ;;  %v2405_v59 = vrot.slane %v6984_v10, 2  ;;  %v2407_v43 = vrot.slane %v2124_v1, 2  ;;  %v2229_v5 = vrot.slane %v6984_v10, 1  ;;  %v6998_v47 = vld [vmem:[#allocation3 + $0x20] sm:$0xff]  ;;  %v2121_v16 = vld [vmem:[#allocation3 + $0x28] sm:$0x3] }
 0x1a0   : > { %v2231_v46 = vrot.slane %v2124_v1, 1  ;;  %v5161_v49 = vpack.i.bf16 %v6998_v47, %v7010_v12  ;;  %v2400_v13 = vrot.slane %v6998_v47, 2  ;;  %v2402_v18 = vrot.slane %v2121_v16, 2 }
 0x1a1   : > { %5157 = vrot.lane.b32.xlu1 %v5156_v26, %s5772_s15  ;;  %5152 = vrot.lane.b32.xlu0 %v5156_v26, %s5771_s29  ;;  %v2406_v55 = vsel %vm695_vm3, %v2404_v61, %v2405_v59  ;;  %v2408_v56 = vsel %vm695_vm3, %v2405_v59, %v2407_v43  ;;  %v7005_v48 = vsel %vm518_vm4, %v2228_v24, %v2229_v5  ;;  %v2224_v41 = vrot.slane %v6998_v47, 1 }
 0x1a2   : > { %v3239_v60 = vpack.c.bf16 %v2408_v56, %v2406_v55  ;;  %v7008_v6 = vsel %vm518_vm4, %v2229_v5, %v2231_v46  ;;  %v5171_v25 = vpack.i.bf16 %v2408_v56, %v2406_v55  ;;  %v2401_v30 = vsel %vm695_vm3, %v2399_v17, %v2400_v13 }
 0x1a3   : > { %v5166_v20 = vpack.i.bf16 %v7008_v6, %v7005_v48  ;;  %v2403_v31 = vsel %vm695_vm3, %v2400_v13, %v2402_v18  ;;  %v2226_v37 = vrot.slane %v2121_v16, 1  ;;  %v7040_v4 = vsel %vm518_vm4, %v2223_v34, %v2224_v41 }
 0x1a4   : > { %4406 = vmatprep.mubr.msk.bf16.mxu0 %vm1572_vm5, %v3239_v60  ;;  %v5186_v35 = vpack.i.bf16 %v2403_v31, %v2401_v30 }
 0x1a5   : > { %5167 = vrot.lane.b32.xlu0 %v5166_v20, %s5772_s15  ;;  %5162 = vrot.lane.b32.xlu1 %v5161_v49, %s5772_s15  ;;  %v7043_v36 = vsel %vm518_vm4, %v2224_v41, %v2226_v37 }
 0x1a6   : > { %v5191_v3 = vpack.i.bf16 %v7043_v36, %v7040_v4 }
 0x1a9   : > { %5172 = vrot.lane.b32.xlu0 %v5171_v25, %s5768_s14  ;;  %5177 = vrot.lane.b32.xlu1 %v5166_v20, %s5768_s14 }
 0x1ad   : > { %5182 = vrot.lane.b32.xlu1 %v5171_v25, %s5771_s29  ;;  %5187 = vrot.lane.b32.xlu0 %v5186_v35, %s5768_s14 }
 0x1b0   : > { %v4376_v57 = vpop.f32.mrb[4].mxu0 }
 0x1b1   : > { %v1908_v38 = vadd.f32 %v4376_v57, %v6930_v33  ;;  %v1899_v58 = vpop.f32.mrb[5].mxu0  ;;  %5192 = vrot.lane.b32.xlu1 %v5191_v3, %s5768_s14 }
 0x1b2   : > { %v1900_v19 = vadd.f32 %v6930_v33, %v1899_v58  ;;  %v4377_v2 = vpop.f32.mrb[6].mxu0 }
 0x1b3   : > { %v2016_v22 = vmax.f32 %v1908_v38, 0.0  ;;  %v1911_v54 = vadd.f32 %v4377_v2, %v6930_v33  ;;  %v1902_v7 = vpop.f32.mrb[7].mxu0 }
 0x1b4   : > { %v2014_v44 = vmax.f32 %v1900_v19, 0.0  ;;  %v1903_v8 = vadd.f32 %v6930_v33, %v1902_v7 }
 0x1b5   : > { %2090 = vst.msk [vmem:[#allocation3 + $0x61] sm:$0xff] %vm1572_vm5, %v2016_v22  ;;  %v2017_v52 = vmax.f32 %v1911_v54, 0.0  ;;  %5197 = vrot.lane.b32.xlu1 %v5186_v35, %s5771_s29 }
 0x1b6   : > { %2088 = vst.msk [vmem:[#allocation3 + $0x49] sm:$0xff] %vm1572_vm5, %v2014_v44  ;;  %v2015_v39 = vmax.f32 %v1903_v8, 0.0 }
 0x1b7   : > { %2091 = vst.msk [vmem:[#allocation3 + $0x69] sm:$0xff] %vm1572_vm5, %v2017_v52 }
 0x1b8   : > { %2089 = vst.msk [vmem:[#allocation3 + $0x51] sm:$0xff] %vm1572_vm5, %v2015_v39 }
 0x1bc   : > { %v2128_v50 = vld [vmem:[#allocation3 + $0x60] sm:$0xff] }
 0x1bd   : > { %v7059_v11 = vld [vmem:[#allocation3 + $0x48] sm:$0xff]  ;;  %v2414_v53 = vrot.slane %v2128_v50, 2  ;;  %v2238_v5 = vrot.slane %v2128_v50, 1 }
 0x1be   : > { %v2129_v14 = vld [vmem:[#allocation3 + $0x68] sm:$0xff]  ;;  %v2130_v40 = vld [vmem:[#allocation3 + $0x70] sm:$0x3]  ;;  %v2409_v51 = vrot.slane %v7059_v11, 2  ;;  %v2233_v49 = vrot.slane %v7059_v11, 1 }
 0x1bf   : > { %v5201_v42 = vpack.i.bf16 %v2129_v14, %v2128_v50  ;;  %v7061_v32 = vld [vmem:[#allocation3 + $0x50] sm:$0xff]  ;;  %v2127_v62 = vld [vmem:[#allocation3 + $0x58] sm:$0x3]  ;;  %v2415_v28 = vrot.slane %v2129_v14, 2  ;;  %v2417_v45 = vrot.slane %v2130_v40, 2  ;;  %v2239_v59 = vrot.slane %v2129_v14, 1 }
 0x1c0   : > { %v2410_v1 = vrot.slane %v7061_v32, 2  ;;  %v2412_v61 = vrot.slane %v2127_v62, 2  ;;  %v2241_v43 = vrot.slane %v2130_v40, 1  ;;  %v5211_v55 = vpack.i.bf16 %v7061_v32, %v7059_v11 }
 0x1c1   : > { %5202 = vrot.lane.b32.xlu0 %v5201_v42, %s5771_s29  ;;  %5207 = vrot.lane.b32.xlu1 %v5201_v42, %s5772_s15  ;;  %v2416_v21 = vsel %vm695_vm3, %v2414_v53, %v2415_v28  ;;  %v2418_v26 = vsel %vm695_vm3, %v2415_v28, %v2417_v45  ;;  %v7074_v16 = vsel %vm518_vm4, %v2238_v5, %v2239_v59  ;;  %v2234_v63 = vrot.slane %v7061_v32, 1 }
 0x1c2   : > { %v2411_v23 = vsel %vm695_vm3, %v2409_v51, %v2410_v1  ;;  %v2413_v24 = vsel %vm695_vm3, %v2410_v1, %v2412_v61  ;;  %v3245_v56 = vpack.c.bf16 %v2418_v26, %v2416_v21  ;;  %v7077_v60 = vsel %vm518_vm4, %v2239_v59, %v2241_v43 }
 0x1c3   : > { %v3242_v46 = vpack.c.bf16 %v2413_v24, %v2411_v23  ;;  %v5221_v15 = vpack.i.bf16 %v7077_v60, %v7074_v16  ;;  %v2236_v20 = vrot.slane %v2127_v62, 1  ;;  %v5226_v13 = vpack.i.bf16 %v2418_v26, %v2416_v21 }
 0x1c4   : > { %v7090_v18 = vsel %vm518_vm4, %v2233_v49, %v2234_v63  ;;  %v5246_v3 = vpack.i.bf16 %v2413_v24, %v2411_v23 }
 0x1c5   : > { %4407 = vmatmul.mubr.msk.bf16.vlgmr.msra.gmra.mrb[32].mxu0 %vm1572_vm5, %v3242_v46  ;;  %5212 = vrot.lane.b32.xlu0 %v5211_v55, %s5771_s29  ;;  %v7093_v17 = vsel %vm518_vm4, %v2234_v63, %v2236_v20 }
 0x1c6   : > { %5217 = vrot.lane.b32.xlu1 %v5211_v55, %s5772_s15  ;;  %4410 = vmatprep.mubr.msk.bf16.mxu0 %vm1572_vm5, %v3245_v56  ;;  %v5241_v9 = vpack.i.bf16 %v7093_v17, %v7090_v18 }
 0x1c9   : > { %5222 = vrot.lane.b32.xlu0 %v5221_v15, %s5772_s15 }
 0x1ca   : > { %5232 = vrot.lane.b32.xlu1 %v5221_v15, %s5768_s14 }
 0x1cd   : > { %5227 = vrot.lane.b32.xlu0 %v5226_v13, %s5768_s14 }
 0x1ce   : > { %5237 = vrot.lane.b32.xlu1 %v5226_v13, %s5771_s29 }
 0x1d0   : > { %v4380_v27 = vpop.f32.mrb[8].mxu0 }
 0x1d1   : > { %v1924_v25 = vadd.f32 %v4380_v27, %v6930_v33  ;;  %v1915_v30 = vpop.f32.mrb[9].mxu0  ;;  %5242 = vrot.lane.b32.xlu0 %v5241_v9, %s5772_s15 }
 0x1d2   : > { %v1916_v31 = vadd.f32 %v6930_v33, %v1915_v30  ;;  %5252 = vrot.lane.b32.xlu1 %v5241_v9, %s5768_s14  ;;  %v4381_v41 = vpop.f32.mrb[10].mxu0 }
 0x1d3   : > { %v2020_v37 = vmax.f32 %v1924_v25, 0.0  ;;  %v1927_v34 = vadd.f32 %v4381_v41, %v6930_v33  ;;  %v1918_v35 = vpop.f32.mrb[11].mxu0 }
 0x1d4   : > { %v2018_v57 = vmax.f32 %v1916_v31, 0.0  ;;  %v1919_v38 = vadd.f32 %v6930_v33, %v1918_v35 }
 0x1d5   : > { %2094 = vst.msk [vmem:[#allocation3 + $0x91] sm:$0xff] %vm1572_vm5, %v2020_v37  ;;  %v2021_v58 = vmax.f32 %v1927_v34, 0.0  ;;  %5247 = vrot.lane.b32.xlu0 %v5246_v3, %s5768_s14 }
 0x1d6   : > { %2092 = vst.msk [vmem:[#allocation3 + $0x79] sm:$0xff] %vm1572_vm5, %v2018_v57  ;;  %v2019_v19 = vmax.f32 %v1919_v38, 0.0  ;;  %5257 = vrot.lane.b32.xlu1 %v5246_v3, %s5771_s29 }
 0x1d7   : > { %2095 = vst.msk [vmem:[#allocation3 + $0x99] sm:$0xff] %vm1572_vm5, %v2021_v58 }
 0x1d8   : > { %2093 = vst.msk [vmem:[#allocation3 + $0x81] sm:$0xff] %vm1572_vm5, %v2019_v19 }
 0x1dc   : > { %v2134_v2 = vld [vmem:[#allocation3 + $0x90] sm:$0xff] }
 0x1dd   : > { %v2131_v22 = vld [vmem:[#allocation3 + $0x78] sm:$0xff]  ;;  %v2424_v44 = vrot.slane %v2134_v2, 2  ;;  %v2248_v21 = vrot.slane %v2134_v2, 1 }
 0x1de   : > { %v2135_v54 = vld [vmem:[#allocation3 + $0x98] sm:$0xff]  ;;  %v2136_v7 = vld [vmem:[#allocation3 + $0xa0] sm:$0x3]  ;;  %v2419_v40 = vrot.slane %v2131_v22, 2  ;;  %v2243_v56 = vrot.slane %v2131_v22, 1 }
 0x1df   : > { %v5261_v8 = vpack.i.bf16 %v2135_v54, %v2134_v2  ;;  %v2132_v52 = vld [vmem:[#allocation3 + $0x80] sm:$0xff]  ;;  %v2133_v39 = vld [vmem:[#allocation3 + $0x88] sm:$0x3]  ;;  %v2425_v50 = vrot.slane %v2135_v54, 2  ;;  %v2427_v14 = vrot.slane %v2136_v7, 2  ;;  %v2249_v45 = vrot.slane %v2135_v54, 1 }
 0x1e0   : > { %v2420_v53 = vrot.slane %v2132_v52, 2  ;;  %v2422_v42 = vrot.slane %v2133_v39, 2  ;;  %v2251_v51 = vrot.slane %v2136_v7, 1  ;;  %v5271_v59 = vpack.i.bf16 %v2132_v52, %v2131_v22 }
 0x1e1   : > { %5262 = vrot.lane.b32.xlu0 %v5261_v8, %s5771_s29  ;;  %5267 = vrot.lane.b32.xlu1 %v5261_v8, %s5772_s15  ;;  %v2426_v62 = vsel %vm695_vm3, %v2424_v44, %v2425_v50  ;;  %v2428_v28 = vsel %vm695_vm3, %v2425_v50, %v2427_v14  ;;  %v7118_v23 = vsel %vm518_vm4, %v2248_v21, %v2249_v45  ;;  %v2244_v46 = vrot.slane %v2132_v52, 1 }
 0x1e2   : > { %v2421_v1 = vsel %vm695_vm3, %v2419_v40, %v2420_v53  ;;  %v2423_v61 = vsel %vm695_vm3, %v2420_v53, %v2422_v42  ;;  %v3251_v43 = vpack.c.bf16 %v2428_v28, %v2426_v62  ;;  %v7121_v24 = vsel %vm518_vm4, %v2249_v45, %v2251_v51 }
 0x1e3   : > { %v3248_v26 = vpack.c.bf16 %v2423_v61, %v2421_v1  ;;  %v5281_v5 = vpack.i.bf16 %v7121_v24, %v7118_v23  ;;  %v2246_v55 = vrot.slane %v2133_v39, 1  ;;  %v5286_v15 = vpack.i.bf16 %v2428_v28, %v2426_v62 }
 0x1e4   : > { %v7132_v63 = vsel %vm518_vm4, %v2243_v56, %v2244_v46  ;;  %v5306_v34 = vpack.i.bf16 %v2423_v61, %v2421_v1 }
 0x1e5   : > { %4411 = vmatmul.mubr.msk.bf16.gmra.mrb[36].mxu0 %vm1572_vm5, %v3248_v26  ;;  %5272 = vrot.lane.b32.xlu0 %v5271_v59, %s5771_s29  ;;  %v7135_v20 = vsel %vm518_vm4, %v2244_v46, %v2246_v55  ;;  %v5143_v46 = vpop.permute.xlu1 %5142 }
 0x1e6   : > { %5277 = vrot.lane.b32.xlu1 %v5271_v59, %s5772_s15  ;;  %4414 = vmatprep.mubr.msk.bf16.mxu0 %vm1572_vm5, %v3251_v43  ;;  %v5301_v49 = vpack.i.bf16 %v7135_v20, %v7132_v63 }
 0x1e9   : > { %5282 = vrot.lane.b32.xlu0 %v5281_v5, %s5772_s15 }
 0x1ea   : > { %5292 = vrot.lane.b32.xlu1 %v5281_v5, %s5768_s14 }
 0x1ed   : > { %5287 = vrot.lane.b32.xlu0 %v5286_v15, %s5768_s14 }
 0x1ee   : > { %5297 = vrot.lane.b32.xlu1 %v5286_v15, %s5771_s29 }
 0x1f0   : > { %v4384_v13 = vpop.f32.mrb[12].mxu0 }
 0x1f1   : > { %v1940_v9 = vadd.f32 %v4384_v13, %v6930_v33  ;;  %v1931_v27 = vpop.f32.mrb[13].mxu0  ;;  %5302 = vrot.lane.b32.xlu0 %v5301_v49, %s5772_s15 }
 0x1f2   : > { %v1932_v25 = vadd.f32 %v6930_v33, %v1931_v27  ;;  %5312 = vrot.lane.b32.xlu1 %v5301_v49, %s5768_s14  ;;  %v4385_v30 = vpop.f32.mrb[14].mxu0  ;;  %v5148_v27 = vpop.permute.xlu1 %5147 }
 0x1f3   : > { %v2024_v31 = vmax.f32 %v1940_v9, 0.0  ;;  %v1943_v41 = vadd.f32 %v4385_v30, %v6930_v33  ;;  %v1934_v37 = vpop.f32.mrb[15].mxu0 }
 0x1f4   : > { %v2022_v35 = vmax.f32 %v1932_v25, 0.0  ;;  %v1935_v3 = vadd.f32 %v6930_v33, %v1934_v37 }
 0x1f5   : > { %2098 = vst.msk [vmem:[#allocation3 + $0xc1] sm:$0xff] %vm1572_vm5, %v2024_v31  ;;  %v2025_v57 = vmax.f32 %v1943_v41, 0.0  ;;  %5307 = vrot.lane.b32.xlu0 %v5306_v34, %s5768_s14 }
 0x1f6   : > { %2096 = vst.msk [vmem:[#allocation3 + $0xa9] sm:$0xff] %vm1572_vm5, %v2022_v35  ;;  %v2023_v38 = vmax.f32 %v1935_v3, 0.0  ;;  %5317 = vrot.lane.b32.xlu1 %v5306_v34, %s5771_s29 }
 0x1f7   : > { %2099 = vst.msk [vmem:[#allocation3 + $0xc9] sm:$0xff] %vm1572_vm5, %v2025_v57 }
 0x1f8   : > { %2097 = vst.msk [vmem:[#allocation3 + $0xb1] sm:$0xff] %vm1572_vm5, %v2023_v38 }
 0x1fc   : > { %v2140_v58 = vld [vmem:[#allocation3 + $0xc0] sm:$0xff] }
 0x1fd   : > { %v2137_v19 = vld [vmem:[#allocation3 + $0xa8] sm:$0xff]  ;;  %v2434_v54 = vrot.slane %v2140_v58, 2  ;;  %v2258_v1 = vrot.slane %v2140_v58, 1 }
 0x1fe   : > { %v2141_v2 = vld [vmem:[#allocation3 + $0xc8] sm:$0xff]  ;;  %v2142_v22 = vld [vmem:[#allocation3 + $0xd0] sm:$0x3]  ;;  %v2429_v50 = vrot.slane %v2137_v19, 2  ;;  %v2253_v15 = vrot.slane %v2137_v19, 1 }
 0x1ff   : > { %v5321_v7 = vpack.i.bf16 %v2141_v2, %v2140_v58  ;;  %v2138_v44 = vld [vmem:[#allocation3 + $0xb0] sm:$0xff]  ;;  %v2139_v8 = vld [vmem:[#allocation3 + $0xb8] sm:$0x3]  ;;  %v2435_v52 = vrot.slane %v2141_v2, 2  ;;  %v2437_v39 = vrot.slane %v2142_v22, 2  ;;  %v2259_v62 = vrot.slane %v2141_v2, 1 }
 0x200   : > { %v2430_v14 = vrot.slane %v2138_v44, 2  ;;  %v2432_v40 = vrot.slane %v2139_v8, 2  ;;  %v2261_v28 = vrot.slane %v2142_v22, 1  ;;  %v5331_v21 = vpack.i.bf16 %v2138_v44, %v2137_v19 }
 0x201   : > { %5322 = vrot.lane.b32.xlu0 %v5321_v7, %s5771_s29  ;;  %5327 = vrot.lane.b32.xlu1 %v5321_v7, %s5772_s15  ;;  %v2436_v53 = vsel %vm695_vm3, %v2434_v54, %v2435_v52  ;;  %v2438_v42 = vsel %vm695_vm3, %v2435_v52, %v2437_v39  ;;  %v7160_v59 = vsel %vm518_vm4, %v2258_v1, %v2259_v62  ;;  %v2254_v55 = vrot.slane %v2138_v44, 1 }
 0x202   : > { %v2431_v45 = vsel %vm695_vm3, %v2429_v50, %v2430_v14  ;;  %v2433_v51 = vsel %vm695_vm3, %v2430_v14, %v2432_v40  ;;  %v3257_v26 = vpack.c.bf16 %v2438_v42, %v2436_v53  ;;  %v7163_v43 = vsel %vm518_vm4, %v2259_v62, %v2261_v28  ;;  %v5676_v14 = vld [vmem:[#allocation3] sm:$0xff] }
 0x203   : > { %v3254_v61 = vpack.c.bf16 %v2433_v51, %v2431_v45  ;;  %v5341_v5 = vpack.i.bf16 %v7163_v43, %v7160_v59  ;;  %v2256_v56 = vrot.slane %v2139_v8, 1  ;;  %v5346_v49 = vpack.i.bf16 %v2438_v42, %v2436_v53  ;;  %v5677_v42 = vld [vmem:[#allocation3 + $0x8] sm:$0xff] }
 0x204   : > { %v7174_v13 = vsel %vm518_vm4, %v2253_v15, %v2254_v55  ;;  %v5366_v58 = vpack.i.bf16 %v2433_v51, %v2431_v45  ;;  %v5144_v7 = vunpack.i.l.bf16 %v5143_v46  ;;  %v5145_v44 = vunpack.i.h.bf16 %v5143_v46 }
 0x205   : > { %4415 = vmatmul.mubr.msk.bf16.gmra.mrb[40].mxu0 %vm1572_vm5, %v3254_v61  ;;  %5332 = vrot.lane.b32.xlu0 %v5331_v21, %s5771_s29  ;;  %v7177_v9 = vsel %vm518_vm4, %v2254_v55, %v2256_v56  ;;  %v5149_v50 = vunpack.i.l.bf16 %v5148_v27  ;;  %v5150_v53 = vunpack.i.h.bf16 %v5148_v27 }
 0x206   : > { %5337 = vrot.lane.b32.xlu1 %v5331_v21, %s5772_s15  ;;  %4418 = vmatprep.mubr.msk.bf16.mxu0 %vm1572_vm5, %v3257_v26  ;;  %v5361_v25 = vpack.i.bf16 %v7177_v9, %v7174_v13  ;;  %v3044_v40 = vsel %vm1572_vm5, %v5676_v14, %v5144_v7  ;;  %v3045_v62 = vsel %vm1572_vm5, %v5677_v42, %v5145_v44 }
 0x207   : > { %v3076_v45 = vsel %vm1704_vm12, %v3044_v40, %v5149_v50  ;;  %v3077_v61 = vsel %vm1704_vm12, %v3045_v62, %v5150_v53 }
 0x209   : > { %5342 = vrot.lane.b32.xlu0 %v5341_v5, %s5772_s15 }
 0x20a   : > { %5352 = vrot.lane.b32.xlu1 %v5341_v5, %s5768_s14 }
 0x20d   : > { %5347 = vrot.lane.b32.xlu0 %v5346_v49, %s5768_s14 }
 0x20e   : > { %5357 = vrot.lane.b32.xlu1 %v5346_v49, %s5771_s29 }
 0x210   : > { %v4388_v30 = vpop.f32.mrb[16].mxu0 }
 0x211   : > { %v1956_v31 = vadd.f32 %v4388_v30, %v6930_v33  ;;  %v1947_v41 = vpop.f32.mrb[17].mxu0  ;;  %5362 = vrot.lane.b32.xlu0 %v5361_v25, %s5772_s15 }
 0x212   : > { %v1948_v37 = vadd.f32 %v6930_v33, %v1947_v41  ;;  %5372 = vrot.lane.b32.xlu1 %v5361_v25, %s5768_s14  ;;  %v4389_v34 = vpop.f32.mrb[18].mxu0 }
 0x213   : > { %v2028_v35 = vmax.f32 %v1956_v31, 0.0  ;;  %v1959_v3 = vadd.f32 %v4389_v34, %v6930_v33  ;;  %v7188_v57 = vpop.permute.xlu1 %5157  ;;  %v7190_v38 = vpop.permute.xlu0 %5152 }
 0x214   : > { %v2026_v19 = vmax.f32 %v1948_v37, 0.0  ;;  %v1950_v2 = vpop.f32.mrb[19].mxu0  ;;  %v5155_v21 = vunpack.i.h.bf16 %v7190_v38  ;;  %v5154_v26 = vunpack.i.l.bf16 %v7190_v38 }
 0x215   : > { %2102 = vst.msk [vmem:[#allocation3 + $0xf1] sm:$0xff] %vm1572_vm5, %v2028_v35  ;;  %v2029_v22 = vmax.f32 %v1959_v3, 0.0  ;;  %v1951_v54 = vadd.f32 %v6930_v33, %v1950_v2  ;;  %5367 = vrot.lane.b32.xlu0 %v5366_v58, %s5768_s14 }
 0x216   : > { %2100 = vst.msk [vmem:[#allocation3 + $0xd9] sm:$0xff] %vm1572_vm5, %v2026_v19  ;;  %5377 = vrot.lane.b32.xlu1 %v5366_v58, %s5771_s29 }
 0x217   : > { %2103 = vst.msk [vmem:[#allocation3 + $0xf9] sm:$0xff] %vm1572_vm5, %v2029_v22  ;;  %v2027_v8 = vmax.f32 %v1951_v54, 0.0  ;;  %v5168_v52 = vpop.permute.xlu0 %5167  ;;  %v5163_v39 = vpop.permute.xlu1 %5162 }
 0x218   : > { %v5164_v51 = vunpack.i.l.bf16 %v5163_v39  ;;  %v5170_v5 = vunpack.i.h.bf16 %v5168_v52  ;;  %v5169_v15 = vunpack.i.l.bf16 %v5168_v52  ;;  %v5165_v31 = vunpack.i.h.bf16 %v5163_v39 }
 0x219   : > { %2101 = vst.msk [vmem:[#allocation3 + $0xe1] sm:$0xff] %vm1572_vm5, %v2027_v8 }
 0x21a   : > { %v3109_v2 = vsel %vm3108_vm0, %v3076_v45, %v5164_v51  ;;  %v3110_v53 = vsel %vm3108_vm0, %v3077_v61, %v5165_v31 }
 0x21b   : > { %v7201_v28 = vpop.permute.xlu0 %5172  ;;  %v7207_v46 = vpop.permute.xlu1 %5177 }
 0x21c   : > { %v2146_v1 = vld [vmem:[#allocation3 + $0xf0] sm:$0xff] }
 0x21d   : > { %v2143_v56 = vld [vmem:[#allocation3 + $0xd8] sm:$0xff]  ;;  %v2444_v3 = vrot.slane %v2146_v1, 2  ;;  %v2268_v42 = vrot.slane %v2146_v1, 1 }
 0x21e   : > { %v2147_v55 = vld [vmem:[#allocation3 + $0xf8] sm:$0xff]  ;;  %v2148_v25 = vld [vmem:[#allocation3 + $0x100] sm:$0x3]  ;;  %v2439_v38 = vrot.slane %v2143_v56, 2 }
 0x21f   : > { %v5188_v49 = vpop.permute.xlu0 %5187  ;;  %v5381_v27 = vpack.i.bf16 %v2147_v55, %v2146_v1  ;;  %v2445_v30 = vrot.slane %v2147_v55, 2  ;;  %v2447_v7 = vrot.slane %v2148_v25, 2  ;;  %v7219_v50 = vpop.permute.xlu1 %5182  ;;  %v2269_v51 = vrot.slane %v2147_v55, 1 }
 0x220   : > { %v5190_v41 = vunpack.i.h.bf16 %v5188_v49  ;;  %v5189_v37 = vunpack.i.l.bf16 %v5188_v49  ;;  %v2144_v34 = vld [vmem:[#allocation3 + $0xe0] sm:$0xff]  ;;  %v2145_v35 = vld [vmem:[#allocation3 + $0xe8] sm:$0x3] }
 0x221   : > { %5382 = vrot.lane.b32.xlu0 %v5381_v27, %s5771_s29  ;;  %5387 = vrot.lane.b32.xlu1 %v5381_v27, %s5772_s15  ;;  %v2440_v58 = vrot.slane %v2144_v34, 2  ;;  %v2442_v19 = vrot.slane %v2145_v35, 2  ;;  %v5391_v22 = vpack.i.bf16 %v2144_v34, %v2143_v56  ;;  %v2446_v54 = vsel %vm695_vm3, %v2444_v3, %v2445_v30 }
 0x222   : > { %v3141_v52 = vsel %vm1572_vm5, %v7040_v4, %v5189_v37  ;;  %v3142_v39 = vsel %vm1572_vm5, %v7043_v36, %v5190_v41  ;;  %v2448_v40 = vsel %vm695_vm3, %v2445_v30, %v2447_v7  ;;  %v7232_v1 = vsel %vm518_vm4, %v2268_v42, %v2269_v51 }
 0x223   : > { %v2441_v44 = vsel %vm695_vm3, %v2439_v38, %v2440_v58  ;;  %v2443_v8 = vsel %vm695_vm3, %v2440_v58, %v2442_v19  ;;  %v3263_v62 = vpack.c.bf16 %v2448_v40, %v2446_v54  ;;  %v3173_v45 = vsel %vm1704_vm12, %v3141_v52, %v5154_v26 }
 0x224   : > { %v3260_v14 = vpack.c.bf16 %v2443_v8, %v2441_v44  ;;  %v3174_v4 = vsel %vm1704_vm12, %v3142_v39, %v5155_v21  ;;  %v3205_v36 = vsel %vm3108_vm0, %v3173_v45, %v5169_v15  ;;  %v2271_v27 = vrot.slane %v2148_v25, 1  ;;  %v5193_v21 = vpop.permute.xlu1 %5192 }
 0x225   : > { %5392 = vrot.lane.b32.xlu0 %v5391_v22, %s5771_s29  ;;  %5397 = vrot.lane.b32.xlu1 %v5391_v22, %s5772_s15  ;;  %v3206_v49 = vsel %vm3108_vm0, %v3174_v4, %v5170_v5  ;;  %v3237_v30 = vpack.c.bf16 %v3110_v53, %v3109_v2  ;;  %v2264_v15 = vrot.slane %v2144_v34, 1  ;;  %v2266_v31 = vrot.slane %v2145_v35, 1 }
 0x226   : > { %4419 = vmatmul.mubr.msk.bf16.gmra.mrb[44].mxu0 %vm1572_vm5, %v3260_v14  ;;  %v3238_v61 = vpack.c.bf16 %v3206_v49, %v3205_v36  ;;  %v7235_v26 = vsel %vm518_vm4, %v2269_v51, %v2271_v27  ;;  %v2263_v5 = vrot.slane %v2143_v56, 1  ;;  %v5406_v41 = vpack.i.bf16 %v2448_v40, %v2446_v54 }
 0x227   : > { %4422 = vmatprep.mubr.msk.bf16.mxu0 %vm1572_vm5, %v3263_v62  ;;  %v5401_v55 = vpack.i.bf16 %v7235_v26, %v7232_v1  ;;  %v7245_v37 = vsel %vm518_vm4, %v2264_v15, %v2266_v31  ;;  %v5195_v40 = vunpack.i.h.bf16 %v5193_v21  ;;  %v5194_v42 = vunpack.i.l.bf16 %v5193_v21 }
 0x228   : > { %3516 = vmatprep.mubr.bf16.mxu1 %v3238_v61  ;;  %v7242_v25 = vsel %vm518_vm4, %v2263_v5, %v2264_v15  ;;  %v5198_v3 = vpop.permute.xlu1 %5197  ;;  %v5426_v45 = vpack.i.bf16 %v2443_v8, %v2441_v44  ;;  %v5175_v44 = vunpack.i.h.bf16 %v7201_v28  ;;  %v5174_v8 = vunpack.i.l.bf16 %v7201_v28 }
 0x229   : > { %3517 = vmatmul.mubr.bf16.vlgmr.msra.gmra.mrb[0].mxu1 %v3237_v30  ;;  %5402 = vrot.lane.b32.xlu0 %v5401_v55, %s5772_s15  ;;  %v5421_v56 = vpack.i.bf16 %v7245_v37, %v7242_v25  ;;  %v5200_v4 = vunpack.i.h.bf16 %v5198_v3  ;;  %v5199_v51 = vunpack.i.l.bf16 %v5198_v3  ;;  %v3047_v49 = vsel %vm1572_vm5, %v6998_v47, %v5195_v40 }
 0x22a   : > { %5412 = vrot.lane.b32.xlu1 %v5401_v55, %s5768_s14  ;;  %v3046_v61 = vsel %vm1572_vm5, %v7010_v12, %v5194_v42  ;;  %v5160_v55 = vunpack.i.h.bf16 %v7188_v57  ;;  %v5159_v15 = vunpack.i.l.bf16 %v7188_v57  ;;  %v5180_v47 = vunpack.i.h.bf16 %v7207_v46 }
 0x22b   : > { %v3078_v27 = vsel %vm1704_vm12, %v3046_v61, %v5199_v51  ;;  %v3079_v30 = vsel %vm1704_vm12, %v3047_v49, %v5200_v4  ;;  %v5179_v12 = vunpack.i.l.bf16 %v7207_v46  ;;  %v3143_v57 = vsel %vm1572_vm5, %v7005_v48, %v5174_v8 }
 0x22c   : > { %v7288_v3 = vsel %vm3108_vm0, %v3078_v27, %v5159_v15 }
 0x22d   : > { %5407 = vrot.lane.b32.xlu0 %v5406_v41, %s5768_s14 }
 0x22e   : > { %5417 = vrot.lane.b32.xlu1 %v5406_v41, %s5771_s29 }
 0x230   : > { %v4392_v38 = vpop.f32.mrb[20].mxu0 }
 0x231   : > { %v1972_v34 = vadd.f32 %v4392_v38, %v6930_v33  ;;  %v1963_v35 = vpop.f32.mrb[21].mxu0  ;;  %5422 = vrot.lane.b32.xlu0 %v5421_v56, %s5772_s15  ;;  %v7291_v38 = vsel %vm3108_vm0, %v3079_v30, %v5160_v55 }
 0x232   : > { %v1964_v58 = vadd.f32 %v6930_v33, %v1963_v35  ;;  %v4393_v19 = vpop.f32.mrb[22].mxu0  ;;  %5432 = vrot.lane.b32.xlu1 %v5421_v56, %s5768_s14 }
 0x233   : > { %v2032_v2 = vmax.f32 %v1972_v34, 0.0  ;;  %v1975_v22 = vadd.f32 %v4393_v19, %v6930_v33  ;;  %v1966_v54 = vpop.f32.mrb[23].mxu0  ;;  %v7254_v7 = vpop.permute.xlu0 %5202  ;;  %v3144_v34 = vsel %vm1572_vm5, %v7008_v6, %v5175_v44  ;;  %v5184_v6 = vunpack.i.l.bf16 %v7219_v50 }
 0x234   : > { %v2030_v52 = vmax.f32 %v1964_v58, 0.0  ;;  %v1967_v39 = vadd.f32 %v6930_v33, %v1966_v54  ;;  %v7259_v14 = vpop.permute.xlu1 %5207 }
 0x235   : > { %2106 = vst.msk [vmem:[#allocation3 + $0x121] sm:$0xff] %vm1572_vm5, %v2032_v2  ;;  %v2033_v53 = vmax.f32 %v1975_v22, 0.0  ;;  %5427 = vrot.lane.b32.xlu0 %v5426_v45, %s5768_s14  ;;  %v5185_v2 = vunpack.i.h.bf16 %v7219_v50  ;;  %v7392_v50 = vld [vmem:[%s8159_s2] ss:$0 sm:$0xff] }
 0x236   : > { %2104 = vst.msk [vmem:[#allocation3 + $0x109] sm:$0xff] %vm1572_vm5, %v2030_v52  ;;  %v2031_v62 = vmax.f32 %v1967_v39, 0.0  ;;  %5437 = vrot.lane.b32.xlu1 %v5426_v45, %s5771_s29 }
 0x237   : > { %2107 = vst.msk [vmem:[#allocation3 + $0x129] sm:$0xff] %vm1572_vm5, %v2033_v53  ;;  %v5213_v36 = vpop.permute.xlu0 %5212  ;;  %v3240_v53 = vpack.c.bf16 %v7291_v38, %v7288_v3 }
 0x238   : > { %2105 = vst.msk [vmem:[#allocation3 + $0x111] sm:$0xff] %vm1572_vm5, %v2031_v62  ;;  %v7267_v33 = vpop.permute.xlu1 %5217  ;;  %v5215_v39 = vunpack.i.h.bf16 %v5213_v36  ;;  %v5214_v40 = vunpack.i.l.bf16 %v5213_v36 }
 0x23a   : > { %v3176_v15 = vsel %vm1704_vm12, %v3144_v34, %v5215_v39  ;;  %v3175_v3 = vsel %vm1704_vm12, %v3143_v57, %v5214_v40  ;;  %v5205_v57 = vunpack.i.h.bf16 %v7254_v7 }
 0x23b   : > { %v7277_v21 = vpop.permute.xlu0 %5222 }
 0x23c   : > { %v7285_v5 = vpop.permute.xlu1 %5232  ;;  %v2152_v41 = vld [vmem:[#allocation3 + $0x120] sm:$0xff] }
 0x23d   : > { %v7281_v31 = vld [vmem:[#allocation3 + $0x108] sm:$0xff]  ;;  %v2454_v45 = vrot.slane %v2152_v41, 2  ;;  %v2278_v4 = vrot.slane %v2152_v41, 1 }
 0x23e   : > { %v2153_v28 = vld [vmem:[#allocation3 + $0x128] sm:$0xff]  ;;  %v2449_v22 = vrot.slane %v7281_v31, 2  ;;  %v2154_v48 = vld [vmem:[#allocation3 + $0x130] sm:$0x3] }
 0x23f   : > { %v7297_v35 = vpop.permute.xlu0 %5227  ;;  %v5441_v58 = vpack.i.bf16 %v2153_v28, %v2152_v41  ;;  %v7299_v56 = vld [vmem:[#allocation3 + $0x110] sm:$0xff]  ;;  %v7301_v19 = vld [vmem:[#allocation3 + $0x118] sm:$0x3]  ;;  %v2455_v61 = vrot.slane %v2153_v28, 2  ;;  %v2457_v30 = vrot.slane %v2154_v48, 2  ;;  %v2279_v55 = vrot.slane %v2153_v28, 1 }
 0x240   : > { %v2450_v54 = vrot.slane %v7299_v56, 2  ;;  %v2452_v52 = vrot.slane %v7301_v19, 2  ;;  %v5451_v49 = vpack.i.bf16 %v7299_v56, %v7281_v31  ;;  %v7322_v44 = vpop.permute.xlu1 %5237  ;;  %v2281_v38 = vrot.slane %v2154_v48, 1 }
 0x241   : > { %5442 = vrot.lane.b32.xlu0 %v5441_v58, %s5771_s29  ;;  %5447 = vrot.lane.b32.xlu1 %v5441_v58, %s5772_s15  ;;  %v2456_v41 = vsel %vm695_vm3, %v2454_v45, %v2455_v61  ;;  %v2458_v58 = vsel %vm695_vm3, %v2455_v61, %v2457_v30 }
 0x242   : > { %v7313_v42 = vsel %vm695_vm3, %v2449_v22, %v2450_v54  ;;  %v7316_v62 = vsel %vm695_vm3, %v2450_v54, %v2452_v52  ;;  %v7332_v22 = vsel %vm518_vm4, %v2278_v4, %v2279_v55  ;;  %v5204_v54 = vunpack.i.l.bf16 %v7254_v7 }
 0x243   : > { %v5243_v51 = vpop.permute.xlu0 %5242  ;;  %v3266_v36 = vpack.c.bf16 %v7316_v62, %v7313_v42  ;;  %v3269_v52 = vpack.c.bf16 %v2458_v58, %v2456_v41  ;;  %v7339_v40 = vsel %vm518_vm4, %v2279_v55, %v2281_v38  ;;  %v5220_v4 = vunpack.i.h.bf16 %v7267_v33 }
 0x244   : > { %v5245_v8 = vunpack.i.h.bf16 %v5243_v51  ;;  %v5244_v27 = vunpack.i.l.bf16 %v5243_v51  ;;  %v5461_v51 = vpack.i.bf16 %v7339_v40, %v7332_v22  ;;  %v5224_v7 = vunpack.i.l.bf16 %v7277_v21 }
 0x245   : > { %4423 = vmatmul.mubr.msk.bf16.gmra.mrb[48].mxu0 %vm1572_vm5, %v3266_v36  ;;  %5452 = vrot.lane.b32.xlu0 %v5451_v49, %s5771_s29  ;;  %v5219_v36 = vunpack.i.l.bf16 %v7267_v33  ;;  %v2274_v33 = vrot.slane %v7299_v56, 1  ;;  %v5466_v55 = vpack.i.bf16 %v2458_v58, %v2456_v41  ;;  %v3049_v56 = vsel %vm1572_vm5, %v6984_v10, %v5180_v47 }
 0x246   : > { %5457 = vrot.lane.b32.xlu1 %v5451_v49, %s5772_s15  ;;  %v3207_v28 = vsel %vm3108_vm0, %v3175_v3, %v5244_v27  ;;  %v3208_v34 = vsel %vm3108_vm0, %v3176_v15, %v5245_v8  ;;  %v5225_v49 = vunpack.i.h.bf16 %v7277_v21  ;;  %4426 = vmatprep.mubr.msk.bf16.mxu0 %vm1572_vm5, %v3269_v52  ;;  %v7348_v8 = vpop.permute.xlu1 %5252  ;;  %v2273_v3 = vrot.slane %v7281_v31, 1 }
 0x247   : > { %v5248_v39 = vpop.permute.xlu0 %5247  ;;  %v3241_v61 = vpack.c.bf16 %v3208_v34, %v3207_v28  ;;  %v3048_v41 = vsel %vm1572_vm5, %v6981_v29, %v5179_v12 }
 0x248   : > { %v5250_v48 = vunpack.i.h.bf16 %v5248_v39  ;;  %v5249_v45 = vunpack.i.l.bf16 %v5248_v39  ;;  %v7372_v31 = vsel %vm518_vm4, %v2273_v3, %v2274_v33  ;;  %v5210_v3 = vunpack.i.h.bf16 %v7259_v14 }
 0x249   : > { %5462 = vrot.lane.b32.xlu0 %v5461_v51, %s5772_s15  ;;  %3524 = vmatprep.mubr.bf16.mxu1 %v3241_v61 }
 0x24a   : > { %v3146_v27 = vsel %vm1572_vm5, %v7093_v17, %v5250_v48  ;;  %v3145_v30 = vsel %vm1572_vm5, %v7090_v18, %v5249_v45  ;;  %5472 = vrot.lane.b32.xlu1 %v5461_v51, %s5768_s14  ;;  %3525 = vmatmul.mubr.bf16.gmra.mrb[4].mxu1 %v3240_v53  ;;  %v2276_v18 = vrot.slane %v7301_v19, 1  ;;  %v3080_v53 = vsel %vm1704_vm12, %v3048_v41, %v5184_v6  ;;  %v5258_v47 = vpop.permute.xlu1 %5257 }
 0x24b   : > { %v3177_v15 = vsel %vm1704_vm12, %v3145_v30, %v5204_v54  ;;  %v3178_v21 = vsel %vm1704_vm12, %v3146_v27, %v5205_v57  ;;  %v3081_v19 = vsel %vm1704_vm12, %v3049_v56, %v5185_v2  ;;  %v3113_v29 = vsel %vm3108_vm0, %v3080_v53, %v5219_v36 }
 0x24c   : > { %v3209_v17 = vsel %vm3108_vm0, %v3177_v15, %v5224_v7  ;;  %v3210_v38 = vsel %vm3108_vm0, %v3178_v21, %v5225_v49  ;;  %v7383_v10 = vsel %vm518_vm4, %v2274_v33, %v2276_v18  ;;  %v3114_v46 = vsel %vm3108_vm0, %v3081_v19, %v5220_v4 }
 0x24d   : > { %v3244_v58 = vpack.c.bf16 %v3210_v38, %v3209_v17  ;;  %5467 = vrot.lane.b32.xlu0 %v5466_v55, %s5768_s14  ;;  %v5481_v6 = vpack.i.bf16 %v7383_v10, %v7372_v31  ;;  %v3243_v54 = vpack.c.bf16 %v3114_v46, %v3113_v29  ;;  %v5486_v49 = vpack.i.bf16 %v7316_v62, %v7313_v42 }
 0x24e   : > { %5477 = vrot.lane.b32.xlu1 %v5466_v55, %s5771_s29  ;;  %v5255_v42 = vunpack.i.h.bf16 %v7348_v8  ;;  %v5254_v62 = vunpack.i.l.bf16 %v7348_v8  ;;  %v5260_v33 = vunpack.i.h.bf16 %v5258_v47  ;;  %v5259_v55 = vunpack.i.l.bf16 %v5258_v47 }
 0x24f   : > { %3532 = vmatprep.mubr.bf16.mxu1 %v3244_v58  ;;  %v5230_v21 = vunpack.i.h.bf16 %v7297_v35  ;;  %v5229_v17 = vunpack.i.l.bf16 %v7297_v35  ;;  %v5209_v8 = vunpack.i.l.bf16 %v7259_v14  ;;  %v5235_v41 = vunpack.i.h.bf16 %v7285_v5 }
 0x250   : > { %v4396_v12 = vpop.f32.mrb[24].mxu0  ;;  %v3051_v38 = vsel %vm1572_vm5, %v7061_v32, %v5255_v42  ;;  %v3050_v18 = vsel %vm1572_vm5, %v7059_v11, %v5254_v62  ;;  %v5234_v46 = vunpack.i.l.bf16 %v7285_v5  ;;  %v5240_v32 = vunpack.i.h.bf16 %v7322_v44 }
 0x251   : > { %v1988_v2 = vadd.f32 %v7392_v50, %v4396_v12  ;;  %v1979_v28 = vpop.f32.mrb[25].mxu0  ;;  %5482 = vrot.lane.b32.xlu0 %v5481_v6, %s5772_s15  ;;  %v3082_v58 = vsel %vm1704_vm12, %v3050_v18, %v5259_v55  ;;  %v3083_v53 = vsel %vm1704_vm12, %v3051_v38, %v5260_v33 }
 0x252   : > { %v1980_v34 = vadd.f32 %v7392_v50, %v1979_v28  ;;  %5492 = vrot.lane.b32.xlu1 %v5481_v6, %s5768_s14  ;;  %v4397_v57 = vpop.f32.mrb[26].mxu0  ;;  %3533 = vmatmul.mubr.bf16.gmra.mrb[8].mxu1 %v3243_v54  ;;  %v3148_v6 = vsel %vm1572_vm5, %v7077_v60, %v5230_v21 }
 0x253   : > { %v2036_v52 = vmax.f32 %v1988_v2, 0.0  ;;  %v1991_v39 = vadd.f32 %v7392_v50, %v4397_v57  ;;  %v1982_v48 = vpop.f32.mrb[27].mxu0  ;;  %v7399_v45 = vpop.permute.xlu0 %5262  ;;  %v3147_v57 = vsel %vm1572_vm5, %v7074_v16, %v5229_v17 }
 0x254   : > { %v2034_v51 = vmax.f32 %v1980_v34, 0.0  ;;  %v1983_v4 = vadd.f32 %v7392_v50, %v1982_v48  ;;  %v7402_v36 = vpop.permute.xlu1 %5267  ;;  %v3116_v48 = vsel %vm3108_vm0, %v3083_v53, %v5210_v3 }
 0x255   : > { %2110 = vst.msk [vmem:[#allocation3 + $0x151] sm:$0xff] %vm1572_vm5, %v2036_v52  ;;  %v2037_v61 = vmax.f32 %v1991_v39, 0.0  ;;  %5487 = vrot.lane.b32.xlu0 %v5486_v49, %s5768_s14  ;;  %v3115_v39 = vsel %vm3108_vm0, %v3082_v58, %v5209_v8 }
 0x256   : > { %2108 = vst.msk [vmem:[#allocation3 + $0x139] sm:$0xff] %vm1572_vm5, %v2034_v51  ;;  %v2035_v7 = vmax.f32 %v1983_v4, 0.0  ;;  %5497 = vrot.lane.b32.xlu1 %v5486_v49, %s5771_s29 }
 0x257   : > { %2111 = vst.msk [vmem:[#allocation3 + $0x159] sm:$0xff] %vm1572_vm5, %v2037_v61  ;;  %v7411_v27 = vpop.permute.xlu0 %5272 }
 0x258   : > { %2109 = vst.msk [vmem:[#allocation3 + $0x141] sm:$0xff] %vm1572_vm5, %v2035_v7  ;;  %v7414_v30 = vpop.permute.xlu1 %5277  ;;  %v5275_v54 = vunpack.i.h.bf16 %v7411_v27  ;;  %v5274_v60 = vunpack.i.l.bf16 %v7411_v27 }
 0x25b   : > { %v7418_v15 = vpop.permute.xlu0 %5282 }
 0x25c   : > { %v7433_v19 = vpop.permute.xlu1 %5292  ;;  %v2158_v29 = vld [vmem:[#allocation3 + $0x150] sm:$0xff] }
 0x25d   : > { %v7427_v56 = vld [vmem:[#allocation3 + $0x138] sm:$0xff]  ;;  %v2464_v49 = vrot.slane %v2158_v29, 2  ;;  %v2288_v62 = vrot.slane %v2158_v29, 1 }
 0x25e   : > { %v2159_v35 = vld [vmem:[#allocation3 + $0x158] sm:$0xff]  ;;  %v2459_v2 = vrot.slane %v7427_v56, 2  ;;  %v2160_v52 = vld [vmem:[#allocation3 + $0x160] sm:$0x3]  ;;  %v2283_v3 = vrot.slane %v7427_v56, 1 }
 0x25f   : > { %v7437_v47 = vpop.permute.xlu0 %5287  ;;  %v5501_v11 = vpack.i.bf16 %v2159_v35, %v2158_v29  ;;  %v7439_v12 = vld [vmem:[#allocation3 + $0x140] sm:$0xff]  ;;  %v2157_v14 = vld [vmem:[#allocation3 + $0x148] sm:$0x3]  ;;  %v2465_v42 = vrot.slane %v2159_v35, 2  ;;  %v2467_v55 = vrot.slane %v2160_v52, 2  ;;  %v2289_v21 = vrot.slane %v2159_v35, 1 }
 0x260   : > { %v2460_v28 = vrot.slane %v7439_v12, 2  ;;  %v2462_v34 = vrot.slane %v2157_v14, 2  ;;  %v5511_v7 = vpack.i.bf16 %v7439_v12, %v7427_v56  ;;  %v7457_v33 = vpop.permute.xlu1 %5297  ;;  %v2291_v18 = vrot.slane %v2160_v52, 1 }
 0x261   : > { %5502 = vrot.lane.b32.xlu0 %v5501_v11, %s5771_s29  ;;  %5507 = vrot.lane.b32.xlu1 %v5501_v11, %s5772_s15  ;;  %v2466_v38 = vsel %vm695_vm3, %v2464_v49, %v2465_v42  ;;  %v2468_v8 = vsel %vm695_vm3, %v2465_v42, %v2467_v55  ;;  %v7466_v58 = vsel %vm518_vm4, %v2288_v62, %v2289_v21  ;;  %v2284_v53 = vrot.slane %v7439_v12, 1 }
 0x262   : > { %v2461_v51 = vsel %vm695_vm3, %v2459_v2, %v2460_v28  ;;  %v2463_v4 = vsel %vm695_vm3, %v2460_v28, %v2462_v34  ;;  %v2286_v29 = vrot.slane %v2157_v14, 1  ;;  %v5265_v35 = vunpack.i.h.bf16 %v7399_v45 }
 0x263   : > { %v5303_v61 = vpop.permute.xlu0 %5302  ;;  %v3272_v16 = vpack.c.bf16 %v2463_v4, %v2461_v51  ;;  %v3179_v11 = vsel %vm1704_vm12, %v3147_v57, %v5274_v60  ;;  %v3275_v2 = vpack.c.bf16 %v2468_v8, %v2466_v38  ;;  %v7472_v34 = vsel %vm518_vm4, %v2289_v21, %v2291_v18 }
 0x264   : > { %v5305_v17 = vunpack.i.h.bf16 %v5303_v61  ;;  %v5304_v27 = vunpack.i.l.bf16 %v5303_v61  ;;  %v5521_v61 = vpack.i.bf16 %v7472_v34, %v7466_v58  ;;  %v3180_v14 = vsel %vm1704_vm12, %v3148_v6, %v5275_v54  ;;  %v7486_v42 = vpop.permute.xlu1 %5312 }
 0x265   : > { %4427 = vmatmul.mubr.msk.bf16.gmra.mrb[52].mxu0 %vm1572_vm5, %v3272_v16  ;;  %5512 = vrot.lane.b32.xlu0 %v5511_v7, %s5771_s29  ;;  %v7477_v16 = vsel %vm518_vm4, %v2283_v3, %v2284_v53  ;;  %v7483_v57 = vsel %vm518_vm4, %v2284_v53, %v2286_v29  ;;  %v5239_v54 = vunpack.i.l.bf16 %v7322_v44  ;;  %v5285_v21 = vunpack.i.h.bf16 %v7418_v15 }
 0x266   : > { %5517 = vrot.lane.b32.xlu1 %v5511_v7, %s5772_s15  ;;  %v5264_v7 = vunpack.i.l.bf16 %v7399_v45  ;;  %4430 = vmatprep.mubr.msk.bf16.mxu0 %vm1572_vm5, %v3275_v2  ;;  %v3211_v60 = vsel %vm3108_vm0, %v3179_v11, %v5304_v27  ;;  %v5541_v45 = vpack.i.bf16 %v7483_v57, %v7477_v16  ;;  %v3212_v6 = vsel %vm3108_vm0, %v3180_v14, %v5305_v17 }
 0x267   : > { %v5308_v28 = vpop.permute.xlu0 %5307  ;;  %v5284_v3 = vunpack.i.l.bf16 %v7418_v15  ;;  %v3247_v27 = vpack.c.bf16 %v3212_v6, %v3211_v60  ;;  %v5526_v18 = vpack.i.bf16 %v2468_v8, %v2466_v38  ;;  %v5280_v29 = vunpack.i.h.bf16 %v7414_v30  ;;  %v5680_v38 = vld [vmem:[#allocation3 + $0x60] sm:$0xff] }
 0x268   : > { %v5310_v52 = vunpack.i.h.bf16 %v5308_v28  ;;  %v5309_v49 = vunpack.i.l.bf16 %v5308_v28  ;;  %v5279_v11 = vunpack.i.l.bf16 %v7414_v30  ;;  %v5546_v15 = vpack.i.bf16 %v2463_v4, %v2461_v51 }
 0x269   : > { %5522 = vrot.lane.b32.xlu0 %v5521_v61, %s5772_s15  ;;  %3540 = vmatprep.mubr.bf16.mxu1 %v3247_v27  ;;  %v3052_v30 = vsel %vm1572_vm5, %v5680_v38, %v5234_v46  ;;  %v5294_v27 = vunpack.i.l.bf16 %v7433_v19 }
 0x26a   : > { %v3150_v62 = vsel %vm1572_vm5, %v7135_v20, %v5310_v52  ;;  %v3149_v55 = vsel %vm1572_vm5, %v7132_v63, %v5309_v49  ;;  %5542 = vrot.lane.b32.xlu1 %v5541_v45, %s5768_s14  ;;  %v3246_v20 = vpack.c.bf16 %v3116_v48, %v3115_v39  ;;  %v5679_v39 = vld [vmem:[#allocation3 + $0x68] sm:$0xff]  ;;  %v3084_v8 = vsel %vm1704_vm12, %v3052_v30, %v5239_v54  ;;  %v7517_v52 = vpop.permute.xlu1 %5317  ;;  %v5682_v30 = vld [vmem:[#allocation3 + $0x90] sm:$0xff] }
 0x26b   : > { %v3181_v63 = vsel %vm1704_vm12, %v3149_v55, %v5264_v7  ;;  %v3182_v53 = vsel %vm1704_vm12, %v3150_v62, %v5265_v35  ;;  %v3053_v48 = vsel %vm1572_vm5, %v5679_v39, %v5235_v41  ;;  %v3117_v49 = vsel %vm3108_vm0, %v3084_v8, %v5279_v11 }
 0x26c   : > { %v3213_v17 = vsel %vm3108_vm0, %v3181_v63, %v5284_v3  ;;  %v3214_v2 = vsel %vm3108_vm0, %v3182_v53, %v5285_v21  ;;  %3541 = vmatmul.mubr.bf16.gmra.mrb[12].mxu1 %v3246_v20  ;;  %v3085_v35 = vsel %vm1704_vm12, %v3053_v48, %v5240_v32  ;;  %v5290_v20 = vunpack.i.h.bf16 %v7437_v47  ;;  %v5681_v48 = vld [vmem:[#allocation3 + $0x98] sm:$0xff] }
 0x26d   : > { %5527 = vrot.lane.b32.xlu0 %v5526_v18, %s5768_s14  ;;  %v3250_v28 = vpack.c.bf16 %v3214_v2, %v3213_v17  ;;  %v3118_v5 = vsel %vm3108_vm0, %v3085_v35, %v5280_v29  ;;  %v5315_v63 = vunpack.i.h.bf16 %v7486_v42  ;;  %v5314_v53 = vunpack.i.l.bf16 %v7486_v42  ;;  %v7551_v2 = vld [vmem:[#allocation3 + $0x198] sm:$0xff] }
 0x26e   : > { %5547 = vrot.lane.b32.xlu1 %v5546_v15, %s5771_s29  ;;  %v3249_v55 = vpack.c.bf16 %v3118_v5, %v3117_v49  ;;  %v5320_v29 = vunpack.i.h.bf16 %v7517_v52  ;;  %v5319_v11 = vunpack.i.l.bf16 %v7517_v52  ;;  %v5269_v42 = vunpack.i.l.bf16 %v7402_v36 }
 0x26f   : > { %3548 = vmatprep.mubr.bf16.mxu1 %v3250_v28  ;;  %v7564_v8 = vsel %vm1572_vm5, %v5682_v30, %v5294_v27 }
 0x270   : > { %v4400_v51 = vpop.f32.mrb[28].mxu0 }
 0x271   : > { %v2004_v4 = vadd.f32 %v7392_v50, %v4400_v51  ;;  %v1995_v41 = vpop.f32.mrb[29].mxu0  ;;  %5532 = vrot.lane.b32.xlu0 %v5541_v45, %s5772_s15  ;;  %v5299_v51 = vunpack.i.l.bf16 %v7457_v33 }
 0x272   : > { %v1996_v46 = vadd.f32 %v7392_v50, %v1995_v41  ;;  %v4401_v44 = vpop.f32.mrb[30].mxu0  ;;  %5552 = vrot.lane.b32.xlu1 %v5521_v61, %s5768_s14  ;;  %v5295_v61 = vunpack.i.h.bf16 %v7433_v19  ;;  %v5289_v19 = vunpack.i.l.bf16 %v7437_v47  ;;  %v3152_v47 = vsel %vm1572_vm5, %v7121_v24, %v5290_v20  ;;  %v5684_v41 = vld [vmem:[#allocation3 + $0x78] sm:$0xff] }
 0x273   : > { %v2040_v7 = vmax.f32 %v2004_v4, 0.0  ;;  %v2007_v32 = vadd.f32 %v7392_v50, %v4401_v44  ;;  %v1998_v14 = vpop.f32.mrb[31].mxu0  ;;  %v7526_v60 = vpop.permute.xlu0 %5322  ;;  %v5683_v4 = vld [vmem:[#allocation3 + $0x80] sm:$0xff]  ;;  %v3054_v49 = vsel %vm1572_vm5, %v5684_v41, %v5314_v53 }
 0x274   : > { %v2038_v62 = vmax.f32 %v1996_v46, 0.0  ;;  %v1999_v6 = vadd.f32 %v7392_v50, %v1998_v14  ;;  %v7530_v54 = vpop.permute.xlu1 %5327  ;;  %3549 = vmatmul.mubr.bf16.gmra.mrb[16].mxu1 %v3249_v55  ;;  %v7561_v38 = vsel %vm1572_vm5, %v5681_v48, %v5295_v61 }
 0x275   : > { %2114 = vst.msk [vmem:[#allocation3 + $0x181] sm:$0xff] %vm1572_vm5, %v2040_v7  ;;  %v2041_v21 = vmax.f32 %v2007_v32, 0.0  ;;  %5537 = vrot.lane.b32.xlu0 %v5546_v15, %s5768_s14  ;;  %v5270_v15 = vunpack.i.h.bf16 %v7402_v36  ;;  %v3055_v36 = vsel %vm1572_vm5, %v5683_v4, %v5315_v63  ;;  %v3086_v7 = vsel %vm1704_vm12, %v3054_v49, %v5319_v11 }
 0x276   : > { %2112 = vst.msk [vmem:[#allocation3 + $0x169] sm:$0xff] %vm1572_vm5, %v2038_v62  ;;  %v2039_v45 = vmax.f32 %v1999_v6, 0.0  ;;  %5557 = vrot.lane.b32.xlu1 %v5526_v18, %s5771_s29  ;;  %v7553_v18 = vld [vmem:[#allocation3 + $0x1a0] sm:$0xff]  ;;  %v3087_v32 = vsel %vm1704_vm12, %v3055_v36, %v5320_v29  ;;  %v3119_v48 = vsel %vm3108_vm0, %v3086_v7, %v5269_v42 }
 0x277   : > { %2115 = vst.msk [vmem:[#allocation3 + $0x189] sm:$0xff] %vm1572_vm5, %v2041_v21  ;;  %v7536_v3 = vpop.permute.xlu0 %5332  ;;  %v3151_v21 = vsel %vm1572_vm5, %v7118_v23, %v5289_v19  ;;  %v3120_v30 = vsel %vm3108_vm0, %v3087_v32, %v5270_v15 }
 0x278   : > { %2113 = vst.msk [vmem:[#allocation3 + $0x171] sm:$0xff] %vm1572_vm5, %v2039_v45  ;;  %v7540_v50 = vpop.permute.xlu1 %5337  ;;  %v5335_v63 = vunpack.i.h.bf16 %v7536_v3  ;;  %v5334_v53 = vunpack.i.l.bf16 %v7536_v3 }
 0x27a   : > { %v3183_v35 = vsel %vm1704_vm12, %v3151_v21, %v5334_v53  ;;  %v3184_v42 = vsel %vm1704_vm12, %v3152_v47, %v5335_v63  ;;  %v5325_v47 = vunpack.i.h.bf16 %v7526_v60 }
 0x27b   : > { %v7549_v17 = vpop.permute.xlu0 %5342 }
 0x27c   : > { %v7574_v5 = vpop.permute.xlu1 %5352  ;;  %v7576_v46 = vld [vmem:[#allocation3 + $0x180] sm:$0xff] }
 0x27d   : > { %v7567_v52 = vld [vmem:[#allocation3 + $0x168] sm:$0xff]  ;;  %v2706_v11 = vrot.slane %v7576_v46, 2 }
 0x27e   : > { %v7578_v44 = vld [vmem:[#allocation3 + $0x188] sm:$0xff]  ;;  %v2469_v61 = vrot.slane %v7567_v52, 2  ;;  %v7597_v20 = vld [vmem:[#allocation3 + $0x190] sm:$0x3]  ;;  %v2293_v19 = vrot.slane %v7567_v52, 1 }
 0x27f   : > { %v7582_v14 = vpop.permute.xlu0 %5347  ;;  %v7586_v24 = vpack.i.bf16 %v7578_v44, %v7576_v46  ;;  %v7588_v62 = vld [vmem:[#allocation3 + $0x170] sm:$0xff]  ;;  %v2163_v55 = vld [vmem:[#allocation3 + $0x178] sm:$0x3]  ;;  %v2707_v6 = vrot.slane %v7578_v44, 2  ;;  %v2709_v41 = vrot.slane %v7597_v20, 2 }
 0x280   : > { %v5586_v45 = vpack.i.bf16 %v7588_v62, %v7567_v52  ;;  %v2470_v27 = vrot.slane %v7588_v62, 2  ;;  %v2472_v29 = vrot.slane %v2163_v55, 2  ;;  %v7614_v49 = vpop.permute.xlu1 %5357  ;;  %v2296_v7 = vrot.slane %v2163_v55, 1 }
 0x281   : > { %5562 = vrot.lane.b32.xlu0 %v7586_v24, %s5771_s29  ;;  %v7611_v3 = vsel %vm695_vm3, %v2706_v11, %v2707_v6  ;;  %v7621_v15 = vsel %vm695_vm3, %v2707_v6, %v2709_v41  ;;  %v3252_v55 = vpack.c.bf16 %v3120_v30, %v3119_v48 }
 0x282   : > { %5587 = vrot.lane.b32.xlu1 %v5586_v45, %s5772_s15  ;;  %v2471_v23 = vsel %vm695_vm3, %v2469_v61, %v2470_v27  ;;  %v2473_v36 = vsel %vm695_vm3, %v2470_v27, %v2472_v29  ;;  %v2294_v61 = vrot.slane %v7588_v62, 1  ;;  %v3281_v32 = vpack.c.bf16 %v7621_v15, %v7611_v3 }
 0x283   : > { %v5363_v4 = vpop.permute.xlu0 %5362  ;;  %v3278_v28 = vpack.c.bf16 %v2473_v36, %v2471_v23 }
 0x284   : > { %v5365_v0 = vunpack.i.h.bf16 %v5363_v4  ;;  %v5364_v39 = vunpack.i.l.bf16 %v5363_v4  ;;  %v7627_v27 = vsel %vm518_vm4, %v2293_v19, %v2294_v61  ;;  %v5324_v19 = vunpack.i.l.bf16 %v7526_v60  ;;  %v7643_v41 = vpop.permute.xlu1 %5372 }
 0x285   : > { %5567 = vrot.lane.b32.xlu0 %v5586_v45, %s5771_s29  ;;  %4431 = vmatmul.mubr.msk.bf16.gmra.mrb[56].mxu0 %vm1572_vm5, %v3278_v28  ;;  %v7633_v45 = vsel %vm518_vm4, %v2294_v61, %v2296_v7  ;;  %v5344_v4 = vunpack.i.l.bf16 %v7549_v17  ;;  %v2670_v60 = vrot.slane %v7578_v44, 1  ;;  %v8169_v44 = vunpack.i.h.bf16 %v7457_v33  ;;  %v2169_v33 = vld [vmem:[#allocation3 + $0x1a8] sm:$0x3] }
 0x286   : > { %v3215_v29 = vsel %vm3108_vm0, %v3183_v35, %v5364_v39  ;;  %v3216_v21 = vsel %vm3108_vm0, %v3184_v42, %v5365_v0  ;;  %4434 = vmatprep.mubr.msk.bf16.mxu0 %vm1572_vm5, %v3281_v32  ;;  %v5596_v28 = vpack.i.bf16 %v7633_v45, %v7627_v27  ;;  %v5340_v39 = vunpack.i.h.bf16 %v7540_v50 }
 0x287   : > { %v5368_v6 = vpop.permute.xlu0 %5367  ;;  %v3253_v63 = vpack.c.bf16 %v3216_v21, %v3215_v29  ;;  %v5339_v0 = vunpack.i.l.bf16 %v7540_v50  ;;  %v5345_v35 = vunpack.i.h.bf16 %v7549_v17  ;;  %v5606_v50 = vpack.i.bf16 %v2473_v36, %v2471_v23 }
 0x288   : > { %v5370_v53 = vunpack.i.h.bf16 %v5368_v6  ;;  %v5369_v11 = vunpack.i.l.bf16 %v5368_v6  ;;  %5597 = vrot.lane.b32.xlu1 %v5596_v28, %s5768_s14  ;;  %v2669_v42 = vrot.slane %v7576_v46, 1  ;;  %v3089_v23 = vsel %vm1704_vm12, %v7561_v38, %v8169_v44 }
 0x289   : > { %3556 = vmatprep.mubr.bf16.mxu1 %v3253_v63  ;;  %5572 = vrot.lane.b32.xlu0 %v5596_v28, %s5772_s15  ;;  %v8170_v21 = vrot.slane %v7553_v18, 2  ;;  %v3010_v63 = vrot.slane %v2169_v33, 2 }
 0x28a   : > { %v3154_v48 = vsel %vm1572_vm5, %v7177_v9, %v5370_v53  ;;  %v3153_v30 = vsel %vm1572_vm5, %v7174_v13, %v5369_v11  ;;  %3557 = vmatmul.mubr.bf16.gmra.mrb[20].mxu1 %v3252_v55  ;;  %v2672_v9 = vrot.slane %v7597_v20, 1  ;;  %v3088_v13 = vsel %vm1704_vm12, %v7564_v8, %v5299_v51  ;;  %v5378_v51 = vpop.permute.xlu1 %5377 }
 0x28b   : > { %v3185_v61 = vsel %vm1704_vm12, %v3153_v30, %v5324_v19  ;;  %v3186_v17 = vsel %vm1704_vm12, %v3154_v48, %v5325_v47  ;;  %v7667_v29 = vsel %vm518_vm4, %v2669_v42, %v2670_v60  ;;  %v3121_v20 = vsel %vm3108_vm0, %v3088_v13, %v5339_v0 }
 0x28c   : > { %v3217_v7 = vsel %vm3108_vm0, %v3185_v61, %v5344_v4  ;;  %v3218_v32 = vsel %vm3108_vm0, %v3186_v17, %v5345_v35  ;;  %5607 = vrot.lane.b32.xlu1 %v5606_v50, %s5771_s29  ;;  %v7672_v46 = vsel %vm518_vm4, %v2670_v60, %v2672_v9  ;;  %v3122_v8 = vsel %vm3108_vm0, %v3089_v23, %v5340_v39 }
 0x28d   : > { %v3256_v36 = vpack.c.bf16 %v3218_v32, %v3217_v7  ;;  %5577 = vrot.lane.b32.xlu0 %v5606_v50, %s5768_s14  ;;  %v5581_v38 = vpack.i.bf16 %v7672_v46, %v7667_v29  ;;  %v8171_v47 = vrot.slane %v7551_v2, 2  ;;  %v3255_v55 = vpack.c.bf16 %v3122_v8, %v3121_v20  ;;  %v5685_v8 = vld [vmem:[#allocation3 + $0xb0] sm:$0xff] }
 0x28e   : > { %v8172_v28 = vmov %v8170_v21  ;;  %v2907_v19 = vrot.slane %v7553_v18, 1  ;;  %v2906_v39 = vrot.slane %v7551_v2, 1  ;;  %v2909_v0 = vrot.slane %v2169_v33, 1 }
 0x28f   : > { %3564 = vmatprep.mubr.bf16.mxu1 %v3256_v36  ;;  %v3009_v6 = vsel %vm695_vm3, %v8171_v47, %v8170_v21  ;;  %v3011_v53 = vsel %vm695_vm3, %v8172_v28, %v3010_v63  ;;  %v5601_v48 = vpack.i.bf16 %v7553_v18, %v7551_v2  ;;  %v5375_v2 = vunpack.i.h.bf16 %v7643_v41 }
 0x290   : > { %5617 = vrot.lane.b32.xlu1 %v7586_v24, %s5772_s15  ;;  %v3284_v35 = vpack.c.bf16 %v3011_v53, %v3009_v6  ;;  %v5591_v24 = vpack.i.bf16 %v7621_v15, %v7611_v3  ;;  %v2908_v30 = vsel %vm518_vm4, %v2906_v39, %v2907_v19  ;;  %v2910_v60 = vsel %vm518_vm4, %v2907_v19, %v2909_v0 }
 0x291   : > { %5582 = vrot.lane.b32.xlu0 %v5581_v38, %s5772_s15  ;;  %v5611_v15 = vpack.i.bf16 %v2910_v60, %v2908_v30  ;;  %v5374_v18 = vunpack.i.l.bf16 %v7643_v41  ;;  %v5380_v13 = vunpack.i.h.bf16 %v5378_v51  ;;  %v5379_v44 = vunpack.i.l.bf16 %v5378_v51  ;;  %v5686_v38 = vld [vmem:[#allocation3 + $0xa8] sm:$0xff] }
 0x292   : > { %3565 = vmatmul.mubr.bf16.gmra.mrb[24].mxu1 %v3255_v55  ;;  %4435 = vmatmul.mubr.msk.bf16.gmra.mrb[60].mxu0 %vm1572_vm5, %v3284_v35  ;;  %v5350_v36 = vunpack.i.h.bf16 %v7582_v14  ;;  %v5349_v20 = vunpack.i.l.bf16 %v7582_v14  ;;  %v3059_v33 = vsel %vm1572_vm5, %v5685_v8, %v5375_v2  ;;  %v5330_v51 = vunpack.i.h.bf16 %v7530_v54 }
 0x293   : > { %v7689_v11 = vpop.permute.xlu0 %5382  ;;  %v7693_v4 = vpop.permute.xlu1 %5387  ;;  %v3058_v21 = vsel %vm1572_vm5, %v5686_v38, %v5374_v18  ;;  %v3091_v63 = vsel %vm1704_vm12, %v3059_v33, %v5380_v13  ;;  %v5329_v55 = vunpack.i.l.bf16 %v7530_v54  ;;  %v5359_v18 = vunpack.i.l.bf16 %v7614_v49 }
 0x294   : > { %v3090_v41 = vsel %vm1704_vm12, %v3058_v21, %v5379_v44  ;;  %v3156_v14 = vsel %vm1572_vm5, %v7163_v43, %v5350_v36  ;;  %v3155_v19 = vsel %vm1572_vm5, %v7160_v59, %v5349_v20  ;;  %v3124_v30 = vsel %vm3108_vm0, %v3091_v63, %v5330_v51  ;;  %v5688_v63 = vld [vmem:[#allocation3 + $0xc0] sm:$0xff] }
 0x295   : > { %5592 = vrot.lane.b32.xlu0 %v5591_v24, %s5768_s14  ;;  %v5354_v43 = vunpack.i.l.bf16 %v7574_v5  ;;  %v5360_v59 = vunpack.i.h.bf16 %v7614_v49  ;;  %v5385_v20 = vunpack.i.h.bf16 %v7689_v11  ;;  %v5384_v8 = vunpack.i.l.bf16 %v7689_v11  ;;  %s270_s14 = scalar_lea.vmem [#allocation4], %s269_s18 }
 0x297   : > { %v5393_v50 = vpop.permute.xlu0 %5392  ;;  %v7707_v42 = vpop.permute.xlu1 %5397  ;;  %v3060_v51 = vsel %vm1572_vm5, %v5688_v63, %v5354_v43  ;;  %v5390_v63 = vunpack.i.h.bf16 %v7693_v4 }
 0x298   : > { %v7703_v61 = vpop.f32.mrb[32].mxu0  ;;  %v5395_v47 = vunpack.i.h.bf16 %v5393_v50  ;;  %v5394_v6 = vunpack.i.l.bf16 %v5393_v50  ;;  %v5355_v50 = vunpack.i.h.bf16 %v7574_v5  ;;  %v5400_v33 = vunpack.i.h.bf16 %v7707_v42 }
 0x299   : > { %v7705_v17 = vpop.f32.mrb[33].mxu0  ;;  %5602 = vrot.lane.b32.xlu0 %v5601_v48, %s5771_s29  ;;  %v3123_v48 = vsel %vm3108_vm0, %v3090_v41, %v5329_v55  ;;  %v5399_v38 = vunpack.i.l.bf16 %v7707_v42  ;;  %v5687_v41 = vld [vmem:[#allocation3 + $0xc8] sm:$0xff]  ;;  %s3998_s29 = sshll.u32 %s270_s14, 4  ;;  %s8117_s29 = int_to_ptr.vmem [resolvable:$true] %s3998_s29 }
 0x29a   : > { %v7710_v3 = vpop.f32.mrb[34].mxu0  ;;  %v3187_v35 = vsel %vm1704_vm12, %v3155_v19, %v5394_v6  ;;  %v3188_v24 = vsel %vm1704_vm12, %v3156_v14, %v5395_v47  ;;  %v3258_v36 = vpack.c.bf16 %v3124_v30, %v3123_v48  ;;  %v3061_v11 = vsel %vm1572_vm5, %v5687_v41, %v5355_v50  ;;  %s5699_s28 = scalar_lea.vmem %s8117_s29, 16  ;;  %p5706_p0 = scmp.lt.s32.totalorder %s8117_s29, %s5704_s8 }
 0x29b   : > { %v7712_v7 = vpop.f32.mrb[35].mxu0  ;;  %v7714_v32 = vpop.permute.xlu0 %5402  ;;  %p5700_p11 = scmp.ne.s32.totalorder %s8117_s29, %s5699_s28  ;;  %p5707_p1 = scmp.lt.s32.totalorder %s5705_s9, %s5699_s28 }
 0x29c   : > { %v7719_v9 = vpop.permute.xlu1 %5412  ;;  %v5405_v5 = vunpack.i.h.bf16 %v7714_v32  ;;  %v5404_v47 = vunpack.i.l.bf16 %v7714_v32  ;;  %v3093_v32 = vsel %vm1704_vm12, %v3061_v11, %v5360_v59 }
 0x29d   : > { %5612 = vrot.lane.b32.xlu0 %v5611_v15, %s5772_s15  ;;  %p5701_p12 = pnand %p5700_p11, %p5853_p5  ;;  %p5708_p2 = por %p5707_p1, %p5706_p0 }
 0x29f   : > { %v7721_v23 = vpop.permute.xlu0 %5407  ;;  %p5702_p13 = pneg %p5701_p12 }
 0x2a0   : > { %v7731_v28 = vpop.permute.xlu1 %5417 }
 0x2a1   : > { %p5709_p3 = pnand %p5708_p2, %p5702_p13 }
 0x2a3   : > { %v5423_v53 = vpop.permute.xlu0 %5422 }
 0x2a4   : > { %v5425_v39 = vunpack.i.h.bf16 %v5423_v53  ;;  %v5424_v0 = vunpack.i.l.bf16 %v5423_v53  ;;  %v5433_v21 = vpop.permute.xlu1 %5432  ;;  %v3092_v53 = vsel %vm1704_vm12, %v3060_v51, %v5359_v18  ;;  %v5389_v51 = vunpack.i.l.bf16 %v7693_v4 }
 0x2a5   : > { %v3125_v19 = vsel %vm3108_vm0, %v3092_v53, %v5399_v38  ;;  %v5434_v18 = vunpack.i.l.bf16 %v5433_v21 }
 0x2a6   : > { %v3219_v54 = vsel %vm3108_vm0, %v3187_v35, %v5424_v0  ;;  %v3220_v60 = vsel %vm3108_vm0, %v3188_v24, %v5425_v39  ;;  %v3126_v39 = vsel %vm3108_vm0, %v3093_v32, %v5400_v33  ;;  %v5689_v33 = vld [vmem:[#allocation3 + $0xe0] sm:$0xff] }
 0x2a7   : > { %v5428_v15 = vpop.permute.xlu0 %5427  ;;  %v3259_v2 = vpack.c.bf16 %v3220_v60, %v3219_v54  ;;  %v3261_v35 = vpack.c.bf16 %v3126_v39, %v3125_v19 }
 0x2a8   : > { %v5430_v13 = vunpack.i.h.bf16 %v5428_v15  ;;  %v5429_v44 = vunpack.i.l.bf16 %v5428_v15  ;;  %v5438_v0 = vpop.permute.xlu1 %5437 }
 0x2a9   : > { %3572 = vmatprep.mubr.bf16.mxu1 %v3259_v2  ;;  %v5435_v2 = vunpack.i.h.bf16 %v5433_v21 }
 0x2aa   : > { %v3158_v49 = vsel %vm1572_vm5, %v7245_v37, %v5430_v13  ;;  %v3157_v6 = vsel %vm1572_vm5, %v7242_v25, %v5429_v44  ;;  %3573 = vmatmul.mubr.bf16.gmra.mrb[28].mxu1 %v3258_v36  ;;  %v5440_v13 = vunpack.i.h.bf16 %v5438_v0  ;;  %v5439_v44 = vunpack.i.l.bf16 %v5438_v0 }
 0x2ab   : > { %v3189_v42 = vsel %vm1704_vm12, %v3157_v6, %v5384_v8  ;;  %v3190_v55 = vsel %vm1704_vm12, %v3158_v49, %v5385_v20  ;;  %v5410_v20 = vunpack.i.h.bf16 %v7721_v23  ;;  %v5409_v8 = vunpack.i.l.bf16 %v7721_v23 }
 0x2ac   : > { %v3221_v37 = vsel %vm3108_vm0, %v3189_v42, %v5404_v47  ;;  %v3222_v14 = vsel %vm3108_vm0, %v3190_v55, %v5405_v5  ;;  %v3063_v38 = vsel %vm1572_vm5, %v5689_v33, %v5435_v2  ;;  %v5690_v5 = vld [vmem:[#allocation3 + $0xd8] sm:$0xff]  ;;  %v5415_v0 = vunpack.i.h.bf16 %v7719_v9 }
 0x2ad   : > { %v3262_v25 = vpack.c.bf16 %v3222_v14, %v3221_v37  ;;  %v3062_v47 = vsel %vm1572_vm5, %v5690_v5, %v5434_v18  ;;  %v3095_v11 = vsel %vm1704_vm12, %v3063_v38, %v5440_v13  ;;  %v3160_v23 = vsel %vm1572_vm5, %v7235_v26, %v5410_v20 }
 0x2ae   : > { %v3094_v21 = vsel %vm1704_vm12, %v3062_v47, %v5439_v44  ;;  %v3159_v55 = vsel %vm1572_vm5, %v7232_v1, %v5409_v8  ;;  %v3128_v19 = vsel %vm3108_vm0, %v3095_v11, %v5390_v63  ;;  %v5414_v26 = vunpack.i.l.bf16 %v7719_v9  ;;  %v5692_v11 = vld [vmem:[#allocation3 + $0xf0] sm:$0xff] }
 0x2af   : > { %3580 = vmatprep.mubr.bf16.mxu1 %v3262_v25  ;;  %v3127_v25 = vsel %vm3108_vm0, %v3094_v21, %v5389_v51  ;;  %v5420_v1 = vunpack.i.h.bf16 %v7731_v28  ;;  %v5419_v18 = vunpack.i.l.bf16 %v7731_v28 }
 0x2b0   : > { %v3264_v20 = vpack.c.bf16 %v3128_v19, %v3127_v25 }
 0x2b2   : > { %3581 = vmatmul.mubr.bf16.gmra.mrb[32].mxu1 %v3261_v35 }
 0x2b3   : > { %v7767_v24 = vpop.permute.xlu0 %5442  ;;  %v7769_v48 = vpop.permute.xlu1 %5447 }
 0x2b4   : > { %v5445_v8 = vunpack.i.h.bf16 %v7767_v24  ;;  %v5444_v33 = vunpack.i.l.bf16 %v7767_v24  ;;  %v3064_v24 = vsel %vm1572_vm5, %v5692_v11, %v5414_v26  ;;  %v5450_v11 = vunpack.i.h.bf16 %v7769_v48 }
 0x2b5   : > { %v3096_v51 = vsel %vm1704_vm12, %v3064_v24, %v5419_v18  ;;  %v5449_v24 = vunpack.i.l.bf16 %v7769_v48 }
 0x2b7   : > { %v5453_v30 = vpop.permute.xlu0 %5452 }
 0x2b8   : > { %v7771_v54 = vpop.f32.mrb[36].mxu0  ;;  %v7779_v59 = vpop.permute.xlu1 %5457  ;;  %v5455_v49 = vunpack.i.h.bf16 %v5453_v30  ;;  %v5454_v6 = vunpack.i.l.bf16 %v5453_v30 }
 0x2b9   : > { %v7773_v60 = vpop.f32.mrb[37].mxu0  ;;  %v5460_v38 = vunpack.i.h.bf16 %v7779_v59  ;;  %v5459_v5 = vunpack.i.l.bf16 %v7779_v59 }
 0x2ba   : > { %v7775_v50 = vpop.f32.mrb[38].mxu0  ;;  %v3191_v37 = vsel %vm1704_vm12, %v3159_v55, %v5454_v6  ;;  %v3192_v14 = vsel %vm1704_vm12, %v3160_v23, %v5455_v49  ;;  %v5691_v6 = vld [vmem:[#allocation3 + $0xf8] sm:$0xff] }
 0x2bb   : > { %v7777_v43 = vpop.f32.mrb[39].mxu0  ;;  %v5463_v15 = vpop.permute.xlu0 %5462  ;;  %v3065_v21 = vsel %vm1572_vm5, %v5691_v6, %v5415_v0  ;;  %v3129_v55 = vsel %vm3108_vm0, %v3096_v51, %v5459_v5 }
 0x2bc   : > { %v7787_v41 = vpop.permute.xlu1 %5472  ;;  %v5465_v9 = vunpack.i.h.bf16 %v5463_v15  ;;  %v5464_v47 = vunpack.i.l.bf16 %v5463_v15  ;;  %v3097_v15 = vsel %vm1704_vm12, %v3065_v21, %v5420_v1 }
 0x2bf   : > { %v7781_v36 = vpop.permute.xlu0 %5467 }
 0x2c0   : > { %v7806_v35 = vpop.permute.xlu1 %5477 }
 0x2c3   : > { %v5483_v42 = vpop.permute.xlu0 %5482 }
 0x2c4   : > { %v5485_v53 = vunpack.i.h.bf16 %v5483_v42  ;;  %v5484_v32 = vunpack.i.l.bf16 %v5483_v42 }
 0x2c6   : > { %v3223_v39 = vsel %vm3108_vm0, %v3191_v37, %v5484_v32  ;;  %v3224_v4 = vsel %vm3108_vm0, %v3192_v14, %v5485_v53  ;;  %v3130_v53 = vsel %vm3108_vm0, %v3097_v15, %v5460_v38  ;;  %v5693_v38 = vld [vmem:[#allocation3 + $0x110] sm:$0xff] }
 0x2c7   : > { %v5488_v30 = vpop.permute.xlu0 %5487  ;;  %v3265_v2 = vpack.c.bf16 %v3224_v4, %v3223_v39  ;;  %v3267_v32 = vpack.c.bf16 %v3130_v53, %v3129_v55 }
 0x2c8   : > { %v5490_v13 = vunpack.i.h.bf16 %v5488_v30  ;;  %v5489_v44 = vunpack.i.l.bf16 %v5488_v30 }
 0x2c9   : > { %3588 = vmatprep.mubr.bf16.mxu1 %v3265_v2 }
 0x2ca   : > { %v3162_v49 = vsel %vm1572_vm5, %v7383_v10, %v5490_v13  ;;  %v3161_v28 = vsel %vm1572_vm5, %v7372_v31, %v5489_v44  ;;  %3589 = vmatmul.mubr.bf16.gmra.mrb[36].mxu1 %v3264_v20  ;;  %v5493_v31 = vpop.permute.xlu1 %5492 }
 0x2cb   : > { %v3193_v63 = vsel %vm1704_vm12, %v3161_v28, %v5444_v33  ;;  %v3194_v59 = vsel %vm1704_vm12, %v3162_v49, %v5445_v8  ;;  %v5495_v30 = vunpack.i.h.bf16 %v5493_v31  ;;  %v5494_v2 = vunpack.i.l.bf16 %v5493_v31 }
 0x2cc   : > { %v3225_v10 = vsel %vm3108_vm0, %v3193_v63, %v5464_v47  ;;  %v3226_v42 = vsel %vm3108_vm0, %v3194_v59, %v5465_v9  ;;  %v5470_v8 = vunpack.i.h.bf16 %v7781_v36  ;;  %v5469_v33 = vunpack.i.l.bf16 %v7781_v36  ;;  %v5694_v9 = vld [vmem:[#allocation3 + $0x108] sm:$0xff] }
 0x2cd   : > { %v3268_v23 = vpack.c.bf16 %v3226_v42, %v3225_v10  ;;  %v3067_v5 = vsel %vm1572_vm5, %v5693_v38, %v5495_v30  ;;  %v3066_v47 = vsel %vm1572_vm5, %v5694_v9, %v5494_v2  ;;  %v5479_v30 = vunpack.i.l.bf16 %v7806_v35 }
 0x2ce   : > { %v5498_v14 = vpop.permute.xlu1 %5497  ;;  %v3164_v36 = vsel %vm1572_vm5, %v7339_v40, %v5470_v8  ;;  %v3163_v51 = vsel %vm1572_vm5, %v7332_v22, %v5469_v33  ;;  %v5474_v40 = vunpack.i.l.bf16 %v7787_v41  ;;  %v5480_v22 = vunpack.i.h.bf16 %v7806_v35  ;;  %v5695_v35 = vld [vmem:[#allocation3 + $0x128] sm:$0xff] }
 0x2cf   : > { %3596 = vmatprep.mubr.bf16.mxu1 %v3268_v23  ;;  %v5500_v13 = vunpack.i.h.bf16 %v5498_v14  ;;  %v5499_v44 = vunpack.i.l.bf16 %v5498_v14 }
 0x2d1   : > { %v3098_v6 = vsel %vm1704_vm12, %v3066_v47, %v5499_v44  ;;  %v3099_v21 = vsel %vm1704_vm12, %v3067_v5, %v5500_v13 }
 0x2d2   : > { %3597 = vmatmul.mubr.bf16.gmra.mrb[40].mxu1 %v3267_v32  ;;  %v3131_v23 = vsel %vm3108_vm0, %v3098_v6, %v5449_v24  ;;  %v3132_v55 = vsel %vm3108_vm0, %v3099_v21, %v5450_v11  ;;  %v5475_v32 = vunpack.i.h.bf16 %v7787_v41  ;;  %v5696_v21 = vld [vmem:[#allocation3 + $0x120] sm:$0xff] }
 0x2d3   : > { %v7827_v37 = vpop.permute.xlu0 %5502  ;;  %v7829_v19 = vpop.permute.xlu1 %5507  ;;  %v3270_v44 = vpack.c.bf16 %v3132_v55, %v3131_v23  ;;  %v3068_v11 = vsel %vm1572_vm5, %v5696_v21, %v5474_v40 }
 0x2d4   : > { %v5505_v8 = vunpack.i.h.bf16 %v7827_v37  ;;  %v5504_v33 = vunpack.i.l.bf16 %v7827_v37  ;;  %v3069_v6 = vsel %vm1572_vm5, %v5695_v35, %v5475_v32  ;;  %v3100_v24 = vsel %vm1704_vm12, %v3068_v11, %v5479_v30  ;;  %v7912_v35 = vld [vmem:[%s8161_s4] ss:$0 sm:$0xff] }
 0x2d7   : > { %v5513_v25 = vpop.permute.xlu0 %5512 }
 0x2d8   : > { %v7831_v39 = vpop.f32.mrb[40].mxu0  ;;  %v5518_v18 = vpop.permute.xlu1 %5517  ;;  %v5515_v49 = vunpack.i.h.bf16 %v5513_v25  ;;  %v5514_v28 = vunpack.i.l.bf16 %v5513_v25 }
 0x2d9   : > { %v7833_v4 = vpop.f32.mrb[41].mxu0  ;;  %v5520_v38 = vunpack.i.h.bf16 %v5518_v18  ;;  %v5519_v5 = vunpack.i.l.bf16 %v5518_v18 }
 0x2da   : > { %v7835_v0 = vpop.f32.mrb[42].mxu0  ;;  %v3195_v42 = vsel %vm1704_vm12, %v3163_v51, %v5514_v28  ;;  %v3196_v31 = vsel %vm1704_vm12, %v3164_v36, %v5515_v49 }
 0x2db   : > { %v7837_v26 = vpop.f32.mrb[43].mxu0  ;;  %v5523_v1 = vpop.permute.xlu0 %5522  ;;  %v3133_v36 = vsel %vm3108_vm0, %v3100_v24, %v5519_v5  ;;  %v5509_v5 = vunpack.i.l.bf16 %v7829_v19 }
 0x2dc   : > { %v5543_v63 = vpop.permute.xlu1 %5542  ;;  %v5525_v47 = vunpack.i.h.bf16 %v5523_v1  ;;  %v5524_v49 = vunpack.i.l.bf16 %v5523_v1  ;;  %v3101_v1 = vsel %vm1704_vm12, %v3069_v6, %v5480_v22 }
 0x2dd   : > { %v3134_v51 = vsel %vm3108_vm0, %v3101_v1, %v5520_v38  ;;  %v5544_v23 = vunpack.i.l.bf16 %v5543_v63 }
 0x2df   : > { %v7839_v20 = vpop.permute.xlu0 %5527  ;;  %v3070_v30 = vsel %vm1572_vm5, %v7427_v56, %v5544_v23 }
 0x2e0   : > { %v5548_v9 = vpop.permute.xlu1 %5547  ;;  %v5530_v40 = vunpack.i.h.bf16 %v7839_v20  ;;  %v5529_v22 = vunpack.i.l.bf16 %v7839_v20  ;;  %v5510_v20 = vunpack.i.h.bf16 %v7829_v19 }
 0x2e2   : > { %v3168_v56 = vsel %vm1572_vm5, %v7472_v34, %v5530_v40  ;;  %v5697_v40 = vld [vmem:[#allocation3 + $0x150] sm:$0xff] }
 0x2e3   : > { %v5533_v59 = vpop.permute.xlu0 %5532 }
 0x2e4   : > { %v5535_v15 = vunpack.i.h.bf16 %v5533_v59  ;;  %v5534_v10 = vunpack.i.l.bf16 %v5533_v59 }
 0x2e6   : > { %v3227_v48 = vsel %vm3108_vm0, %v3195_v42, %v5534_v10  ;;  %v3228_v53 = vsel %vm3108_vm0, %v3196_v31, %v5535_v15  ;;  %v7879_v15 = vpop.permute.xlu1 %5552  ;;  %v3273_v10 = vpack.c.bf16 %v3134_v51, %v3133_v36  ;;  %v5545_v31 = vunpack.i.h.bf16 %v5543_v63 }
 0x2e7   : > { %v5538_v14 = vpop.permute.xlu0 %5537  ;;  %v3271_v25 = vpack.c.bf16 %v3228_v53, %v3227_v48  ;;  %v5550_v48 = vunpack.i.h.bf16 %v5548_v9  ;;  %v5549_v53 = vunpack.i.l.bf16 %v5548_v9  ;;  %v3167_v9 = vsel %vm1572_vm5, %v7466_v58, %v5529_v22 }
 0x2e8   : > { %v5540_v2 = vunpack.i.h.bf16 %v5538_v14  ;;  %v5539_v13 = vunpack.i.l.bf16 %v5538_v14  ;;  %v5554_v11 = vunpack.i.l.bf16 %v7879_v15 }
 0x2e9   : > { %3604 = vmatprep.mubr.bf16.mxu1 %v3271_v25  ;;  %v3071_v25 = vsel %vm1572_vm5, %v7439_v12, %v5545_v31 }
 0x2ea   : > { %v3166_v41 = vsel %vm1572_vm5, %v7483_v57, %v5540_v2  ;;  %v3165_v28 = vsel %vm1572_vm5, %v7477_v16, %v5539_v13  ;;  %3605 = vmatmul.mubr.bf16.gmra.mrb[44].mxu1 %v3270_v44  ;;  %v7883_v55 = vpop.permute.xlu1 %5557  ;;  %v3102_v13 = vsel %vm1704_vm12, %v3070_v30, %v5549_v53  ;;  %v3103_v44 = vsel %vm1704_vm12, %v3071_v25, %v5550_v48 }
 0x2eb   : > { %v3197_v37 = vsel %vm1704_vm12, %v3165_v28, %v5504_v33  ;;  %v3198_v18 = vsel %vm1704_vm12, %v3166_v41, %v5505_v8  ;;  %v3135_v19 = vsel %vm3108_vm0, %v3102_v13, %v5509_v5  ;;  %v3136_v21 = vsel %vm3108_vm0, %v3103_v44, %v5510_v20 }
 0x2ec   : > { %v3229_v57 = vsel %vm3108_vm0, %v3197_v37, %v5524_v49  ;;  %v3230_v59 = vsel %vm3108_vm0, %v3198_v18, %v5525_v47  ;;  %v3276_v31 = vpack.c.bf16 %v3136_v21, %v3135_v19  ;;  %v5559_v23 = vunpack.i.l.bf16 %v7883_v55 }
 0x2ed   : > { %v3274_v16 = vpack.c.bf16 %v3230_v59, %v3229_v57  ;;  %v3072_v22 = vsel %vm1572_vm5, %v5697_v40, %v5554_v11  ;;  %v5560_v25 = vunpack.i.h.bf16 %v7883_v55 }
 0x2ef   : > { %3612 = vmatprep.mubr.bf16.mxu1 %v3274_v16  ;;  %v5555_v16 = vunpack.i.h.bf16 %v7879_v15 }
 0x2f2   : > { %3613 = vmatmul.mubr.bf16.gmra.mrb[48].mxu1 %v3273_v10 }
 0x2f3   : > { %v7881_v42 = vpop.permute.xlu0 %5562 }
 0x2f4   : > { %v7893_v2 = vpop.permute.xlu1 %5587  ;;  %v5565_v20 = vunpack.i.h.bf16 %v7881_v42  ;;  %v5564_v5 = vunpack.i.l.bf16 %v7881_v42 }
 0x2f5   : > { %v5590_v15 = vunpack.i.h.bf16 %v7893_v2  ;;  %v5589_v44 = vunpack.i.l.bf16 %v7893_v2  ;;  %v3104_v2 = vsel %vm1704_vm12, %v3072_v22, %v5559_v23 }
 0x2f7   : > { %v5568_v32 = vpop.permute.xlu0 %5567  ;;  %v3137_v21 = vsel %vm3108_vm0, %v3104_v2, %v5589_v44 }
 0x2f8   : > { %v5570_v8 = vunpack.i.h.bf16 %v5568_v32  ;;  %v5569_v33 = vunpack.i.l.bf16 %v5568_v32 }
 0x2f9   : > { %v7887_v14 = vpop.f32.mrb[44].mxu0 }
 0x2fa   : > { %v7895_v63 = vpop.f32.mrb[45].mxu0  ;;  %v3199_v34 = vsel %vm1704_vm12, %v3167_v9, %v5569_v33  ;;  %v3200_v58 = vsel %vm1704_vm12, %v3168_v56, %v5570_v8  ;;  %v7919_v24 = vpop.permute.xlu1 %5597  ;;  %v5698_v9 = vld [vmem:[#allocation3 + $0x158] sm:$0xff] }
 0x2fb   : > { %v7899_v38 = vpop.f32.mrb[46].mxu0  ;;  %v5573_v47 = vpop.permute.xlu0 %5572 }
 0x2fc   : > { %v7903_v12 = vpop.f32.mrb[47].mxu0  ;;  %v4241_v49 = vpop.f32.mrb[0].mxu1  ;;  %v5575_v41 = vunpack.i.h.bf16 %v5573_v47  ;;  %v5574_v28 = vunpack.i.l.bf16 %v5573_v47  ;;  %v3073_v47 = vsel %vm1572_vm5, %v5698_v9, %v5555_v16  ;;  %v5599_v16 = vunpack.i.l.bf16 %v7919_v24 }
 0x2fd   : > { %v4242_v6 = vpop.f32.mrb[1].mxu1 }
 0x2fe   : > { %v4243_v37 = vadd.f32 %v4242_v6, %v4241_v49  ;;  %v4244_v18 = vpop.f32.mrb[2].mxu1  ;;  %v3231_v57 = vsel %vm3108_vm0, %v3199_v34, %v5574_v28  ;;  %v3232_v59 = vsel %vm3108_vm0, %v3200_v58, %v5575_v41  ;;  %v5608_v49 = vpop.permute.xlu1 %5607 }
 0x2ff   : > { %v4245_v1 = vpop.f32.mrb[3].mxu1  ;;  %v5578_v10 = vpop.permute.xlu0 %5577  ;;  %v3277_v32 = vpack.c.bf16 %v3232_v59, %v3231_v57  ;;  %v5600_v59 = vunpack.i.h.bf16 %v7919_v24 }
 0x300   : > { %v3519_v36 = vadd.f32 %v4243_v37, %v7912_v35  ;;  %v4246_v51 = vadd.f32 %v4245_v1, %v4244_v18  ;;  %v5580_v48 = vunpack.i.h.bf16 %v5578_v10  ;;  %v5579_v53 = vunpack.i.l.bf16 %v5578_v10 }
 0x301   : > { %3620 = vmatprep.mubr.bf16.mxu1 %v3277_v32  ;;  %v5609_v10 = vunpack.i.l.bf16 %v5608_v49 }
 0x302   : > { %v3680_v30 = vadd.f32 %v7705_v17, %v3519_v36  ;;  %v3522_v13 = vadd.f32 %v4246_v51, %v7912_v35  ;;  %v3170_v8 = vsel %vm1572_vm5, %v7633_v45, %v5580_v48  ;;  %v3169_v33 = vsel %vm1572_vm5, %v7627_v27, %v5579_v53  ;;  %3621 = vmatmul.mubr.bf16.gmra.mrb[52].mxu1 %v3276_v31  ;;  %v5618_v36 = vpop.permute.xlu1 %5617 }
 0x303   : > { %v5583_v56 = vpop.permute.xlu0 %5582  ;;  %v3105_v27 = vsel %vm1704_vm12, %v3073_v47, %v5560_v25  ;;  %v3201_v6 = vsel %vm1704_vm12, %v3169_v33, %v5564_v5  ;;  %v3202_v42 = vsel %vm1704_vm12, %v3170_v8, %v5565_v20  ;;  %v5610_v51 = vunpack.i.h.bf16 %v5608_v49 }
 0x304   : > { %v3806_v55 = vmax.f32 %v3680_v30, 0.0  ;;  %v3683_v17 = vadd.f32 %v7712_v7, %v3522_v13  ;;  %v5585_v45 = vunpack.i.h.bf16 %v5583_v56  ;;  %v5584_v41 = vunpack.i.l.bf16 %v5583_v56 }
 0x305   : > { %v3138_v11 = vsel %vm3108_vm0, %v3105_v27, %v5590_v15  ;;  %v5620_v53 = vunpack.i.h.bf16 %v5618_v36  ;;  %v5619_v32 = vunpack.i.l.bf16 %v5618_v36  ;;  %v3075_v25 = vsel %vm1572_vm5, %v7588_v62, %v5600_v59 }
 0x306   : > { %v3807_v28 = vmax.f32 %v3683_v17, 0.0  ;;  %v3233_v19 = vsel %vm3108_vm0, %v3201_v6, %v5584_v41  ;;  %v3234_v7 = vsel %vm3108_vm0, %v3202_v42, %v5585_v45  ;;  %v3838_v34 = vsel %vm1704_vm12, %v3806_v55, 0.0 }
 0x307   : > { %v5593_v37 = vpop.permute.xlu0 %5592  ;;  %v3280_v18 = vpack.c.bf16 %v3234_v7, %v3233_v19  ;;  %v3279_v57 = vpack.c.bf16 %v3138_v11, %v3137_v21  ;;  %v3074_v30 = vsel %vm1572_vm5, %v7567_v52, %v5599_v16  ;;  %v3107_v24 = vsel %vm1704_vm12, %v3075_v25, %v5610_v51 }
 0x308   : > { %v3839_v58 = vsel %vm1704_vm12, %v3807_v28, 0.0  ;;  %v5595_v23 = vunpack.i.h.bf16 %v5593_v37  ;;  %v5594_v48 = vunpack.i.l.bf16 %v5593_v37  ;;  %v3106_v13 = vsel %vm1704_vm12, %v3074_v30, %v5609_v10 }
 0x309   : > { %v3840_v1 = vadd.f32 %v3839_v58, %v3838_v34  ;;  %3628 = vmatprep.mubr.bf16.mxu1 %v3280_v18  ;;  %v3139_v55 = vsel %vm3108_vm0, %v3106_v13, %v5619_v32  ;;  %v3140_v52 = vsel %vm3108_vm0, %v3107_v24, %v5620_v53 }
 0x30a   : > { %3629 = vmatmul.mubr.bf16.gmra.mrb[56].mxu1 %v3279_v57  ;;  %v3172_v44 = vsel %vm1572_vm5, %v7672_v46, %v5595_v23  ;;  %v3171_v8 = vsel %vm1572_vm5, %v7667_v29, %v5594_v48  ;;  %v3282_v47 = vpack.c.bf16 %v3140_v52, %v3139_v55 }
 0x30b   : > { %v5603_v31 = vpop.permute.xlu0 %5602 }
 0x30c   : > { %v5605_v40 = vunpack.i.h.bf16 %v5603_v31  ;;  %v5604_v22 = vunpack.i.l.bf16 %v5603_v31 }
 0x30e   : > { %v3203_v5 = vsel %vm1704_vm12, %v3171_v8, %v5604_v22  ;;  %v3204_v62 = vsel %vm1704_vm12, %v3172_v44, %v5605_v40 }
 0x30f   : > { %v5613_v15 = vpop.permute.xlu0 %5612 }
 0x310   : > { %v5615_v33 = vunpack.i.h.bf16 %v5613_v15  ;;  %v5614_v20 = vunpack.i.l.bf16 %v5613_v15 }
 0x312   : > { %v3235_v17 = vsel %vm3108_vm0, %v3203_v5, %v5614_v20  ;;  %v3236_v56 = vsel %vm3108_vm0, %v3204_v62, %v5615_v33 }
 0x313   : > { %v3283_v9 = vpack.c.bf16 %v3236_v56, %v3235_v17 }
 0x315   : > { %3636 = vmatprep.mubr.bf16.mxu1 %v3283_v9 }
 0x316   : > { %3637 = vmatmul.mubr.bf16.gmra.mrb[60].mxu1 %v3282_v47 }
 0x318   : > { %v7968_v46 = vpop.f32.mrb[48].mxu0 }
 0x319   : > { %v7970_v29 = vpop.f32.mrb[49].mxu0 }
 0x31a   : > { %v7972_v2 = vpop.f32.mrb[50].mxu0 }
 0x31b   : > { %v7974_v49 = vpop.f32.mrb[51].mxu0 }
 0x31d   : > { %v4247_v45 = vpop.f32.mrb[4].mxu1 }
 0x31e   : > { %v4248_v41 = vpop.f32.mrb[5].mxu1 }
 0x31f   : > { %v4249_v27 = vadd.f32 %v4248_v41, %v4247_v45  ;;  %v4250_v28 = vpop.f32.mrb[6].mxu1 }
 0x320   : > { %v4251_v6 = vpop.f32.mrb[7].mxu1 }
 0x321   : > { %v3527_v42 = vadd.f32 %v4249_v27, %v7912_v35  ;;  %v4252_v19 = vadd.f32 %v4251_v6, %v4250_v28 }
 0x323   : > { %v3688_v7 = vadd.f32 %v7703_v61, %v3527_v42  ;;  %v3530_v21 = vadd.f32 %v4252_v19, %v7912_v35 }
 0x325   : > { %v3808_v11 = vmax.f32 %v3688_v7, 0.0  ;;  %v3691_v34 = vadd.f32 %v7710_v3, %v3530_v21  ;;  %v4253_v58 = vpop.f32.mrb[8].mxu1 }
 0x326   : > { %v4254_v37 = vpop.f32.mrb[9].mxu1 }
 0x327   : > { %v3841_v18 = vsel %vm1704_vm12, %v3808_v11, 0.0  ;;  %v3809_v57 = vmax.f32 %v3691_v34, 0.0  ;;  %v4255_v59 = vadd.f32 %v4254_v37, %v4253_v58  ;;  %v4256_v16 = vpop.f32.mrb[10].mxu1  ;;  %v5644_v37 = vld [vmem:[%s8162_s5] sm:$0xff]  }
 0x328   : > { %v3842_v36 = vadd.f32 %v3841_v18, %v3840_v1  ;;  %v4257_v51 = vpop.f32.mrb[11].mxu1  ;;  %4439 = vmatpush3.bf16.msra.mxu0 %v5644_v37 }
 0x329   : > { %v3843_v10 = vsel %vm1704_vm12, %v3809_v57, 0.0  ;;  %v3535_v31 = vadd.f32 %v4255_v59, %v7912_v35  ;;  %v4258_v23 = vadd.f32 %v4257_v51, %v4256_v16  ;;  %v8173_v16 = vmov 0.0  }
 0x32a   : > { %v3844_v61 = vadd.f32 %v3843_v10, %v3842_v36  ;;  %4440 = vmatprep.subr.bf16.mxu0 %v8173_v16  ;;  %4446 = vmatprep.mubr.msk.bf16.mxu0 %vm5773_vm1, %v8173_v16 }
 0x32b   : > { %v3696_v48 = vadd.f32 %v7773_v60, %v3535_v31  ;;  %v3538_v53 = vadd.f32 %v4258_v23, %v7912_v35 }
 0x32d   : > { %v3810_v3 = vmax.f32 %v3696_v48, 0.0  ;;  %v3699_v32 = vadd.f32 %v7777_v43, %v3538_v53 }
 0x32f   : > { %v3845_v40 = vsel %vm1704_vm12, %v3810_v3, 0.0  ;;  %v3811_v22 = vmax.f32 %v3699_v32, 0.0 }
 0x330   : > { %v3846_v25 = vadd.f32 %v3845_v40, %v3844_v61 }
 0x331   : > { %v3847_v1 = vsel %vm1704_vm12, %v3811_v22, 0.0  ;;  %v5645_v22 = vld [vmem:[%s8162_s5 + $0x8] sm:$0xff]  }
 0x332   : > { %v3848_v30 = vadd.f32 %v3847_v1, %v3846_v25  ;;  %4441 = vmatpush3.bf16.msra.mxu0 %v5645_v22 }
 0x333   : > { %4442 = vmatprep.subr.bf16.mxu0 %v8173_v16 }
 0x338   : > { %v7988_v13 = vpop.f32.mrb[52].mxu0 }
 0x339   : > { %v7990_v24 = vpop.f32.mrb[53].mxu0 }
 0x33a   : > { %v7992_v15 = vpop.f32.mrb[54].mxu0 }
 0x33b   : > { %v7994_v44 = vpop.f32.mrb[55].mxu0 }
 0x33f   : > { %v4259_v60 = vpop.f32.mrb[12].mxu1 }
 0x340   : > { %v4260_v8 = vpop.f32.mrb[13].mxu1 }
 0x341   : > { %v4261_v33 = vadd.f32 %v4260_v8, %v4259_v60  ;;  %v4262_v20 = vpop.f32.mrb[14].mxu1 }
 0x342   : > { %v4263_v43 = vpop.f32.mrb[15].mxu1 }
 0x343   : > { %v3543_v5 = vadd.f32 %v4261_v33, %v7912_v35  ;;  %v4264_v62 = vadd.f32 %v4263_v43, %v4262_v20 }
 0x345   : > { %v3704_v55 = vadd.f32 %v7771_v54, %v3543_v5  ;;  %v3546_v52 = vadd.f32 %v4264_v62, %v7912_v35 }
 0x347   : > { %v3812_v17 = vmax.f32 %v3704_v55, 0.0  ;;  %v3707_v56 = vadd.f32 %v7775_v50, %v3546_v52  ;;  %v4265_v9 = vpop.f32.mrb[16].mxu1 }
 0x348   : > { %v4266_v47 = vpop.f32.mrb[17].mxu1 }
 0x349   : > { %v3849_v45 = vsel %vm1704_vm12, %v3812_v17, 0.0  ;;  %v3813_v41 = vmax.f32 %v3707_v56, 0.0  ;;  %v4267_v27 = vadd.f32 %v4266_v47, %v4265_v9  ;;  %v4268_v28 = vpop.f32.mrb[18].mxu1 }
 0x34a   : > { %v3850_v6 = vadd.f32 %v3849_v45, %v3848_v30  ;;  %v4269_v42 = vpop.f32.mrb[19].mxu1 }
 0x34b   : > { %v3851_v19 = vsel %vm1704_vm12, %v3813_v41, 0.0  ;;  %v3551_v7 = vadd.f32 %v4267_v27, %v7912_v35  ;;  %v4270_v21 = vadd.f32 %v4269_v42, %v4268_v28 }
 0x34c   : > { %v3852_v54 = vadd.f32 %v3851_v19, %v3850_v6  ;;  %v5646_v6 = vld [vmem:[%s8162_s5 + $0x10] sm:$0xff]  }
 0x34d   : > { %v3712_v11 = vadd.f32 %v7833_v4, %v3551_v7  ;;  %v3554_v34 = vadd.f32 %v4270_v21, %v7912_v35  ;;  %4443 = vmatpush3.bf16.msra.mxu0 %v5646_v6 }
 0x34e   : > { %4444 = vmatprep.subr.bf16.mxu0 %v8173_v16 }
 0x34f   : > { %v3814_v50 = vmax.f32 %v3712_v11, 0.0  ;;  %v3715_v58 = vadd.f32 %v7837_v26, %v3554_v34 }
 0x351   : > { %v3853_v18 = vsel %vm1704_vm12, %v3814_v50, 0.0  ;;  %v3815_v57 = vmax.f32 %v3715_v58, 0.0 }
 0x352   : > { %v3854_v59 = vadd.f32 %v3853_v18, %v3852_v54 }
 0x353   : > { %v3855_v36 = vsel %vm1704_vm12, %v3815_v57, 0.0 }
 0x354   : > { %v3856_v51 = vadd.f32 %v3855_v36, %v3854_v59 }
 0x358   : > { %v8012_v4 = vpop.f32.mrb[56].mxu0 }
 0x359   : > { %v8014_v10 = vpop.f32.mrb[57].mxu0 }
 0x35a   : > { %v8016_v31 = vpop.f32.mrb[58].mxu0 }
 0x35b   : > { %v8018_v26 = vpop.f32.mrb[59].mxu0 }
 0x35d   : > { %v4271_v23 = vpop.f32.mrb[20].mxu1 }
 0x35e   : > { %v4272_v61 = vpop.f32.mrb[21].mxu1 }
 0x35f   : > { %v4273_v48 = vadd.f32 %v4272_v61, %v4271_v23  ;;  %v4274_v53 = vpop.f32.mrb[22].mxu1 }
 0x360   : > { %v4275_v3 = vpop.f32.mrb[23].mxu1 }
 0x361   : > { %v3559_v32 = vadd.f32 %v4273_v48, %v7912_v35  ;;  %v4276_v40 = vadd.f32 %v4275_v3, %v4274_v53 }
 0x363   : > { %v3720_v25 = vadd.f32 %v7831_v39, %v3559_v32  ;;  %v3562_v1 = vadd.f32 %v4276_v40, %v7912_v35 }
 0x365   : > { %v3816_v30 = vmax.f32 %v3720_v25, 0.0  ;;  %v3723_v60 = vadd.f32 %v7835_v0, %v3562_v1  ;;  %v4277_v8 = vpop.f32.mrb[24].mxu1  ;;  %v8029_v55 = vpop.f32.mrb[60].mxu0 }
 0x366   : > { %v4278_v33 = vpop.f32.mrb[25].mxu1  ;;  %v8031_v39 = vpop.f32.mrb[61].mxu0 }
 0x367   : > { %v3857_v20 = vsel %vm1704_vm12, %v3816_v30, 0.0  ;;  %v3817_v43 = vmax.f32 %v3723_v60, 0.0  ;;  %v4279_v5 = vadd.f32 %v4278_v33, %v4277_v8  ;;  %v4280_v62 = vpop.f32.mrb[26].mxu1  ;;  %v8035_v0 = vpop.f32.mrb[62].mxu0 }
 0x368   : > { %v3858_v52 = vadd.f32 %v3857_v20, %v3856_v51  ;;  %v4281_v17 = vpop.f32.mrb[27].mxu1  ;;  %v8039_v28 = vpop.f32.mrb[63].mxu0  ;;  %v5647_v51 = vld [vmem:[%s8162_s5 + $0x18] sm:$0xff]  }
 0x369   : > { %v3859_v56 = vsel %vm1704_vm12, %v3817_v43, 0.0  ;;  %v3567_v9 = vadd.f32 %v4279_v5, %v7912_v35  ;;  %v4282_v47 = vadd.f32 %v4281_v17, %v4280_v62  ;;  %4445 = vmatpush3.bf16.msra.mxu0 %v5647_v51 }
 0x36a   : > { %v3860_v45 = vadd.f32 %v3859_v56, %v3858_v52 }
 0x36b   : > { %v3728_v41 = vadd.f32 %v7895_v63, %v3567_v9  ;;  %v3570_v27 = vadd.f32 %v4282_v47, %v7912_v35 }
 0x36d   : > { %v3818_v42 = vmax.f32 %v3728_v41, 0.0  ;;  %v3731_v19 = vadd.f32 %v7903_v12, %v3570_v27 }
 0x36f   : > { %v3861_v7 = vsel %vm1704_vm12, %v3818_v42, 0.0  ;;  %v3819_v21 = vmax.f32 %v3731_v19, 0.0 }
 0x370   : > { %v3862_v54 = vadd.f32 %v3861_v7, %v3860_v45 }
 0x371   : > { %v3863_v63 = vsel %vm1704_vm12, %v3819_v21, 0.0 }
 0x372   : > { %v3864_v11 = vadd.f32 %v3863_v63, %v3862_v54 }
 0x37d   : > { %v4283_v34 = vpop.f32.mrb[28].mxu1 }
 0x37e   : > { %v4284_v50 = vpop.f32.mrb[29].mxu1 }
 0x37f   : > { %v4285_v58 = vadd.f32 %v4284_v50, %v4283_v34  ;;  %v4286_v37 = vpop.f32.mrb[30].mxu1 }
 0x380   : > { %v4287_v18 = vpop.f32.mrb[31].mxu1 }
 0x381   : > { %v3575_v57 = vadd.f32 %v4285_v58, %v7912_v35  ;;  %v4288_v59 = vadd.f32 %v4287_v18, %v4286_v37 }
 0x383   : > { %v3736_v12 = vadd.f32 %v7887_v14, %v3575_v57  ;;  %v3578_v36 = vadd.f32 %v4288_v59, %v7912_v35 }
 0x385   : > { %v3820_v23 = vmax.f32 %v3736_v12, 0.0  ;;  %v3739_v61 = vadd.f32 %v7899_v38, %v3578_v36  ;;  %v4289_v48 = vpop.f32.mrb[32].mxu1 }
 0x386   : > { %v4290_v53 = vpop.f32.mrb[33].mxu1 }
 0x387   : > { %v3865_v3 = vsel %vm1704_vm12, %v3820_v23, 0.0  ;;  %v3821_v32 = vmax.f32 %v3739_v61, 0.0  ;;  %v4291_v40 = vadd.f32 %v4290_v53, %v4289_v48  ;;  %v4292_v14 = vpop.f32.mrb[34].mxu1 }
 0x388   : > { %v3866_v22 = vadd.f32 %v3865_v3, %v3864_v11  ;;  %v4293_v25 = vpop.f32.mrb[35].mxu1 }
 0x389   : > { %v3867_v1 = vsel %vm1704_vm12, %v3821_v32, 0.0  ;;  %v3583_v30 = vadd.f32 %v4291_v40, %v7912_v35  ;;  %v4294_v60 = vadd.f32 %v4293_v25, %v4292_v14 }
 0x38a   : > { %v3868_v8 = vadd.f32 %v3867_v1, %v3866_v22 }
 0x38b   : > { %v3744_v16 = vadd.f32 %v7970_v29, %v3583_v30  ;;  %v3586_v38 = vadd.f32 %v4294_v60, %v7912_v35 }
 0x38d   : > { %v3822_v33 = vmax.f32 %v3744_v16, 0.0  ;;  %v3747_v20 = vadd.f32 %v7974_v49, %v3586_v38 }
 0x38f   : > { %v3869_v43 = vsel %vm1704_vm12, %v3822_v33, 0.0  ;;  %v3823_v5 = vmax.f32 %v3747_v20, 0.0 }
 0x390   : > { %v3870_v62 = vadd.f32 %v3869_v43, %v3868_v8 }
 0x391   : > { %v3871_v52 = vsel %vm1704_vm12, %v3823_v5, 0.0 }
 0x392   : > { %v3872_v17 = vadd.f32 %v3871_v52, %v3870_v62 }
 0x39d   : > { %v4295_v56 = vpop.f32.mrb[36].mxu1 }
 0x39e   : > { %v4296_v9 = vpop.f32.mrb[37].mxu1 }
 0x39f   : > { %v4297_v47 = vadd.f32 %v4296_v9, %v4295_v56  ;;  %v4298_v45 = vpop.f32.mrb[38].mxu1 }
 0x3a0   : > { %v4299_v41 = vpop.f32.mrb[39].mxu1 }
 0x3a1   : > { %v3591_v27 = vadd.f32 %v4297_v47, %v7912_v35  ;;  %v4300_v29 = vadd.f32 %v4299_v41, %v4298_v45 }
 0x3a3   : > { %v3752_v6 = vadd.f32 %v7968_v46, %v3591_v27  ;;  %v3594_v42 = vadd.f32 %v4300_v29, %v7912_v35 }
 0x3a5   : > { %v3824_v49 = vmax.f32 %v3752_v6, 0.0  ;;  %v3755_v19 = vadd.f32 %v7972_v2, %v3594_v42  ;;  %v4301_v7 = vpop.f32.mrb[40].mxu1 }
 0x3a6   : > { %v4302_v21 = vpop.f32.mrb[41].mxu1 }
 0x3a7   : > { %v3873_v54 = vsel %vm1704_vm12, %v3824_v49, 0.0  ;;  %v3825_v63 = vmax.f32 %v3755_v19, 0.0  ;;  %v4303_v11 = vadd.f32 %v4302_v21, %v4301_v7  ;;  %v4304_v34 = vpop.f32.mrb[42].mxu1 }
 0x3a8   : > { %v3874_v50 = vadd.f32 %v3873_v54, %v3872_v17  ;;  %v4305_v58 = vpop.f32.mrb[43].mxu1 }
 0x3a9   : > { %v3875_v37 = vsel %vm1704_vm12, %v3825_v63, 0.0  ;;  %v3599_v18 = vadd.f32 %v4303_v11, %v7912_v35  ;;  %v4306_v57 = vadd.f32 %v4305_v58, %v4304_v34 }
 0x3aa   : > { %v3876_v46 = vadd.f32 %v3875_v37, %v3874_v50 }
 0x3ab   : > { %v3760_v59 = vadd.f32 %v7990_v24, %v3599_v18  ;;  %v3602_v12 = vadd.f32 %v4306_v57, %v7912_v35 }
 0x3ad   : > { %v3826_v2 = vmax.f32 %v3760_v59, 0.0  ;;  %v3763_v36 = vadd.f32 %v7994_v44, %v3602_v12 }
 0x3af   : > { %v3877_v51 = vsel %vm1704_vm12, %v3826_v2, 0.0  ;;  %v3827_v23 = vmax.f32 %v3763_v36, 0.0 }
 0x3b0   : > { %v3878_v61 = vadd.f32 %v3877_v51, %v3876_v46 }
 0x3b1   : > { %v3879_v48 = vsel %vm1704_vm12, %v3827_v23, 0.0 }
 0x3b2   : > { %v3880_v53 = vadd.f32 %v3879_v48, %v3878_v61 }
 0x3bd   : > { %v4307_v3 = vpop.f32.mrb[44].mxu1 }
 0x3be   : > { %v4308_v32 = vpop.f32.mrb[45].mxu1 }
 0x3bf   : > { %v4309_v40 = vadd.f32 %v4308_v32, %v4307_v3  ;;  %v4310_v14 = vpop.f32.mrb[46].mxu1 }
 0x3c0   : > { %v4311_v22 = vpop.f32.mrb[47].mxu1 }
 0x3c1   : > { %v3607_v25 = vadd.f32 %v4309_v40, %v7912_v35  ;;  %v4312_v24 = vadd.f32 %v4311_v22, %v4310_v14 }
 0x3c3   : > { %v3768_v1 = vadd.f32 %v7988_v13, %v3607_v25  ;;  %v3610_v30 = vadd.f32 %v4312_v24, %v7912_v35 }
 0x3c5   : > { %v3828_v44 = vmax.f32 %v3768_v1, 0.0  ;;  %v3771_v60 = vadd.f32 %v7992_v15, %v3610_v30  ;;  %v4313_v8 = vpop.f32.mrb[48].mxu1 }
 0x3c6   : > { %v4314_v16 = vpop.f32.mrb[49].mxu1 }
 0x3c7   : > { %v3881_v38 = vsel %vm1704_vm12, %v3828_v44, 0.0  ;;  %v3829_v33 = vmax.f32 %v3771_v60, 0.0  ;;  %v4315_v20 = vadd.f32 %v4314_v16, %v4313_v8  ;;  %v4316_v43 = vpop.f32.mrb[50].mxu1 }
 0x3c8   : > { %v3882_v5 = vadd.f32 %v3881_v38, %v3880_v53  ;;  %v4317_v62 = vpop.f32.mrb[51].mxu1 }
 0x3c9   : > { %v3883_v52 = vsel %vm1704_vm12, %v3829_v33, 0.0  ;;  %v3615_v17 = vadd.f32 %v4315_v20, %v7912_v35  ;;  %v4318_v56 = vadd.f32 %v4317_v62, %v4316_v43 }
 0x3ca   : > { %v3884_v13 = vadd.f32 %v3883_v52, %v3882_v5 }
 0x3cb   : > { %v3776_v9 = vadd.f32 %v8014_v10, %v3615_v17  ;;  %v3618_v47 = vadd.f32 %v4318_v56, %v7912_v35 }
 0x3cd   : > { %v3830_v15 = vmax.f32 %v3776_v9, 0.0  ;;  %v3779_v45 = vadd.f32 %v8018_v26, %v3618_v47 }
 0x3cf   : > { %v3885_v41 = vsel %vm1704_vm12, %v3830_v15, 0.0  ;;  %v3831_v27 = vmax.f32 %v3779_v45, 0.0 }
 0x3d0   : > { %v3886_v29 = vadd.f32 %v3885_v41, %v3884_v13 }
 0x3d1   : > { %v3887_v6 = vsel %vm1704_vm12, %v3831_v27, 0.0 }
 0x3d2   : > { %v3888_v42 = vadd.f32 %v3887_v6, %v3886_v29 }
 0x3d5   : > { %v4319_v49 = vpop.f32.mrb[52].mxu1 }
 0x3d6   : > { %v4320_v19 = vpop.f32.mrb[53].mxu1 }
 0x3d7   : > { %v4321_v7 = vadd.f32 %v4320_v19, %v4319_v49  ;;  %v4322_v21 = vpop.f32.mrb[54].mxu1 }
 0x3d8   : > { %v4323_v54 = vpop.f32.mrb[55].mxu1 }
 0x3d9   : > { %v3623_v63 = vadd.f32 %v4321_v7, %v7912_v35  ;;  %v4324_v10 = vadd.f32 %v4323_v54, %v4322_v21 }
 0x3db   : > { %v3784_v11 = vadd.f32 %v8012_v4, %v3623_v63  ;;  %v3626_v34 = vadd.f32 %v4324_v10, %v7912_v35 }
 0x3dd   : > { %v3832_v26 = vmax.f32 %v3784_v11, 0.0  ;;  %v3787_v50 = vadd.f32 %v8016_v31, %v3626_v34  ;;  %v4325_v58 = vpop.f32.mrb[56].mxu1 }
 0x3de   : > { %v4326_v37 = vpop.f32.mrb[57].mxu1 }
 0x3df   : > { %v3889_v18 = vsel %vm1704_vm12, %v3832_v26, 0.0  ;;  %v3833_v57 = vmax.f32 %v3787_v50, 0.0  ;;  %v4327_v46 = vadd.f32 %v4326_v37, %v4325_v58  ;;  %v4328_v59 = vpop.f32.mrb[58].mxu1 }
 0x3e0   : > { %v4329_v12 = vpop.f32.mrb[59].mxu1  ;;  %v3890_v2 = vadd.f32 %v3889_v18, %v3888_v42 }
 0x3e1   : > { %v4330_v36 = vadd.f32 %v4329_v12, %v4328_v59  ;;  %v3631_v51 = vadd.f32 %v4327_v46, %v7912_v35  ;;  %v3891_v23 = vsel %vm1704_vm12, %v3833_v57, 0.0 }
 0x3e2   : > { %v3892_v4 = vadd.f32 %v3891_v23, %v3890_v2 }
 0x3e3   : > { %v3792_v61 = vadd.f32 %v8031_v39, %v3631_v51  ;;  %v3634_v48 = vadd.f32 %v4330_v36, %v7912_v35 }
 0x3e5   : > { %v3834_v31 = vmax.f32 %v3792_v61, 0.0  ;;  %v3795_v53 = vadd.f32 %v8039_v28, %v3634_v48 }
 0x3e7   : > { %v3893_v3 = vsel %vm1704_vm12, %v3834_v31, 0.0  ;;  %v3835_v32 = vmax.f32 %v3795_v53, 0.0 }
 0x3e8   : > { %v3894_v40 = vadd.f32 %v3893_v3, %v3892_v4 }
 0x3e9   : > { %v4331_v14 = vpop.f32.mrb[60].mxu1  ;;  %v3895_v22 = vsel %vm1704_vm12, %v3835_v32, 0.0 }
 0x3ea   : > { %v4332_v25 = vpop.f32.mrb[61].mxu1  ;;  %v3896_v24 = vadd.f32 %v3895_v22, %v3894_v40 }
 0x3eb   : > { %v4333_v1 = vadd.f32 %v4332_v25, %v4331_v14  ;;  %v4334_v30 = vpop.f32.mrb[62].mxu1 }
 0x3ec   : > { %v4335_v44 = vpop.f32.mrb[63].mxu1 }
 0x3ed   : > { %v3639_v60 = vadd.f32 %v4333_v1, %v7912_v35  ;;  %v4336_v39 = vadd.f32 %v4335_v44, %v4334_v30 }
 0x3ef   : > { %v3800_v8 = vadd.f32 %v8029_v55, %v3639_v60  ;;  %v3642_v16 = vadd.f32 %v4336_v39, %v7912_v35  ;;  %v3916_v35 = vld [vmem:[%s8163_s6] sm:$0x1] }
 0x3f1   : > { %v3836_v28 = vmax.f32 %v3800_v8, 0.0  ;;  %v3803_v38 = vadd.f32 %v8035_v0, %v3642_v16 }
 0x3f3   : > { %v3897_v33 = vsel %vm1704_vm12, %v3836_v28, 0.0  ;;  %v3837_v20 = vmax.f32 %v3803_v38, 0.0 }
 0x3f4   : > { %v3898_v43 = vadd.f32 %v3897_v33, %v3896_v24 }
 0x3f5   : > { %v3899_v5 = vsel %vm1704_vm12, %v3837_v20, 0.0 }
 0x3f6   : > { %v3900_v62 = vadd.f32 %v3899_v5, %v3898_v43 }
 0x3f8   : > { %v3901_v52 = vrot.slane %v3900_v62, 4 }
 0x3fa   : > { %v3902_v17 = vadd.f32 %v3901_v52, %v3900_v62 }
 0x3fc   : > { %v3903_v56 = vrot.slane %v3902_v17, 2 }
 0x3fe   : > { %v3904_v13 = vadd.f32 %v3903_v56, %v3902_v17 }
 0x400   : > { %v3905_v9 = vrot.slane %v3904_v13, 1 }
 0x402   : > { %v3906_v55 = vadd.f32 %v3905_v9, %v3904_v13 }
 0x404   : > { %v3907_v47 = vpack.c.bf16 %v3906_v55, %v3906_v55 }
 0x406   : > { %4447 = vmatmul.mubr.msk.bf16.vlgmr.msra.gmra.mrb[64].mxu0 %vm1704_vm12, %v3907_v47 }
 0x4d9   : > { %v3978_v0 = vpop.f32.mrb[64].mxu0 }
 0x4da   : > { %v3979_v15 = vadd.f32 %v3978_v0, %v3916_v35  ;;  %v4448_v45 = vpop.f32.mrb[65].mxu0 }
 0x4db   : > { %v3981_v41 = vpop.f32.mrb[66].mxu0 }
 0x4dc   : > { %3984 = vst [vmem:[%s270_s14] sm:$0x1] %v3979_v15  ;;  %v4449_v27 = vpop.f32.mrb[67].mxu0 }
 0x4dd   : > { %5712 = shalt.err (!%p5709_p3)
}
 0x4de   : > { %s5713_s17 = scalar_lea.hbm %s8115_s16, 16  ;;  %s5717_s22 = scalar_lea.hbm %s8164_s7, 32 }
 0x4df   : > { %p5714_p4 = scmp.ne.s32.totalorder %s8115_s16, %s5713_s17  ;;  %p5718_p9 = scmp.lt.u32.totalorder %s8115_s16, %s8164_s7 }
 0x4e0   : > { %p5719_p10 = scmp.lt.u32.totalorder %s5717_s22, %s5713_s17  ;;  %p5721_p12 = scmp.lt.u32.totalorder %s5713_s17, %s8115_s16 }
 0x4e1   : > { %p5715_p7 = pnand %p5714_p4, %p5853_p5 }
 0x4e2   : > { %p5720_p11 = por %p5719_p10, %p5718_p9 }
 0x4e3   : > { %p5716_p8 = pneg %p5715_p7 }
 0x4e4   : > { %p5722_p13 = por %p5721_p12, %p5720_p11 }
 0x4e6   : > { %p5723_p0 = pnand %p5722_p13, %p5716_p8 }
 0x4e8   : > { %5726 = shalt.err (!%p5723_p0)
}
 0x4e9   : > { %4451 = dma.vmem_to_hbm [thread:$0]  (%p5853_p5), %s8117_s29, 16, %s8115_s16, %s3986_s20  }
 0x4ea PF: > { %p4457_p1 = scmp.ge.s32.totalorder %s5761_s27, 2  ;;  %s4010_s13 = sand.u32 1, %s5749_s24  }
 0x4eb   : > { %s4011_s15 = scalar_lea.sflag [#allocation5], %s4010_s13 }
 0x4ec   : > { %p4454_p2 = pnand %p4457_p1, %p5857_p6 }
 0x4ee   : > { %5744 = dma.done.wait (!%p4454_p2), %s4011_s15, 16  }
 0x4ef   : > { %5746 = vsyncadd (!%p4454_p2), %s4011_s15, 4294967280  ;;  %p17_p3 = scmp.ge.s32.totalorder %s5840_s30, 4   ;;  %s8174_s24 = smov %s5753_s25 }
 0x4f0   : > { %s8175_s25 = smov %s5757_s26  ;;  %s8176_s26 = smov %s5851_s10 }
 0x4f1   : > { %s8177_s27 = smov %s5840_s30  ;;  %19 = sbr.rel (!%p17_p3) target bundleno = 3 (0x3), region = 87 }
 0x4f8   :  { %4015 = vsyncpa [#allocation5], 1 }
 0x4f9   :  { %4017 = vsyncpa [#allocation5 + $0x1], 1 }

</bundles_post_ra>
